<compile_context>
chip_gen: v7x
topology: tpu7x:2x2x1
jax: 0.10.0
libtpu: 0.0.40
codegen_flags: <defaults>
</compile_context>

<pallas_src>
import numpy as np
import jax
import jax.numpy as jnp
from jax.experimental import pallas as pl
from jax.experimental.pallas import tpu as pltpu

N_BATCH = 2
HIDDEN_DIMS = 32
OUTPUT_DIMS = 16
BN_EPS = 1e-5


# ----------------------------- in-kernel helpers ------------------------------------ #

def _bn_relu(ys, starts, h_valid, gamma_ref, beta_ref, r_ref, rt_ref, count):
    """Training-mode BatchNorm2d (biased batch variance, eps=1e-5) + ReLU.

    ys: list of stacked conv outputs [M, groups*C] (channel c at lane g*C + c); rows
    [s, s+h_valid) for s in `starts` are the valid (non boundary-garbage) rows.
    r_ref [groups*C, C] / rt_ref [C, groups*C] are 0/1 fold / broadcast matrices.
    Stats and scale/shift each use ONE small matmul (stacked rows)."""
    s1 = s2 = None
    for y in ys:
        for s in starts:
            blk = y[s:s + h_valid]
            a = jnp.sum(blk, axis=0, keepdims=True)
            b = jnp.sum(blk * blk, axis=0, keepdims=True)
            s1 = a if s1 is None else s1 + a
            s2 = b if s2 is None else s2 + b
    st = jnp.concatenate([s1, s2], axis=0)                                  # [2, g*C]
    cs = jnp.dot(st, r_ref[...], preferred_element_type=jnp.float32)       # [2, C]
    inv = 1.0 / count
    mean = cs[0:1] * inv
    var = jnp.maximum(cs[1:2] * inv - mean * mean, 0.0)                    # clamp >= 0
    scale_c = gamma_ref[...] * jax.lax.rsqrt(var + BN_EPS)
    shift_c = beta_ref[...] - mean * scale_c
    sw = jnp.dot(jnp.concatenate([scale_c, shift_c], axis=0), rt_ref[...],
                 preferred_element_type=jnp.float32)                        # [2, g*C]
    return [jnp.maximum(y * sw[0:1] + sw[1:2], 0.0) for y in ys]


def _conv3x3(lhs_fn, t_ref):
    """3x3 conv as 3 batch-stacked accumulated MXU matmuls (one per vertical tap)."""
    acc = None
    for ki in range(3):
        part = jnp.dot(lhs_fn(ki), t_ref[ki], preferred_element_type=jnp.float32)
        acc = part if acc is None else acc + part
    return acc


# ----------------------------- the fused kernel -------------------------------------- #

def _encoder_kernel(x_ref,
                    t1e_ref, t1o_ref, g1_ref, be1_ref,
                    t2_ref, g2_ref, be2_ref,
                    t3_ref, g3_ref, be3_ref,
                    t4_ref, g4_ref, be4_ref,
                    ra_ref, rta_ref, rb_ref, rtb_ref,
                    w1_ref, b1_ref, w2_ref, b2_ref,
                    out_ref,
                    p1, wm, p2, p3, p4, z4s):
    nb = x_ref.shape[0]
    f32 = jnp.float32

    # ---- stage raw NCHW input into the H-padded, channel-planar layer-1 buffer -------- #
    # p1 row layout: sample n occupies rows [n*29, n*29 + 29]; rows at multiples of 29 are
    # shared zero pad rows; data row h at n*29 + 1 + h.  Lanes: c*28 + w (W-pad is in T1).
    for r in range(0, nb * 29 + 1, 29):                       # zero only the pad ring
        p1[r:r + 1, :] = jnp.zeros((1, p1.shape[1]), f32)
    for n in range(nb):
        for c in range(3):
            p1[n * 29 + 1:n * 29 + 29, c * 28:(c + 1) * 28] = x_ref[n, c, :, :]

    # ---- layer 1: conv(3->8, s=1, 28x28) + BN + ReLU (even/odd output columns) -------- #
    m1 = nb * 29 - 1                      # stacked output rows (1 junk row per boundary)
    ye = yo = None
    for ki in range(3):
        lhs = p1[ki:ki + m1, :]                               # [m1, 84], batch stacked in M
        pe = jnp.dot(lhs, t1e_ref[ki], preferred_element_type=f32)
        po = jnp.dot(lhs, t1o_ref[ki], preferred_element_type=f32)
        ye = pe if ye is None else ye + pe
        yo = po if yo is None else yo + po
    ze, zo = _bn_relu([ye, yo], [n * 29 for n in range(nb)], 28,
                      g1_ref, be1_ref, ra_ref, rta_ref, float(nb * 28 * 28))

    # ---- MaxPool 2x2: W-pairs = max(even, odd) cols; H-pairs via stride-2 reads -------- #
    wmax = jnp.maximum(ze, zo)                                # [m1, 112]
    for n in range(nb):
        wm[n * 32:n * 32 + 28, :] = wmax[n * 29:n * 29 + 28, :]
    for r in range(0, nb * 15 + 1, 15):                       # layer-2 pad ring
        p2[r:r + 1, :] = jnp.zeros((1, 112), f32)
    for n in range(nb):
        p2[n * 15 + 1:n * 15 + 15, :] = jnp.maximum(
            wm[pl.ds(n * 32, 14, stride=2), :],
            wm[pl.ds(n * 32 + 1, 14, stride=2), :])

    # ---- layer 2: conv(8->8, s=1, 14x14) + BN + ReLU ----------------------------------- #
    m2 = nb * 15 - 1
    y2 = _conv3x3(lambda ki: p2[ki:ki + m2, :], t2_ref)
    (z2,) = _bn_relu([y2], [n * 15 for n in range(nb)], 14,
                     g2_ref, be2_ref, ra_ref, rta_ref, float(nb * 14 * 14))

    for r in range(0, nb * 15 + 1, 15):                       # layer-3 pad ring
        p3[r:r + 1, :] = jnp.zeros((1, 112), f32)
    for n in range(nb):
        p3[n * 15 + 1:n * 15 + 15, :] = z2[n * 15:n * 15 + 14, :]

    # ---- layer 3: conv(8->16, s=2, 14x14 -> 7x7) + BN + ReLU --------------------------- #
    def lhs3(ki):
        slabs = [p3[pl.ds(n * 15 + ki, 7, stride=2), :] for n in range(nb)]
        return slabs[0] if nb == 1 else jnp.concatenate(slabs, axis=0)     # [nb*7, 112]

    y3 = _conv3x3(lhs3, t3_ref)
    (z3,) = _bn_relu([y3], [0], nb * 7, g3_ref, be3_ref, rb_ref, rtb_ref,
                     float(nb * 7 * 7))

    for r in range(0, nb * 8 + 1, 8):                         # layer-4 pad ring
        p4[r:r + 1, :] = jnp.zeros((1, 112), f32)
    for n in range(nb):
        p4[n * 8 + 1:n * 8 + 8, :] = z3[n * 7:n * 7 + 7, :]

    # ---- layer 4: conv(16->16, s=1, 7x7) + BN + ReLU ----------------------------------- #
    m4 = nb * 8 - 1
    y4 = _conv3x3(lambda ki: p4[ki:ki + m4, :], t4_ref)
    (z4,) = _bn_relu([y4], [n * 8 for n in range(nb)], 7,
                     g4_ref, be4_ref, rb_ref, rtb_ref, float(nb * 7 * 7))

    # ---- head: flatten (ordering folded into w1) + Linear/ReLU/Linear, batch-stacked --- #
    z4s[0:m4, :] = z4                       # sample n's spatial row h lands at row n*8 + h
    h = None
    for r in range(7):
        lhs = z4s[pl.ds(r, nb, stride=8), :]                  # [nb, 112], both samples
        part = jnp.dot(lhs, w1_ref[r * 112:(r + 1) * 112, :],
                       preferred_element_type=f32)
        h = part if h is None else h + part
    h = jnp.maximum(h + b1_ref[...], 0.0)                     # [nb, 32]
    out_ref[...] = jnp.dot(h, w2_ref[...], preferred_element_type=f32) + b2_ref[...]


# ----------------------------- pallas_call wrapper ----------------------------------- #

def _full_spec(shape):
    nd = len(shape)
    return pl.BlockSpec(shape, lambda i, _nd=nd: (0,) * _nd)


@jax.jit
def encoder_forward(prep, x_nchw):
    nb = x_nchw.shape[0]
    x = x_nchw.astype(jnp.float32)                            # raw NCHW straight in

    args = (x,
            prep['t1e'], prep['t1o'], prep['g1'], prep['be1'],
            prep['t2'], prep['g2'], prep['be2'],
            prep['t3'], prep['g3'], prep['be3'],
            prep['t4'], prep['g4'], prep['be4'],
            prep['ra'], prep['rta'], prep['rb'], prep['rtb'],
            prep['w1'], prep['b1'], prep['w2'], prep['b2'])

    return pl.pallas_call(
        _encoder_kernel,
        grid=(1,),
        in_specs=[_full_spec(a.shape) for a in args],
        out_specs=_full_spec((nb, OUTPUT_DIMS)),
        out_shape=jax.ShapeDtypeStruct((nb, OUTPUT_DIMS), jnp.float32),
        scratch_shapes=[
            pltpu.VMEM((nb * 29 + 1, 84), jnp.float32),   # p1 : padded 28x28x3 (planar)
            pltpu.VMEM((nb * 32, 112), jnp.float32),      # wm : W-pooled layer-1 staging
            pltpu.VMEM((nb * 15 + 1, 112), jnp.float32),  # p2 : padded 14x14x8
            pltpu.VMEM((nb * 15 + 1, 112), jnp.float32),  # p3 : padded 14x14x8
            pltpu.VMEM((nb * 8 + 1, 112), jnp.float32),   # p4 : padded 7x7x16
            pltpu.VMEM((nb * 8, 112), jnp.float32),       # z4s: layer-4 output staging
        ],
        compiler_params=pltpu.CompilerParams(dimension_semantics=("arbitrary",)),
    )(*args)


# ----------------------------- parameter preparation --------------------------------- #

def _banded_conv_weight(w_oihw, w_in, stride, *, planar_in=False, wo_keep=None):
    """Banded matrices T[ki] so one padded input row-slab @ T[ki] = one conv tap.

    Rows index the (unpadded) input lanes: w*Cin + c (interleaved) or c*W_in + w
    (planar); W-padding is implicit (out-of-range taps simply have no rows).
    Columns index output lanes wo*Cout + co, with wo drawn from `wo_keep`."""
    c_out, c_in = int(w_oihw.shape[0]), int(w_oihw.shape[1])
    w_out_full = (w_in + 2 - 3) // stride + 1
    wo_list = list(range(w_out_full)) if wo_keep is None else list(wo_keep)
    t = np.zeros((3, w_in * c_in, len(wo_list) * c_out), np.float32)
    for ki in range(3):
        for g, wo in enumerate(wo_list):
            for kj in range(3):
                wi = stride * wo - 1 + kj
                if wi < 0 or wi >= w_in:
                    continue
                for ci in range(c_in):
                    row = (ci * w_in + wi) if planar_in else (wi * c_in + ci)
                    t[ki, row, g * c_out:(g + 1) * c_out] = w_oihw[:, ci, ki, kj]
    return jnp.asarray(t)


def _replication(groups, c):
    r = np.zeros((groups * c, c), np.float32)
    for g in range(groups):
        r[g * c:(g + 1) * c, :] = np.eye(c, dtype=np.float32)
    return jnp.asarray(r), jnp.asarray(np.ascontiguousarray(r.T))


def _permute_linear_rows(w_flat, c, h, w):
    """Reorder Linear input rows: torch NCHW-flatten (c*h*w) -> kernel's [h, w*c] order."""
    idx = np.zeros((h * w * c,), np.int64)
    for hh in range(h):
        for ww in range(w):
            for cc in range(c):
                idx[hh * (w * c) + ww * c + cc] = cc * (h * w) + hh * w + ww
    return w_flat[idx, :]


def make_params(key):
    def conv_w(k, c_out, c_in):
        return jax.random.normal(k, (c_out, c_in, 3, 3), jnp.float32) * (2.0 / (9 * c_in)) ** 0.5

    ks = list(jax.random.split(key, 16))
    w1c = np.asarray(conv_w(ks[0], 8, 3))
    w2c = np.asarray(conv_w(ks[1], 8, 8))
    w3c = np.asarray(conv_w(ks[2], 16, 8))
    w4c = np.asarray(conv_w(ks[3], 16, 16))
    gammas = [1.0 + 0.1 * jax.random.normal(ks[4 + i], (c,), jnp.float32)
              for i, c in enumerate((8, 8, 16, 16))]
    betas = [0.1 * jax.random.normal(ks[8 + i], (c,), jnp.float32)
             for i, c in enumerate((8, 8, 16, 16))]
    feat = 7 * 7 * 16
    wl1 = jax.random.normal(ks[12], (feat, HIDDEN_DIMS), jnp.float32) * (1.0 / feat) ** 0.5
    bl1 = 0.05 * jax.random.normal(ks[13], (HIDDEN_DIMS,), jnp.float32)
    wl2 = jax.random.normal(ks[14], (HIDDEN_DIMS, OUTPUT_DIMS), jnp.float32) * (1.0 / HIDDEN_DIMS) ** 0.5
    bl2 = 0.05 * jax.random.normal(ks[15], (OUTPUT_DIMS,), jnp.float32)
    # Conv2d biases are intentionally omitted: they cancel exactly under the batch-mean
    # subtraction of the following training-mode BatchNorm2d.

    ra, rta = _replication(14, 8)     # 14 width-groups x 8 channels (layers 1 & 2)
    rb, rtb = _replication(7, 16)     # 7 width-groups x 16 channels (layers 3 & 4)

    return dict(
        t1e=_banded_conv_weight(w1c, 28, 1, planar_in=True, wo_keep=range(0, 28, 2)),
        t1o=_banded_conv_weight(w1c, 28, 1, planar_in=True, wo_keep=range(1, 28, 2)),
        t2=_banded_conv_weight(w2c, 14, 1),
        t3=_banded_conv_weight(w3c, 14, 2),
        t4=_banded_conv_weight(w4c, 7, 1),
        g1=gammas[0].reshape(1, -1), be1=betas[0].reshape(1, -1),
        g2=gammas[1].reshape(1, -1), be2=betas[1].reshape(1, -1),
        g3=gammas[2].reshape(1, -1), be3=betas[2].reshape(1, -1),
        g4=gammas[3].reshape(1, -1), be4=betas[3].reshape(1, -1),
        ra=ra, rta=rta, rb=rb, rtb=rtb,
        w1=jnp.asarray(_permute_linear_rows(np.asarray(wl1), 16, 7, 7)),
        b1=bl1.reshape(1, -1),
        w2=wl2, b2=bl2.reshape(1, -1),
    )


# ----------------------------- main --------------------------------------------------- #

if __name__ == "__main__":
    # CMNIST-like input: the 7*7*out_channels Linear head implies 28x28 spatial input.
    x = jax.random.normal(jax.random.PRNGKey(0), (N_BATCH, 3, 28, 28), jnp.float32)
    prep = make_params(jax.random.PRNGKey(42))

    out = jax.block_until_ready(encoder_forward(prep, x))

    assert out.shape == (N_BATCH, OUTPUT_DIMS), out.shape
    assert bool(jnp.all(jnp.isfinite(out)))
    print("KERNEL_OK")
</pallas_src>

<mosaic_0001>
module attributes {stable_mosaic.version = 11 : i64} {
  func.func @_encoder_kernel(%arg0: i32, %arg1: memref<2x3x28x28xf32, #tpu.memory_space<vmem>>, %arg2: memref<3x84x112xf32, #tpu.memory_space<vmem>>, %arg3: memref<3x84x112xf32, #tpu.memory_space<vmem>>, %arg4: memref<1x8xf32, #tpu.memory_space<vmem>>, %arg5: memref<1x8xf32, #tpu.memory_space<vmem>>, %arg6: memref<3x112x112xf32, #tpu.memory_space<vmem>>, %arg7: memref<1x8xf32, #tpu.memory_space<vmem>>, %arg8: memref<1x8xf32, #tpu.memory_space<vmem>>, %arg9: memref<3x112x112xf32, #tpu.memory_space<vmem>>, %arg10: memref<1x16xf32, #tpu.memory_space<vmem>>, %arg11: memref<1x16xf32, #tpu.memory_space<vmem>>, %arg12: memref<3x112x112xf32, #tpu.memory_space<vmem>>, %arg13: memref<1x16xf32, #tpu.memory_space<vmem>>, %arg14: memref<1x16xf32, #tpu.memory_space<vmem>>, %arg15: memref<112x8xf32, #tpu.memory_space<vmem>>, %arg16: memref<8x112xf32, #tpu.memory_space<vmem>>, %arg17: memref<112x16xf32, #tpu.memory_space<vmem>>, %arg18: memref<16x112xf32, #tpu.memory_space<vmem>>, %arg19: memref<784x32xf32, #tpu.memory_space<vmem>>, %arg20: memref<1x32xf32, #tpu.memory_space<vmem>>, %arg21: memref<32x16xf32, #tpu.memory_space<vmem>>, %arg22: memref<1x16xf32, #tpu.memory_space<vmem>>, %arg23: memref<2x16xf32, #tpu.memory_space<vmem>>, %arg24: memref<59x84xf32, #tpu.memory_space<vmem>>, %arg25: memref<64x112xf32, #tpu.memory_space<vmem>>, %arg26: memref<31x112xf32, #tpu.memory_space<vmem>>, %arg27: memref<31x112xf32, #tpu.memory_space<vmem>>, %arg28: memref<17x112xf32, #tpu.memory_space<vmem>>, %arg29: memref<16x112xf32, #tpu.memory_space<vmem>>) attributes {dimension_semantics = [#tpu.dimension_semantics<arbitrary>], iteration_bounds = array<i64: 1>, scalar_prefetch = 0 : i64, scratch_operands = 6 : i64, tpu.core_type = #tpu.core_type<tc>, window_params = [{pipeline_mode = #tpu.pipeline_mode<synchronous>, transform_indices = @transform_0, window_bounds = array<i64: 2, 3, 28, 28>}, {pipeline_mode = #tpu.pipeline_mode<synchronous>, transform_indices = @transform_1, window_bounds = array<i64: 3, 84, 112>}, {pipeline_mode = #tpu.pipeline_mode<synchronous>, transform_indices = @transform_2, window_bounds = array<i64: 3, 84, 112>}, {pipeline_mode = #tpu.pipeline_mode<synchronous>, transform_indices = @transform_3, window_bounds = array<i64: 1, 8>}, {pipeline_mode = #tpu.pipeline_mode<synchronous>, transform_indices = @transform_4, window_bounds = array<i64: 1, 8>}, {pipeline_mode = #tpu.pipeline_mode<synchronous>, transform_indices = @transform_5, window_bounds = array<i64: 3, 112, 112>}, {pipeline_mode = #tpu.pipeline_mode<synchronous>, transform_indices = @transform_6, window_bounds = array<i64: 1, 8>}, {pipeline_mode = #tpu.pipeline_mode<synchronous>, transform_indices = @transform_7, window_bounds = array<i64: 1, 8>}, {pipeline_mode = #tpu.pipeline_mode<synchronous>, transform_indices = @transform_8, window_bounds = array<i64: 3, 112, 112>}, {pipeline_mode = #tpu.pipeline_mode<synchronous>, transform_indices = @transform_9, window_bounds = array<i64: 1, 16>}, {pipeline_mode = #tpu.pipeline_mode<synchronous>, transform_indices = @transform_10, window_bounds = array<i64: 1, 16>}, {pipeline_mode = #tpu.pipeline_mode<synchronous>, transform_indices = @transform_11, window_bounds = array<i64: 3, 112, 112>}, {pipeline_mode = #tpu.pipeline_mode<synchronous>, transform_indices = @transform_12, window_bounds = array<i64: 1, 16>}, {pipeline_mode = #tpu.pipeline_mode<synchronous>, transform_indices = @transform_13, window_bounds = array<i64: 1, 16>}, {pipeline_mode = #tpu.pipeline_mode<synchronous>, transform_indices = @transform_14, window_bounds = array<i64: 112, 8>}, {pipeline_mode = #tpu.pipeline_mode<synchronous>, transform_indices = @transform_15, window_bounds = array<i64: 8, 112>}, {pipeline_mode = #tpu.pipeline_mode<synchronous>, transform_indices = @transform_16, window_bounds = array<i64: 112, 16>}, {pipeline_mode = #tpu.pipeline_mode<synchronous>, transform_indices = @transform_17, window_bounds = array<i64: 16, 112>}, {pipeline_mode = #tpu.pipeline_mode<synchronous>, transform_indices = @transform_18, window_bounds = array<i64: 784, 32>}, {pipeline_mode = #tpu.pipeline_mode<synchronous>, transform_indices = @transform_19, window_bounds = array<i64: 1, 32>}, {pipeline_mode = #tpu.pipeline_mode<synchronous>, transform_indices = @transform_20, window_bounds = array<i64: 32, 16>}, {pipeline_mode = #tpu.pipeline_mode<synchronous>, transform_indices = @transform_21, window_bounds = array<i64: 1, 16>}, {pipeline_mode = #tpu.pipeline_mode<synchronous>, transform_indices = @transform_22, window_bounds = array<i64: 2, 16>}]} {
    %cst = arith.constant 0.000000e+00 : f32
    %0 = vector.broadcast %cst : f32 to vector<1x84xf32>
    %c0 = arith.constant 0 : index
    %c0_0 = arith.constant 0 : index
    %1 = vector.load %arg24[%c0, %c0_0] : memref<59x84xf32, #tpu.memory_space<vmem>>, vector<1x84xf32>
    tpu.vector_store %arg24[%c0, %c0_0], %0 {strides = array<i32>} : memref<59x84xf32, #tpu.memory_space<vmem>>, vector<1x84xf32>,
    %cst_1 = arith.constant 0.000000e+00 : f32
    %2 = vector.broadcast %cst_1 : f32 to vector<1x84xf32>
    %c29 = arith.constant 29 : index
    %c0_2 = arith.constant 0 : index
    %3 = vector.load %arg24[%c29, %c0_2] : memref<59x84xf32, #tpu.memory_space<vmem>>, vector<1x84xf32>
    tpu.vector_store %arg24[%c29, %c0_2], %2 {strides = array<i32>} : memref<59x84xf32, #tpu.memory_space<vmem>>, vector<1x84xf32>,
    %cst_3 = arith.constant 0.000000e+00 : f32
    %4 = vector.broadcast %cst_3 : f32 to vector<1x84xf32>
    %c58 = arith.constant 58 : index
    %c0_4 = arith.constant 0 : index
    %5 = vector.load %arg24[%c58, %c0_4] : memref<59x84xf32, #tpu.memory_space<vmem>>, vector<1x84xf32>
    tpu.vector_store %arg24[%c58, %c0_4], %4 {strides = array<i32>} : memref<59x84xf32, #tpu.memory_space<vmem>>, vector<1x84xf32>,
    %c0_5 = arith.constant 0 : index
    %c0_6 = arith.constant 0 : index
    %c0_7 = arith.constant 0 : index
    %c0_8 = arith.constant 0 : index
    %6 = vector.load %arg1[%c0_5, %c0_6, %c0_7, %c0_8] : memref<2x3x28x28xf32, #tpu.memory_space<vmem>>, vector<1x1x28x28xf32>
    %7 = vector.shape_cast %6 : vector<1x1x28x28xf32> to vector<28x28xf32>
    %c1 = arith.constant 1 : index
    %c0_9 = arith.constant 0 : index
    %8 = vector.load %arg24[%c1, %c0_9] : memref<59x84xf32, #tpu.memory_space<vmem>>, vector<28x28xf32>
    tpu.vector_store %arg24[%c1, %c0_9], %7 {strides = array<i32>} : memref<59x84xf32, #tpu.memory_space<vmem>>, vector<28x28xf32>,
    %c0_10 = arith.constant 0 : index
    %c1_11 = arith.constant 1 : index
    %c0_12 = arith.constant 0 : index
    %c0_13 = arith.constant 0 : index
    %9 = vector.load %arg1[%c0_10, %c1_11, %c0_12, %c0_13] : memref<2x3x28x28xf32, #tpu.memory_space<vmem>>, vector<1x1x28x28xf32>
    %10 = vector.shape_cast %9 : vector<1x1x28x28xf32> to vector<28x28xf32>
    %c1_14 = arith.constant 1 : index
    %c28 = arith.constant 28 : index
    %11 = vector.load %arg24[%c1_14, %c28] : memref<59x84xf32, #tpu.memory_space<vmem>>, vector<28x28xf32>
    tpu.vector_store %arg24[%c1_14, %c28], %10 {strides = array<i32>} : memref<59x84xf32, #tpu.memory_space<vmem>>, vector<28x28xf32>,
    %c0_15 = arith.constant 0 : index
    %c2 = arith.constant 2 : index
    %c0_16 = arith.constant 0 : index
    %c0_17 = arith.constant 0 : index
    %12 = vector.load %arg1[%c0_15, %c2, %c0_16, %c0_17] : memref<2x3x28x28xf32, #tpu.memory_space<vmem>>, vector<1x1x28x28xf32>
    %13 = vector.shape_cast %12 : vector<1x1x28x28xf32> to vector<28x28xf32>
    %c1_18 = arith.constant 1 : index
    %c56 = arith.constant 56 : index
    %14 = vector.load %arg24[%c1_18, %c56] : memref<59x84xf32, #tpu.memory_space<vmem>>, vector<28x28xf32>
    tpu.vector_store %arg24[%c1_18, %c56], %13 {strides = array<i32>} : memref<59x84xf32, #tpu.memory_space<vmem>>, vector<28x28xf32>,
    %c1_19 = arith.constant 1 : index
    %c0_20 = arith.constant 0 : index
    %c0_21 = arith.constant 0 : index
    %c0_22 = arith.constant 0 : index
    %15 = vector.load %arg1[%c1_19, %c0_20, %c0_21, %c0_22] : memref<2x3x28x28xf32, #tpu.memory_space<vmem>>, vector<1x1x28x28xf32>
    %16 = vector.shape_cast %15 : vector<1x1x28x28xf32> to vector<28x28xf32>
    %c30 = arith.constant 30 : index
    %c0_23 = arith.constant 0 : index
    %17 = vector.load %arg24[%c30, %c0_23] : memref<59x84xf32, #tpu.memory_space<vmem>>, vector<28x28xf32>
    tpu.vector_store %arg24[%c30, %c0_23], %16 {strides = array<i32>} : memref<59x84xf32, #tpu.memory_space<vmem>>, vector<28x28xf32>,
    %c1_24 = arith.constant 1 : index
    %c1_25 = arith.constant 1 : index
    %c0_26 = arith.constant 0 : index
    %c0_27 = arith.constant 0 : index
    %18 = vector.load %arg1[%c1_24, %c1_25, %c0_26, %c0_27] : memref<2x3x28x28xf32, #tpu.memory_space<vmem>>, vector<1x1x28x28xf32>
    %19 = vector.shape_cast %18 : vector<1x1x28x28xf32> to vector<28x28xf32>
    %c30_28 = arith.constant 30 : index
    %c28_29 = arith.constant 28 : index
    %20 = vector.load %arg24[%c30_28, %c28_29] : memref<59x84xf32, #tpu.memory_space<vmem>>, vector<28x28xf32>
    tpu.vector_store %arg24[%c30_28, %c28_29], %19 {strides = array<i32>} : memref<59x84xf32, #tpu.memory_space<vmem>>, vector<28x28xf32>,
    %c1_30 = arith.constant 1 : index
    %c2_31 = arith.constant 2 : index
    %c0_32 = arith.constant 0 : index
    %c0_33 = arith.constant 0 : index
    %21 = vector.load %arg1[%c1_30, %c2_31, %c0_32, %c0_33] : memref<2x3x28x28xf32, #tpu.memory_space<vmem>>, vector<1x1x28x28xf32>
    %22 = vector.shape_cast %21 : vector<1x1x28x28xf32> to vector<28x28xf32>
    %c30_34 = arith.constant 30 : index
    %c56_35 = arith.constant 56 : index
    %23 = vector.load %arg24[%c30_34, %c56_35] : memref<59x84xf32, #tpu.memory_space<vmem>>, vector<28x28xf32>
    tpu.vector_store %arg24[%c30_34, %c56_35], %22 {strides = array<i32>} : memref<59x84xf32, #tpu.memory_space<vmem>>, vector<28x28xf32>,
    %c0_36 = arith.constant 0 : index
    %c0_37 = arith.constant 0 : index
    %24 = vector.load %arg24[%c0_36, %c0_37] : memref<59x84xf32, #tpu.memory_space<vmem>>, vector<57x84xf32>
    %c0_38 = arith.constant 0 : index
    %c0_39 = arith.constant 0 : index
    %c0_40 = arith.constant 0 : index
    %25 = vector.load %arg2[%c0_38, %c0_39, %c0_40] : memref<3x84x112xf32, #tpu.memory_space<vmem>>, vector<1x84x112xf32>
    %26 = vector.shape_cast %25 : vector<1x84x112xf32> to vector<84x112xf32>
    %cst_41 = arith.constant dense<0.000000e+00> : vector<57x112xf32>
    %27 = tpu.matmul %24, %26, %cst_41 {dimension_numbers = #tpu.dot_dimension_numbers<[1], [0], [0], [1], [0, 0, 1, 1], [], []>} : vector<57x84xf32>, vector<84x112xf32>, vector<57x112xf32> -> vector<57x112xf32>
    %c0_42 = arith.constant 0 : index
    %c0_43 = arith.constant 0 : index
    %c0_44 = arith.constant 0 : index
    %28 = vector.load %arg3[%c0_42, %c0_43, %c0_44] : memref<3x84x112xf32, #tpu.memory_space<vmem>>, vector<1x84x112xf32>
    %29 = vector.shape_cast %28 : vector<1x84x112xf32> to vector<84x112xf32>
    %cst_45 = arith.constant dense<0.000000e+00> : vector<57x112xf32>
    %30 = tpu.matmul %24, %29, %cst_45 {dimension_numbers = #tpu.dot_dimension_numbers<[1], [0], [0], [1], [0, 0, 1, 1], [], []>} : vector<57x84xf32>, vector<84x112xf32>, vector<57x112xf32> -> vector<57x112xf32>
    %c1_46 = arith.constant 1 : index
    %c0_47 = arith.constant 0 : index
    %31 = vector.load %arg24[%c1_46, %c0_47] : memref<59x84xf32, #tpu.memory_space<vmem>>, vector<57x84xf32>
    %c1_48 = arith.constant 1 : index
    %c0_49 = arith.constant 0 : index
    %c0_50 = arith.constant 0 : index
    %32 = vector.load %arg2[%c1_48, %c0_49, %c0_50] : memref<3x84x112xf32, #tpu.memory_space<vmem>>, vector<1x84x112xf32>
    %33 = vector.shape_cast %32 : vector<1x84x112xf32> to vector<84x112xf32>
    %cst_51 = arith.constant dense<0.000000e+00> : vector<57x112xf32>
    %34 = tpu.matmul %31, %33, %cst_51 {dimension_numbers = #tpu.dot_dimension_numbers<[1], [0], [0], [1], [0, 0, 1, 1], [], []>} : vector<57x84xf32>, vector<84x112xf32>, vector<57x112xf32> -> vector<57x112xf32>
    %c1_52 = arith.constant 1 : index
    %c0_53 = arith.constant 0 : index
    %c0_54 = arith.constant 0 : index
    %35 = vector.load %arg3[%c1_52, %c0_53, %c0_54] : memref<3x84x112xf32, #tpu.memory_space<vmem>>, vector<1x84x112xf32>
    %36 = vector.shape_cast %35 : vector<1x84x112xf32> to vector<84x112xf32>
    %cst_55 = arith.constant dense<0.000000e+00> : vector<57x112xf32>
    %37 = tpu.matmul %31, %36, %cst_55 {dimension_numbers = #tpu.dot_dimension_numbers<[1], [0], [0], [1], [0, 0, 1, 1], [], []>} : vector<57x84xf32>, vector<84x112xf32>, vector<57x112xf32> -> vector<57x112xf32>
    %38 = arith.addf %27, %34 : vector<57x112xf32>
    %39 = arith.addf %30, %37 : vector<57x112xf32>
    %c2_56 = arith.constant 2 : index
    %c0_57 = arith.constant 0 : index
    %40 = vector.load %arg24[%c2_56, %c0_57] : memref<59x84xf32, #tpu.memory_space<vmem>>, vector<57x84xf32>
    %c2_58 = arith.constant 2 : index
    %c0_59 = arith.constant 0 : index
    %c0_60 = arith.constant 0 : index
    %41 = vector.load %arg2[%c2_58, %c0_59, %c0_60] : memref<3x84x112xf32, #tpu.memory_space<vmem>>, vector<1x84x112xf32>
    %42 = vector.shape_cast %41 : vector<1x84x112xf32> to vector<84x112xf32>
    %cst_61 = arith.constant dense<0.000000e+00> : vector<57x112xf32>
    %43 = tpu.matmul %40, %42, %cst_61 {dimension_numbers = #tpu.dot_dimension_numbers<[1], [0], [0], [1], [0, 0, 1, 1], [], []>} : vector<57x84xf32>, vector<84x112xf32>, vector<57x112xf32> -> vector<57x112xf32>
    %c2_62 = arith.constant 2 : index
    %c0_63 = arith.constant 0 : index
    %c0_64 = arith.constant 0 : index
    %44 = vector.load %arg3[%c2_62, %c0_63, %c0_64] : memref<3x84x112xf32, #tpu.memory_space<vmem>>, vector<1x84x112xf32>
    %45 = vector.shape_cast %44 : vector<1x84x112xf32> to vector<84x112xf32>
    %cst_65 = arith.constant dense<0.000000e+00> : vector<57x112xf32>
    %46 = tpu.matmul %40, %45, %cst_65 {dimension_numbers = #tpu.dot_dimension_numbers<[1], [0], [0], [1], [0, 0, 1, 1], [], []>} : vector<57x84xf32>, vector<84x112xf32>, vector<57x112xf32> -> vector<57x112xf32>
    %47 = arith.addf %38, %43 : vector<57x112xf32>
    %48 = arith.addf %39, %46 : vector<57x112xf32>
    %49 = vector.extract_strided_slice %47 {offsets = [0, 0], sizes = [28, 112], strides = [1, 1]} : vector<57x112xf32> to vector<28x112xf32>
    %cst_66 = arith.constant dense<0.000000e+00> : vector<112xf32>
    %50 = vector.multi_reduction <add>, %49, %cst_66 [0] : vector<28x112xf32> to vector<112xf32>
    %51 = vector.shape_cast %50 : vector<112xf32> to vector<1x112xf32>
    %52 = arith.mulf %49, %49 : vector<28x112xf32>
    %cst_67 = arith.constant dense<0.000000e+00> : vector<112xf32>
    %53 = vector.multi_reduction <add>, %52, %cst_67 [0] : vector<28x112xf32> to vector<112xf32>
    %54 = vector.shape_cast %53 : vector<112xf32> to vector<1x112xf32>
    %55 = vector.extract_strided_slice %47 {offsets = [29, 0], sizes = [28, 112], strides = [1, 1]} : vector<57x112xf32> to vector<28x112xf32>
    %cst_68 = arith.constant dense<0.000000e+00> : vector<112xf32>
    %56 = vector.multi_reduction <add>, %55, %cst_68 [0] : vector<28x112xf32> to vector<112xf32>
    %57 = vector.shape_cast %56 : vector<112xf32> to vector<1x112xf32>
    %58 = arith.mulf %55, %55 : vector<28x112xf32>
    %cst_69 = arith.constant dense<0.000000e+00> : vector<112xf32>
    %59 = vector.multi_reduction <add>, %58, %cst_69 [0] : vector<28x112xf32> to vector<112xf32>
    %60 = vector.shape_cast %59 : vector<112xf32> to vector<1x112xf32>
    %61 = arith.addf %51, %57 : vector<1x112xf32>
    %62 = arith.addf %54, %60 : vector<1x112xf32>
    %63 = vector.extract_strided_slice %48 {offsets = [0, 0], sizes = [28, 112], strides = [1, 1]} : vector<57x112xf32> to vector<28x112xf32>
    %cst_70 = arith.constant dense<0.000000e+00> : vector<112xf32>
    %64 = vector.multi_reduction <add>, %63, %cst_70 [0] : vector<28x112xf32> to vector<112xf32>
    %65 = vector.shape_cast %64 : vector<112xf32> to vector<1x112xf32>
    %66 = arith.mulf %63, %63 : vector<28x112xf32>
    %cst_71 = arith.constant dense<0.000000e+00> : vector<112xf32>
    %67 = vector.multi_reduction <add>, %66, %cst_71 [0] : vector<28x112xf32> to vector<112xf32>
    %68 = vector.shape_cast %67 : vector<112xf32> to vector<1x112xf32>
    %69 = arith.addf %61, %65 : vector<1x112xf32>
    %70 = arith.addf %62, %68 : vector<1x112xf32>
    %71 = vector.extract_strided_slice %48 {offsets = [29, 0], sizes = [28, 112], strides = [1, 1]} : vector<57x112xf32> to vector<28x112xf32>
    %cst_72 = arith.constant dense<0.000000e+00> : vector<112xf32>
    %72 = vector.multi_reduction <add>, %71, %cst_72 [0] : vector<28x112xf32> to vector<112xf32>
    %73 = vector.shape_cast %72 : vector<112xf32> to vector<1x112xf32>
    %74 = arith.mulf %71, %71 : vector<28x112xf32>
    %cst_73 = arith.constant dense<0.000000e+00> : vector<112xf32>
    %75 = vector.multi_reduction <add>, %74, %cst_73 [0] : vector<28x112xf32> to vector<112xf32>
    %76 = vector.shape_cast %75 : vector<112xf32> to vector<1x112xf32>
    %77 = arith.addf %69, %73 : vector<1x112xf32>
    %78 = arith.addf %70, %76 : vector<1x112xf32>
    %79 = tpu.concatenate %77, %78 in 0 : vector<1x112xf32>, vector<1x112xf32> -> vector<2x112xf32>
    %c0_74 = arith.constant 0 : index
    %c0_75 = arith.constant 0 : index
    %80 = vector.load %arg15[%c0_74, %c0_75] : memref<112x8xf32, #tpu.memory_space<vmem>>, vector<112x8xf32>
    %cst_76 = arith.constant dense<0.000000e+00> : vector<2x8xf32>
    %81 = tpu.matmul %79, %80, %cst_76 {dimension_numbers = #tpu.dot_dimension_numbers<[1], [0], [0], [1], [0, 0, 1, 1], [], []>} : vector<2x112xf32>, vector<112x8xf32>, vector<2x8xf32> -> vector<2x8xf32>
    %82 = vector.extract_strided_slice %81 {offsets = [0, 0], sizes = [1, 8], strides = [1, 1]} : vector<2x8xf32> to vector<1x8xf32>
    %cst_77 = arith.constant 6.37755089E-4 : f32
    %83 = vector.broadcast %cst_77 : f32 to vector<1x8xf32>
    %84 = arith.mulf %82, %83 : vector<1x8xf32>
    %85 = vector.extract_strided_slice %81 {offsets = [1, 0], sizes = [1, 8], strides = [1, 1]} : vector<2x8xf32> to vector<1x8xf32>
    %cst_78 = arith.constant 6.37755089E-4 : f32
    %86 = vector.broadcast %cst_78 : f32 to vector<1x8xf32>
    %87 = arith.mulf %85, %86 : vector<1x8xf32>
    %88 = arith.mulf %84, %84 : vector<1x8xf32>
    %89 = arith.subf %87, %88 : vector<1x8xf32>
    %cst_79 = arith.constant 0.000000e+00 : f32
    %90 = vector.broadcast %cst_79 : f32 to vector<1x8xf32>
    %91 = arith.maximumf %89, %90 : vector<1x8xf32>
    %c0_80 = arith.constant 0 : index
    %c0_81 = arith.constant 0 : index
    %92 = vector.load %arg4[%c0_80, %c0_81] : memref<1x8xf32, #tpu.memory_space<vmem>>, vector<1x8xf32>
    %cst_82 = arith.constant 9.99999974E-6 : f32
    %93 = vector.broadcast %cst_82 : f32 to vector<1x8xf32>
    %94 = arith.addf %91, %93 : vector<1x8xf32>
    %95 = math.rsqrt %94 : vector<1x8xf32>
    %96 = arith.mulf %92, %95 : vector<1x8xf32>
    %c0_83 = arith.constant 0 : index
    %c0_84 = arith.constant 0 : index
    %97 = vector.load %arg5[%c0_83, %c0_84] : memref<1x8xf32, #tpu.memory_space<vmem>>, vector<1x8xf32>
    %98 = arith.mulf %84, %96 : vector<1x8xf32>
    %99 = arith.subf %97, %98 : vector<1x8xf32>
    %100 = tpu.concatenate %96, %99 in 0 : vector<1x8xf32>, vector<1x8xf32> -> vector<2x8xf32>
    %c0_85 = arith.constant 0 : index
    %c0_86 = arith.constant 0 : index
    %101 = vector.load %arg16[%c0_85, %c0_86] : memref<8x112xf32, #tpu.memory_space<vmem>>, vector<8x112xf32>
    %cst_87 = arith.constant dense<0.000000e+00> : vector<2x112xf32>
    %102 = tpu.matmul %100, %101, %cst_87 {dimension_numbers = #tpu.dot_dimension_numbers<[1], [0], [0], [1], [0, 0, 1, 1], [], []>} : vector<2x8xf32>, vector<8x112xf32>, vector<2x112xf32> -> vector<2x112xf32>
    %103 = vector.extract_strided_slice %102 {offsets = [0, 0], sizes = [1, 112], strides = [1, 1]} : vector<2x112xf32> to vector<1x112xf32>
    %104 = vector.broadcast %103 : vector<1x112xf32> to vector<57x112xf32>
    %105 = arith.mulf %47, %104 : vector<57x112xf32>
    %106 = vector.extract_strided_slice %102 {offsets = [1, 0], sizes = [1, 112], strides = [1, 1]} : vector<2x112xf32> to vector<1x112xf32>
    %107 = vector.broadcast %106 : vector<1x112xf32> to vector<57x112xf32>
    %108 = arith.addf %105, %107 : vector<57x112xf32>
    %cst_88 = arith.constant 0.000000e+00 : f32
    %109 = vector.broadcast %cst_88 : f32 to vector<57x112xf32>
    %110 = arith.maximumf %108, %109 : vector<57x112xf32>
    %111 = vector.extract_strided_slice %102 {offsets = [0, 0], sizes = [1, 112], strides = [1, 1]} : vector<2x112xf32> to vector<1x112xf32>
    %112 = vector.broadcast %111 : vector<1x112xf32> to vector<57x112xf32>
    %113 = arith.mulf %48, %112 : vector<57x112xf32>
    %114 = vector.extract_strided_slice %102 {offsets = [1, 0], sizes = [1, 112], strides = [1, 1]} : vector<2x112xf32> to vector<1x112xf32>
    %115 = vector.broadcast %114 : vector<1x112xf32> to vector<57x112xf32>
    %116 = arith.addf %113, %115 : vector<57x112xf32>
    %cst_89 = arith.constant 0.000000e+00 : f32
    %117 = vector.broadcast %cst_89 : f32 to vector<57x112xf32>
    %118 = arith.maximumf %116, %117 : vector<57x112xf32>
    %119 = arith.maximumf %110, %118 : vector<57x112xf32>
    %120 = vector.extract_strided_slice %119 {offsets = [0, 0], sizes = [28, 112], strides = [1, 1]} : vector<57x112xf32> to vector<28x112xf32>
    %c0_90 = arith.constant 0 : index
    %c0_91 = arith.constant 0 : index
    %121 = vector.load %arg25[%c0_90, %c0_91] : memref<64x112xf32, #tpu.memory_space<vmem>>, vector<28x112xf32>
    tpu.vector_store %arg25[%c0_90, %c0_91], %120 {strides = array<i32>} : memref<64x112xf32, #tpu.memory_space<vmem>>, vector<28x112xf32>,
    %122 = vector.extract_strided_slice %119 {offsets = [29, 0], sizes = [28, 112], strides = [1, 1]} : vector<57x112xf32> to vector<28x112xf32>
    %c32 = arith.constant 32 : index
    %c0_92 = arith.constant 0 : index
    %123 = vector.load %arg25[%c32, %c0_92] : memref<64x112xf32, #tpu.memory_space<vmem>>, vector<28x112xf32>
    tpu.vector_store %arg25[%c32, %c0_92], %122 {strides = array<i32>} : memref<64x112xf32, #tpu.memory_space<vmem>>, vector<28x112xf32>,
    %cst_93 = arith.constant 0.000000e+00 : f32
    %124 = vector.broadcast %cst_93 : f32 to vector<1x112xf32>
    %c0_94 = arith.constant 0 : index
    %c0_95 = arith.constant 0 : index
    %125 = vector.load %arg26[%c0_94, %c0_95] : memref<31x112xf32, #tpu.memory_space<vmem>>, vector<1x112xf32>
    tpu.vector_store %arg26[%c0_94, %c0_95], %124 {strides = array<i32>} : memref<31x112xf32, #tpu.memory_space<vmem>>, vector<1x112xf32>,
    %cst_96 = arith.constant 0.000000e+00 : f32
    %126 = vector.broadcast %cst_96 : f32 to vector<1x112xf32>
    %c15 = arith.constant 15 : index
    %c0_97 = arith.constant 0 : index
    %127 = vector.load %arg26[%c15, %c0_97] : memref<31x112xf32, #tpu.memory_space<vmem>>, vector<1x112xf32>
    tpu.vector_store %arg26[%c15, %c0_97], %126 {strides = array<i32>} : memref<31x112xf32, #tpu.memory_space<vmem>>, vector<1x112xf32>,
    %cst_98 = arith.constant 0.000000e+00 : f32
    %128 = vector.broadcast %cst_98 : f32 to vector<1x112xf32>
    %c30_99 = arith.constant 30 : index
    %c0_100 = arith.constant 0 : index
    %129 = vector.load %arg26[%c30_99, %c0_100] : memref<31x112xf32, #tpu.memory_space<vmem>>, vector<1x112xf32>
    tpu.vector_store %arg26[%c30_99, %c0_100], %128 {strides = array<i32>} : memref<31x112xf32, #tpu.memory_space<vmem>>, vector<1x112xf32>,
    %c0_101 = arith.constant 0 : index
    %c0_102 = arith.constant 0 : index
    %130 = tpu.strided_load %arg25[%c0_101, %c0_102] {strides = array<i32: 2, 1>} : memref<64x112xf32, #tpu.memory_space<vmem>>, vector<14x112xf32>
    %c1_103 = arith.constant 1 : index
    %c0_104 = arith.constant 0 : index
    %131 = tpu.strided_load %arg25[%c1_103, %c0_104] {strides = array<i32: 2, 1>} : memref<64x112xf32, #tpu.memory_space<vmem>>, vector<14x112xf32>
    %132 = arith.maximumf %130, %131 : vector<14x112xf32>
    %c1_105 = arith.constant 1 : index
    %c0_106 = arith.constant 0 : index
    %133 = vector.load %arg26[%c1_105, %c0_106] : memref<31x112xf32, #tpu.memory_space<vmem>>, vector<14x112xf32>
    tpu.vector_store %arg26[%c1_105, %c0_106], %132 {strides = array<i32>} : memref<31x112xf32, #tpu.memory_space<vmem>>, vector<14x112xf32>,
    %c32_107 = arith.constant 32 : index
    %c0_108 = arith.constant 0 : index
    %134 = tpu.strided_load %arg25[%c32_107, %c0_108] {strides = array<i32: 2, 1>} : memref<64x112xf32, #tpu.memory_space<vmem>>, vector<14x112xf32>
    %c33 = arith.constant 33 : index
    %c0_109 = arith.constant 0 : index
    %135 = tpu.strided_load %arg25[%c33, %c0_109] {strides = array<i32: 2, 1>} : memref<64x112xf32, #tpu.memory_space<vmem>>, vector<14x112xf32>
    %136 = arith.maximumf %134, %135 : vector<14x112xf32>
    %c16 = arith.constant 16 : index
    %c0_110 = arith.constant 0 : index
    %137 = vector.load %arg26[%c16, %c0_110] : memref<31x112xf32, #tpu.memory_space<vmem>>, vector<14x112xf32>
    tpu.vector_store %arg26[%c16, %c0_110], %136 {strides = array<i32>} : memref<31x112xf32, #tpu.memory_space<vmem>>, vector<14x112xf32>,
    %c0_111 = arith.constant 0 : index
    %c0_112 = arith.constant 0 : index
    %138 = vector.load %arg26[%c0_111, %c0_112] : memref<31x112xf32, #tpu.memory_space<vmem>>, vector<29x112xf32>
    %c0_113 = arith.constant 0 : index
    %c0_114 = arith.constant 0 : index
    %c0_115 = arith.constant 0 : index
    %139 = vector.load %arg6[%c0_113, %c0_114, %c0_115] : memref<3x112x112xf32, #tpu.memory_space<vmem>>, vector<1x112x112xf32>
    %140 = vector.shape_cast %139 : vector<1x112x112xf32> to vector<112x112xf32>
    %cst_116 = arith.constant dense<0.000000e+00> : vector<29x112xf32>
    %141 = tpu.matmul %138, %140, %cst_116 {dimension_numbers = #tpu.dot_dimension_numbers<[1], [0], [0], [1], [0, 0, 1, 1], [], []>} : vector<29x112xf32>, vector<112x112xf32>, vector<29x112xf32> -> vector<29x112xf32>
    %c1_117 = arith.constant 1 : index
    %c0_118 = arith.constant 0 : index
    %142 = vector.load %arg26[%c1_117, %c0_118] : memref<31x112xf32, #tpu.memory_space<vmem>>, vector<29x112xf32>
    %c1_119 = arith.constant 1 : index
    %c0_120 = arith.constant 0 : index
    %c0_121 = arith.constant 0 : index
    %143 = vector.load %arg6[%c1_119, %c0_120, %c0_121] : memref<3x112x112xf32, #tpu.memory_space<vmem>>, vector<1x112x112xf32>
    %144 = vector.shape_cast %143 : vector<1x112x112xf32> to vector<112x112xf32>
    %cst_122 = arith.constant dense<0.000000e+00> : vector<29x112xf32>
    %145 = tpu.matmul %142, %144, %cst_122 {dimension_numbers = #tpu.dot_dimension_numbers<[1], [0], [0], [1], [0, 0, 1, 1], [], []>} : vector<29x112xf32>, vector<112x112xf32>, vector<29x112xf32> -> vector<29x112xf32>
    %146 = arith.addf %141, %145 : vector<29x112xf32>
    %c2_123 = arith.constant 2 : index
    %c0_124 = arith.constant 0 : index
    %147 = vector.load %arg26[%c2_123, %c0_124] : memref<31x112xf32, #tpu.memory_space<vmem>>, vector<29x112xf32>
    %c2_125 = arith.constant 2 : index
    %c0_126 = arith.constant 0 : index
    %c0_127 = arith.constant 0 : index
    %148 = vector.load %arg6[%c2_125, %c0_126, %c0_127] : memref<3x112x112xf32, #tpu.memory_space<vmem>>, vector<1x112x112xf32>
    %149 = vector.shape_cast %148 : vector<1x112x112xf32> to vector<112x112xf32>
    %cst_128 = arith.constant dense<0.000000e+00> : vector<29x112xf32>
    %150 = tpu.matmul %147, %149, %cst_128 {dimension_numbers = #tpu.dot_dimension_numbers<[1], [0], [0], [1], [0, 0, 1, 1], [], []>} : vector<29x112xf32>, vector<112x112xf32>, vector<29x112xf32> -> vector<29x112xf32>
    %151 = arith.addf %146, %150 : vector<29x112xf32>
    %152 = vector.extract_strided_slice %151 {offsets = [0, 0], sizes = [14, 112], strides = [1, 1]} : vector<29x112xf32> to vector<14x112xf32>
    %cst_129 = arith.constant dense<0.000000e+00> : vector<112xf32>
    %153 = vector.multi_reduction <add>, %152, %cst_129 [0] : vector<14x112xf32> to vector<112xf32>
    %154 = vector.shape_cast %153 : vector<112xf32> to vector<1x112xf32>
    %155 = arith.mulf %152, %152 : vector<14x112xf32>
    %cst_130 = arith.constant dense<0.000000e+00> : vector<112xf32>
    %156 = vector.multi_reduction <add>, %155, %cst_130 [0] : vector<14x112xf32> to vector<112xf32>
    %157 = vector.shape_cast %156 : vector<112xf32> to vector<1x112xf32>
    %158 = vector.extract_strided_slice %151 {offsets = [15, 0], sizes = [14, 112], strides = [1, 1]} : vector<29x112xf32> to vector<14x112xf32>
    %cst_131 = arith.constant dense<0.000000e+00> : vector<112xf32>
    %159 = vector.multi_reduction <add>, %158, %cst_131 [0] : vector<14x112xf32> to vector<112xf32>
    %160 = vector.shape_cast %159 : vector<112xf32> to vector<1x112xf32>
    %161 = arith.mulf %158, %158 : vector<14x112xf32>
    %cst_132 = arith.constant dense<0.000000e+00> : vector<112xf32>
    %162 = vector.multi_reduction <add>, %161, %cst_132 [0] : vector<14x112xf32> to vector<112xf32>
    %163 = vector.shape_cast %162 : vector<112xf32> to vector<1x112xf32>
    %164 = arith.addf %154, %160 : vector<1x112xf32>
    %165 = arith.addf %157, %163 : vector<1x112xf32>
    %166 = tpu.concatenate %164, %165 in 0 : vector<1x112xf32>, vector<1x112xf32> -> vector<2x112xf32>
    %c0_133 = arith.constant 0 : index
    %c0_134 = arith.constant 0 : index
    %167 = vector.load %arg15[%c0_133, %c0_134] : memref<112x8xf32, #tpu.memory_space<vmem>>, vector<112x8xf32>
    %cst_135 = arith.constant dense<0.000000e+00> : vector<2x8xf32>
    %168 = tpu.matmul %166, %167, %cst_135 {dimension_numbers = #tpu.dot_dimension_numbers<[1], [0], [0], [1], [0, 0, 1, 1], [], []>} : vector<2x112xf32>, vector<112x8xf32>, vector<2x8xf32> -> vector<2x8xf32>
    %169 = vector.extract_strided_slice %168 {offsets = [0, 0], sizes = [1, 8], strides = [1, 1]} : vector<2x8xf32> to vector<1x8xf32>
    %cst_136 = arith.constant 0.00255102036 : f32
    %170 = vector.broadcast %cst_136 : f32 to vector<1x8xf32>
    %171 = arith.mulf %169, %170 : vector<1x8xf32>
    %172 = vector.extract_strided_slice %168 {offsets = [1, 0], sizes = [1, 8], strides = [1, 1]} : vector<2x8xf32> to vector<1x8xf32>
    %cst_137 = arith.constant 0.00255102036 : f32
    %173 = vector.broadcast %cst_137 : f32 to vector<1x8xf32>
    %174 = arith.mulf %172, %173 : vector<1x8xf32>
    %175 = arith.mulf %171, %171 : vector<1x8xf32>
    %176 = arith.subf %174, %175 : vector<1x8xf32>
    %cst_138 = arith.constant 0.000000e+00 : f32
    %177 = vector.broadcast %cst_138 : f32 to vector<1x8xf32>
    %178 = arith.maximumf %176, %177 : vector<1x8xf32>
    %c0_139 = arith.constant 0 : index
    %c0_140 = arith.constant 0 : index
    %179 = vector.load %arg7[%c0_139, %c0_140] : memref<1x8xf32, #tpu.memory_space<vmem>>, vector<1x8xf32>
    %cst_141 = arith.constant 9.99999974E-6 : f32
    %180 = vector.broadcast %cst_141 : f32 to vector<1x8xf32>
    %181 = arith.addf %178, %180 : vector<1x8xf32>
    %182 = math.rsqrt %181 : vector<1x8xf32>
    %183 = arith.mulf %179, %182 : vector<1x8xf32>
    %c0_142 = arith.constant 0 : index
    %c0_143 = arith.constant 0 : index
    %184 = vector.load %arg8[%c0_142, %c0_143] : memref<1x8xf32, #tpu.memory_space<vmem>>, vector<1x8xf32>
    %185 = arith.mulf %171, %183 : vector<1x8xf32>
    %186 = arith.subf %184, %185 : vector<1x8xf32>
    %187 = tpu.concatenate %183, %186 in 0 : vector<1x8xf32>, vector<1x8xf32> -> vector<2x8xf32>
    %c0_144 = arith.constant 0 : index
    %c0_145 = arith.constant 0 : index
    %188 = vector.load %arg16[%c0_144, %c0_145] : memref<8x112xf32, #tpu.memory_space<vmem>>, vector<8x112xf32>
    %cst_146 = arith.constant dense<0.000000e+00> : vector<2x112xf32>
    %189 = tpu.matmul %187, %188, %cst_146 {dimension_numbers = #tpu.dot_dimension_numbers<[1], [0], [0], [1], [0, 0, 1, 1], [], []>} : vector<2x8xf32>, vector<8x112xf32>, vector<2x112xf32> -> vector<2x112xf32>
    %190 = vector.extract_strided_slice %189 {offsets = [0, 0], sizes = [1, 112], strides = [1, 1]} : vector<2x112xf32> to vector<1x112xf32>
    %191 = vector.broadcast %190 : vector<1x112xf32> to vector<29x112xf32>
    %192 = arith.mulf %151, %191 : vector<29x112xf32>
    %193 = vector.extract_strided_slice %189 {offsets = [1, 0], sizes = [1, 112], strides = [1, 1]} : vector<2x112xf32> to vector<1x112xf32>
    %194 = vector.broadcast %193 : vector<1x112xf32> to vector<29x112xf32>
    %195 = arith.addf %192, %194 : vector<29x112xf32>
    %cst_147 = arith.constant 0.000000e+00 : f32
    %196 = vector.broadcast %cst_147 : f32 to vector<29x112xf32>
    %197 = arith.maximumf %195, %196 : vector<29x112xf32>
    %cst_148 = arith.constant 0.000000e+00 : f32
    %198 = vector.broadcast %cst_148 : f32 to vector<1x112xf32>
    %c0_149 = arith.constant 0 : index
    %c0_150 = arith.constant 0 : index
    %199 = vector.load %arg27[%c0_149, %c0_150] : memref<31x112xf32, #tpu.memory_space<vmem>>, vector<1x112xf32>
    tpu.vector_store %arg27[%c0_149, %c0_150], %198 {strides = array<i32>} : memref<31x112xf32, #tpu.memory_space<vmem>>, vector<1x112xf32>,
    %cst_151 = arith.constant 0.000000e+00 : f32
    %200 = vector.broadcast %cst_151 : f32 to vector<1x112xf32>
    %c15_152 = arith.constant 15 : index
    %c0_153 = arith.constant 0 : index
    %201 = vector.load %arg27[%c15_152, %c0_153] : memref<31x112xf32, #tpu.memory_space<vmem>>, vector<1x112xf32>
    tpu.vector_store %arg27[%c15_152, %c0_153], %200 {strides = array<i32>} : memref<31x112xf32, #tpu.memory_space<vmem>>, vector<1x112xf32>,
    %cst_154 = arith.constant 0.000000e+00 : f32
    %202 = vector.broadcast %cst_154 : f32 to vector<1x112xf32>
    %c30_155 = arith.constant 30 : index
    %c0_156 = arith.constant 0 : index
    %203 = vector.load %arg27[%c30_155, %c0_156] : memref<31x112xf32, #tpu.memory_space<vmem>>, vector<1x112xf32>
    tpu.vector_store %arg27[%c30_155, %c0_156], %202 {strides = array<i32>} : memref<31x112xf32, #tpu.memory_space<vmem>>, vector<1x112xf32>,
    %204 = vector.extract_strided_slice %197 {offsets = [0, 0], sizes = [14, 112], strides = [1, 1]} : vector<29x112xf32> to vector<14x112xf32>
    %c1_157 = arith.constant 1 : index
    %c0_158 = arith.constant 0 : index
    %205 = vector.load %arg27[%c1_157, %c0_158] : memref<31x112xf32, #tpu.memory_space<vmem>>, vector<14x112xf32>
    tpu.vector_store %arg27[%c1_157, %c0_158], %204 {strides = array<i32>} : memref<31x112xf32, #tpu.memory_space<vmem>>, vector<14x112xf32>,
    %206 = vector.extract_strided_slice %197 {offsets = [15, 0], sizes = [14, 112], strides = [1, 1]} : vector<29x112xf32> to vector<14x112xf32>
    %c16_159 = arith.constant 16 : index
    %c0_160 = arith.constant 0 : index
    %207 = vector.load %arg27[%c16_159, %c0_160] : memref<31x112xf32, #tpu.memory_space<vmem>>, vector<14x112xf32>
    tpu.vector_store %arg27[%c16_159, %c0_160], %206 {strides = array<i32>} : memref<31x112xf32, #tpu.memory_space<vmem>>, vector<14x112xf32>,
    %c0_161 = arith.constant 0 : index
    %c0_162 = arith.constant 0 : index
    %208 = tpu.strided_load %arg27[%c0_161, %c0_162] {strides = array<i32: 2, 1>} : memref<31x112xf32, #tpu.memory_space<vmem>>, vector<7x112xf32>
    %c15_163 = arith.constant 15 : index
    %c0_164 = arith.constant 0 : index
    %209 = tpu.strided_load %arg27[%c15_163, %c0_164] {strides = array<i32: 2, 1>} : memref<31x112xf32, #tpu.memory_space<vmem>>, vector<7x112xf32>
    %210 = tpu.concatenate %208, %209 in 0 : vector<7x112xf32>, vector<7x112xf32> -> vector<14x112xf32>
    %c0_165 = arith.constant 0 : index
    %c0_166 = arith.constant 0 : index
    %c0_167 = arith.constant 0 : index
    %211 = vector.load %arg9[%c0_165, %c0_166, %c0_167] : memref<3x112x112xf32, #tpu.memory_space<vmem>>, vector<1x112x112xf32>
    %212 = vector.shape_cast %211 : vector<1x112x112xf32> to vector<112x112xf32>
    %cst_168 = arith.constant dense<0.000000e+00> : vector<14x112xf32>
    %213 = tpu.matmul %210, %212, %cst_168 {dimension_numbers = #tpu.dot_dimension_numbers<[1], [0], [0], [1], [0, 0, 1, 1], [], []>} : vector<14x112xf32>, vector<112x112xf32>, vector<14x112xf32> -> vector<14x112xf32>
    %c1_169 = arith.constant 1 : index
    %c0_170 = arith.constant 0 : index
    %214 = tpu.strided_load %arg27[%c1_169, %c0_170] {strides = array<i32: 2, 1>} : memref<31x112xf32, #tpu.memory_space<vmem>>, vector<7x112xf32>
    %c16_171 = arith.constant 16 : index
    %c0_172 = arith.constant 0 : index
    %215 = tpu.strided_load %arg27[%c16_171, %c0_172] {strides = array<i32: 2, 1>} : memref<31x112xf32, #tpu.memory_space<vmem>>, vector<7x112xf32>
    %216 = tpu.concatenate %214, %215 in 0 : vector<7x112xf32>, vector<7x112xf32> -> vector<14x112xf32>
    %c1_173 = arith.constant 1 : index
    %c0_174 = arith.constant 0 : index
    %c0_175 = arith.constant 0 : index
    %217 = vector.load %arg9[%c1_173, %c0_174, %c0_175] : memref<3x112x112xf32, #tpu.memory_space<vmem>>, vector<1x112x112xf32>
    %218 = vector.shape_cast %217 : vector<1x112x112xf32> to vector<112x112xf32>
    %cst_176 = arith.constant dense<0.000000e+00> : vector<14x112xf32>
    %219 = tpu.matmul %216, %218, %cst_176 {dimension_numbers = #tpu.dot_dimension_numbers<[1], [0], [0], [1], [0, 0, 1, 1], [], []>} : vector<14x112xf32>, vector<112x112xf32>, vector<14x112xf32> -> vector<14x112xf32>
    %220 = arith.addf %213, %219 : vector<14x112xf32>
    %c2_177 = arith.constant 2 : index
    %c0_178 = arith.constant 0 : index
    %221 = tpu.strided_load %arg27[%c2_177, %c0_178] {strides = array<i32: 2, 1>} : memref<31x112xf32, #tpu.memory_space<vmem>>, vector<7x112xf32>
    %c17 = arith.constant 17 : index
    %c0_179 = arith.constant 0 : index
    %222 = tpu.strided_load %arg27[%c17, %c0_179] {strides = array<i32: 2, 1>} : memref<31x112xf32, #tpu.memory_space<vmem>>, vector<7x112xf32>
    %223 = tpu.concatenate %221, %222 in 0 : vector<7x112xf32>, vector<7x112xf32> -> vector<14x112xf32>
    %c2_180 = arith.constant 2 : index
    %c0_181 = arith.constant 0 : index
    %c0_182 = arith.constant 0 : index
    %224 = vector.load %arg9[%c2_180, %c0_181, %c0_182] : memref<3x112x112xf32, #tpu.memory_space<vmem>>, vector<1x112x112xf32>
    %225 = vector.shape_cast %224 : vector<1x112x112xf32> to vector<112x112xf32>
    %cst_183 = arith.constant dense<0.000000e+00> : vector<14x112xf32>
    %226 = tpu.matmul %223, %225, %cst_183 {dimension_numbers = #tpu.dot_dimension_numbers<[1], [0], [0], [1], [0, 0, 1, 1], [], []>} : vector<14x112xf32>, vector<112x112xf32>, vector<14x112xf32> -> vector<14x112xf32>
    %227 = arith.addf %220, %226 : vector<14x112xf32>
    %cst_184 = arith.constant dense<0.000000e+00> : vector<112xf32>
    %228 = vector.multi_reduction <add>, %227, %cst_184 [0] : vector<14x112xf32> to vector<112xf32>
    %229 = vector.shape_cast %228 : vector<112xf32> to vector<1x112xf32>
    %230 = arith.mulf %227, %227 : vector<14x112xf32>
    %cst_185 = arith.constant dense<0.000000e+00> : vector<112xf32>
    %231 = vector.multi_reduction <add>, %230, %cst_185 [0] : vector<14x112xf32> to vector<112xf32>
    %232 = vector.shape_cast %231 : vector<112xf32> to vector<1x112xf32>
    %233 = tpu.concatenate %229, %232 in 0 : vector<1x112xf32>, vector<1x112xf32> -> vector<2x112xf32>
    %c0_186 = arith.constant 0 : index
    %c0_187 = arith.constant 0 : index
    %234 = vector.load %arg17[%c0_186, %c0_187] : memref<112x16xf32, #tpu.memory_space<vmem>>, vector<112x16xf32>
    %cst_188 = arith.constant dense<0.000000e+00> : vector<2x16xf32>
    %235 = tpu.matmul %233, %234, %cst_188 {dimension_numbers = #tpu.dot_dimension_numbers<[1], [0], [0], [1], [0, 0, 1, 1], [], []>} : vector<2x112xf32>, vector<112x16xf32>, vector<2x16xf32> -> vector<2x16xf32>
    %236 = vector.extract_strided_slice %235 {offsets = [0, 0], sizes = [1, 16], strides = [1, 1]} : vector<2x16xf32> to vector<1x16xf32>
    %cst_189 = arith.constant 0.0102040814 : f32
    %237 = vector.broadcast %cst_189 : f32 to vector<1x16xf32>
    %238 = arith.mulf %236, %237 : vector<1x16xf32>
    %239 = vector.extract_strided_slice %235 {offsets = [1, 0], sizes = [1, 16], strides = [1, 1]} : vector<2x16xf32> to vector<1x16xf32>
    %cst_190 = arith.constant 0.0102040814 : f32
    %240 = vector.broadcast %cst_190 : f32 to vector<1x16xf32>
    %241 = arith.mulf %239, %240 : vector<1x16xf32>
    %242 = arith.mulf %238, %238 : vector<1x16xf32>
    %243 = arith.subf %241, %242 : vector<1x16xf32>
    %cst_191 = arith.constant 0.000000e+00 : f32
    %244 = vector.broadcast %cst_191 : f32 to vector<1x16xf32>
    %245 = arith.maximumf %243, %244 : vector<1x16xf32>
    %c0_192 = arith.constant 0 : index
    %c0_193 = arith.constant 0 : index
    %246 = vector.load %arg10[%c0_192, %c0_193] : memref<1x16xf32, #tpu.memory_space<vmem>>, vector<1x16xf32>
    %cst_194 = arith.constant 9.99999974E-6 : f32
    %247 = vector.broadcast %cst_194 : f32 to vector<1x16xf32>
    %248 = arith.addf %245, %247 : vector<1x16xf32>
    %249 = math.rsqrt %248 : vector<1x16xf32>
    %250 = arith.mulf %246, %249 : vector<1x16xf32>
    %c0_195 = arith.constant 0 : index
    %c0_196 = arith.constant 0 : index
    %251 = vector.load %arg11[%c0_195, %c0_196] : memref<1x16xf32, #tpu.memory_space<vmem>>, vector<1x16xf32>
    %252 = arith.mulf %238, %250 : vector<1x16xf32>
    %253 = arith.subf %251, %252 : vector<1x16xf32>
    %254 = tpu.concatenate %250, %253 in 0 : vector<1x16xf32>, vector<1x16xf32> -> vector<2x16xf32>
    %c0_197 = arith.constant 0 : index
    %c0_198 = arith.constant 0 : index
    %255 = vector.load %arg18[%c0_197, %c0_198] : memref<16x112xf32, #tpu.memory_space<vmem>>, vector<16x112xf32>
    %cst_199 = arith.constant dense<0.000000e+00> : vector<2x112xf32>
    %256 = tpu.matmul %254, %255, %cst_199 {dimension_numbers = #tpu.dot_dimension_numbers<[1], [0], [0], [1], [0, 0, 1, 1], [], []>} : vector<2x16xf32>, vector<16x112xf32>, vector<2x112xf32> -> vector<2x112xf32>
    %257 = vector.extract_strided_slice %256 {offsets = [0, 0], sizes = [1, 112], strides = [1, 1]} : vector<2x112xf32> to vector<1x112xf32>
    %258 = vector.broadcast %257 : vector<1x112xf32> to vector<14x112xf32>
    %259 = arith.mulf %227, %258 : vector<14x112xf32>
    %260 = vector.extract_strided_slice %256 {offsets = [1, 0], sizes = [1, 112], strides = [1, 1]} : vector<2x112xf32> to vector<1x112xf32>
    %261 = vector.broadcast %260 : vector<1x112xf32> to vector<14x112xf32>
    %262 = arith.addf %259, %261 : vector<14x112xf32>
    %cst_200 = arith.constant 0.000000e+00 : f32
    %263 = vector.broadcast %cst_200 : f32 to vector<14x112xf32>
    %264 = arith.maximumf %262, %263 : vector<14x112xf32>
    %cst_201 = arith.constant 0.000000e+00 : f32
    %265 = vector.broadcast %cst_201 : f32 to vector<1x112xf32>
    %c0_202 = arith.constant 0 : index
    %c0_203 = arith.constant 0 : index
    %266 = vector.load %arg28[%c0_202, %c0_203] : memref<17x112xf32, #tpu.memory_space<vmem>>, vector<1x112xf32>
    tpu.vector_store %arg28[%c0_202, %c0_203], %265 {strides = array<i32>} : memref<17x112xf32, #tpu.memory_space<vmem>>, vector<1x112xf32>,
    %cst_204 = arith.constant 0.000000e+00 : f32
    %267 = vector.broadcast %cst_204 : f32 to vector<1x112xf32>
    %c8 = arith.constant 8 : index
    %c0_205 = arith.constant 0 : index
    %268 = vector.load %arg28[%c8, %c0_205] : memref<17x112xf32, #tpu.memory_space<vmem>>, vector<1x112xf32>
    tpu.vector_store %arg28[%c8, %c0_205], %267 {strides = array<i32>} : memref<17x112xf32, #tpu.memory_space<vmem>>, vector<1x112xf32>,
    %cst_206 = arith.constant 0.000000e+00 : f32
    %269 = vector.broadcast %cst_206 : f32 to vector<1x112xf32>
    %c16_207 = arith.constant 16 : index
    %c0_208 = arith.constant 0 : index
    %270 = vector.load %arg28[%c16_207, %c0_208] : memref<17x112xf32, #tpu.memory_space<vmem>>, vector<1x112xf32>
    tpu.vector_store %arg28[%c16_207, %c0_208], %269 {strides = array<i32>} : memref<17x112xf32, #tpu.memory_space<vmem>>, vector<1x112xf32>,
    %271 = vector.extract_strided_slice %264 {offsets = [0, 0], sizes = [7, 112], strides = [1, 1]} : vector<14x112xf32> to vector<7x112xf32>
    %c1_209 = arith.constant 1 : index
    %c0_210 = arith.constant 0 : index
    %272 = vector.load %arg28[%c1_209, %c0_210] : memref<17x112xf32, #tpu.memory_space<vmem>>, vector<7x112xf32>
    tpu.vector_store %arg28[%c1_209, %c0_210], %271 {strides = array<i32>} : memref<17x112xf32, #tpu.memory_space<vmem>>, vector<7x112xf32>,
    %273 = vector.extract_strided_slice %264 {offsets = [7, 0], sizes = [7, 112], strides = [1, 1]} : vector<14x112xf32> to vector<7x112xf32>
    %c9 = arith.constant 9 : index
    %c0_211 = arith.constant 0 : index
    %274 = vector.load %arg28[%c9, %c0_211] : memref<17x112xf32, #tpu.memory_space<vmem>>, vector<7x112xf32>
    tpu.vector_store %arg28[%c9, %c0_211], %273 {strides = array<i32>} : memref<17x112xf32, #tpu.memory_space<vmem>>, vector<7x112xf32>,
    %c0_212 = arith.constant 0 : index
    %c0_213 = arith.constant 0 : index
    %275 = vector.load %arg28[%c0_212, %c0_213] : memref<17x112xf32, #tpu.memory_space<vmem>>, vector<15x112xf32>
    %c0_214 = arith.constant 0 : index
    %c0_215 = arith.constant 0 : index
    %c0_216 = arith.constant 0 : index
    %276 = vector.load %arg12[%c0_214, %c0_215, %c0_216] : memref<3x112x112xf32, #tpu.memory_space<vmem>>, vector<1x112x112xf32>
    %277 = vector.shape_cast %276 : vector<1x112x112xf32> to vector<112x112xf32>
    %cst_217 = arith.constant dense<0.000000e+00> : vector<15x112xf32>
    %278 = tpu.matmul %275, %277, %cst_217 {dimension_numbers = #tpu.dot_dimension_numbers<[1], [0], [0], [1], [0, 0, 1, 1], [], []>} : vector<15x112xf32>, vector<112x112xf32>, vector<15x112xf32> -> vector<15x112xf32>
    %c1_218 = arith.constant 1 : index
    %c0_219 = arith.constant 0 : index
    %279 = vector.load %arg28[%c1_218, %c0_219] : memref<17x112xf32, #tpu.memory_space<vmem>>, vector<15x112xf32>
    %c1_220 = arith.constant 1 : index
    %c0_221 = arith.constant 0 : index
    %c0_222 = arith.constant 0 : index
    %280 = vector.load %arg12[%c1_220, %c0_221, %c0_222] : memref<3x112x112xf32, #tpu.memory_space<vmem>>, vector<1x112x112xf32>
    %281 = vector.shape_cast %280 : vector<1x112x112xf32> to vector<112x112xf32>
    %cst_223 = arith.constant dense<0.000000e+00> : vector<15x112xf32>
    %282 = tpu.matmul %279, %281, %cst_223 {dimension_numbers = #tpu.dot_dimension_numbers<[1], [0], [0], [1], [0, 0, 1, 1], [], []>} : vector<15x112xf32>, vector<112x112xf32>, vector<15x112xf32> -> vector<15x112xf32>
    %283 = arith.addf %278, %282 : vector<15x112xf32>
    %c2_224 = arith.constant 2 : index
    %c0_225 = arith.constant 0 : index
    %284 = vector.load %arg28[%c2_224, %c0_225] : memref<17x112xf32, #tpu.memory_space<vmem>>, vector<15x112xf32>
    %c2_226 = arith.constant 2 : index
    %c0_227 = arith.constant 0 : index
    %c0_228 = arith.constant 0 : index
    %285 = vector.load %arg12[%c2_226, %c0_227, %c0_228] : memref<3x112x112xf32, #tpu.memory_space<vmem>>, vector<1x112x112xf32>
    %286 = vector.shape_cast %285 : vector<1x112x112xf32> to vector<112x112xf32>
    %cst_229 = arith.constant dense<0.000000e+00> : vector<15x112xf32>
    %287 = tpu.matmul %284, %286, %cst_229 {dimension_numbers = #tpu.dot_dimension_numbers<[1], [0], [0], [1], [0, 0, 1, 1], [], []>} : vector<15x112xf32>, vector<112x112xf32>, vector<15x112xf32> -> vector<15x112xf32>
    %288 = arith.addf %283, %287 : vector<15x112xf32>
    %289 = vector.extract_strided_slice %288 {offsets = [0, 0], sizes = [7, 112], strides = [1, 1]} : vector<15x112xf32> to vector<7x112xf32>
    %cst_230 = arith.constant dense<0.000000e+00> : vector<112xf32>
    %290 = vector.multi_reduction <add>, %289, %cst_230 [0] : vector<7x112xf32> to vector<112xf32>
    %291 = vector.shape_cast %290 : vector<112xf32> to vector<1x112xf32>
    %292 = arith.mulf %289, %289 : vector<7x112xf32>
    %cst_231 = arith.constant dense<0.000000e+00> : vector<112xf32>
    %293 = vector.multi_reduction <add>, %292, %cst_231 [0] : vector<7x112xf32> to vector<112xf32>
    %294 = vector.shape_cast %293 : vector<112xf32> to vector<1x112xf32>
    %295 = vector.extract_strided_slice %288 {offsets = [8, 0], sizes = [7, 112], strides = [1, 1]} : vector<15x112xf32> to vector<7x112xf32>
    %cst_232 = arith.constant dense<0.000000e+00> : vector<112xf32>
    %296 = vector.multi_reduction <add>, %295, %cst_232 [0] : vector<7x112xf32> to vector<112xf32>
    %297 = vector.shape_cast %296 : vector<112xf32> to vector<1x112xf32>
    %298 = arith.mulf %295, %295 : vector<7x112xf32>
    %cst_233 = arith.constant dense<0.000000e+00> : vector<112xf32>
    %299 = vector.multi_reduction <add>, %298, %cst_233 [0] : vector<7x112xf32> to vector<112xf32>
    %300 = vector.shape_cast %299 : vector<112xf32> to vector<1x112xf32>
    %301 = arith.addf %291, %297 : vector<1x112xf32>
    %302 = arith.addf %294, %300 : vector<1x112xf32>
    %303 = tpu.concatenate %301, %302 in 0 : vector<1x112xf32>, vector<1x112xf32> -> vector<2x112xf32>
    %c0_234 = arith.constant 0 : index
    %c0_235 = arith.constant 0 : index
    %304 = vector.load %arg17[%c0_234, %c0_235] : memref<112x16xf32, #tpu.memory_space<vmem>>, vector<112x16xf32>
    %cst_236 = arith.constant dense<0.000000e+00> : vector<2x16xf32>
    %305 = tpu.matmul %303, %304, %cst_236 {dimension_numbers = #tpu.dot_dimension_numbers<[1], [0], [0], [1], [0, 0, 1, 1], [], []>} : vector<2x112xf32>, vector<112x16xf32>, vector<2x16xf32> -> vector<2x16xf32>
    %306 = vector.extract_strided_slice %305 {offsets = [0, 0], sizes = [1, 16], strides = [1, 1]} : vector<2x16xf32> to vector<1x16xf32>
    %cst_237 = arith.constant 0.0102040814 : f32
    %307 = vector.broadcast %cst_237 : f32 to vector<1x16xf32>
    %308 = arith.mulf %306, %307 : vector<1x16xf32>
    %309 = vector.extract_strided_slice %305 {offsets = [1, 0], sizes = [1, 16], strides = [1, 1]} : vector<2x16xf32> to vector<1x16xf32>
    %cst_238 = arith.constant 0.0102040814 : f32
    %310 = vector.broadcast %cst_238 : f32 to vector<1x16xf32>
    %311 = arith.mulf %309, %310 : vector<1x16xf32>
    %312 = arith.mulf %308, %308 : vector<1x16xf32>
    %313 = arith.subf %311, %312 : vector<1x16xf32>
    %cst_239 = arith.constant 0.000000e+00 : f32
    %314 = vector.broadcast %cst_239 : f32 to vector<1x16xf32>
    %315 = arith.maximumf %313, %314 : vector<1x16xf32>
    %c0_240 = arith.constant 0 : index
    %c0_241 = arith.constant 0 : index
    %316 = vector.load %arg13[%c0_240, %c0_241] : memref<1x16xf32, #tpu.memory_space<vmem>>, vector<1x16xf32>
    %cst_242 = arith.constant 9.99999974E-6 : f32
    %317 = vector.broadcast %cst_242 : f32 to vector<1x16xf32>
    %318 = arith.addf %315, %317 : vector<1x16xf32>
    %319 = math.rsqrt %318 : vector<1x16xf32>
    %320 = arith.mulf %316, %319 : vector<1x16xf32>
    %c0_243 = arith.constant 0 : index
    %c0_244 = arith.constant 0 : index
    %321 = vector.load %arg14[%c0_243, %c0_244] : memref<1x16xf32, #tpu.memory_space<vmem>>, vector<1x16xf32>
    %322 = arith.mulf %308, %320 : vector<1x16xf32>
    %323 = arith.subf %321, %322 : vector<1x16xf32>
    %324 = tpu.concatenate %320, %323 in 0 : vector<1x16xf32>, vector<1x16xf32> -> vector<2x16xf32>
    %c0_245 = arith.constant 0 : index
    %c0_246 = arith.constant 0 : index
    %325 = vector.load %arg18[%c0_245, %c0_246] : memref<16x112xf32, #tpu.memory_space<vmem>>, vector<16x112xf32>
    %cst_247 = arith.constant dense<0.000000e+00> : vector<2x112xf32>
    %326 = tpu.matmul %324, %325, %cst_247 {dimension_numbers = #tpu.dot_dimension_numbers<[1], [0], [0], [1], [0, 0, 1, 1], [], []>} : vector<2x16xf32>, vector<16x112xf32>, vector<2x112xf32> -> vector<2x112xf32>
    %327 = vector.extract_strided_slice %326 {offsets = [0, 0], sizes = [1, 112], strides = [1, 1]} : vector<2x112xf32> to vector<1x112xf32>
    %328 = vector.broadcast %327 : vector<1x112xf32> to vector<15x112xf32>
    %329 = arith.mulf %288, %328 : vector<15x112xf32>
    %330 = vector.extract_strided_slice %326 {offsets = [1, 0], sizes = [1, 112], strides = [1, 1]} : vector<2x112xf32> to vector<1x112xf32>
    %331 = vector.broadcast %330 : vector<1x112xf32> to vector<15x112xf32>
    %332 = arith.addf %329, %331 : vector<15x112xf32>
    %cst_248 = arith.constant 0.000000e+00 : f32
    %333 = vector.broadcast %cst_248 : f32 to vector<15x112xf32>
    %334 = arith.maximumf %332, %333 : vector<15x112xf32>
    %c0_249 = arith.constant 0 : index
    %c0_250 = arith.constant 0 : index
    %335 = vector.load %arg29[%c0_249, %c0_250] : memref<16x112xf32, #tpu.memory_space<vmem>>, vector<15x112xf32>
    tpu.vector_store %arg29[%c0_249, %c0_250], %334 {strides = array<i32>} : memref<16x112xf32, #tpu.memory_space<vmem>>, vector<15x112xf32>,
    %c0_251 = arith.constant 0 : index
    %c0_252 = arith.constant 0 : index
    %336 = tpu.strided_load %arg29[%c0_251, %c0_252] {strides = array<i32: 8, 1>} : memref<16x112xf32, #tpu.memory_space<vmem>>, vector<2x112xf32>
    %c0_253 = arith.constant 0 : index
    %c0_254 = arith.constant 0 : index
    %337 = vector.load %arg19[%c0_253, %c0_254] : memref<784x32xf32, #tpu.memory_space<vmem>>, vector<112x32xf32>
    %cst_255 = arith.constant dense<0.000000e+00> : vector<2x32xf32>
    %338 = tpu.matmul %336, %337, %cst_255 {dimension_numbers = #tpu.dot_dimension_numbers<[1], [0], [0], [1], [0, 0, 1, 1], [], []>} : vector<2x112xf32>, vector<112x32xf32>, vector<2x32xf32> -> vector<2x32xf32>
    %c1_256 = arith.constant 1 : index
    %c0_257 = arith.constant 0 : index
    %339 = tpu.strided_load %arg29[%c1_256, %c0_257] {strides = array<i32: 8, 1>} : memref<16x112xf32, #tpu.memory_space<vmem>>, vector<2x112xf32>
    %c112 = arith.constant 112 : index
    %c0_258 = arith.constant 0 : index
    %340 = vector.load %arg19[%c112, %c0_258] : memref<784x32xf32, #tpu.memory_space<vmem>>, vector<112x32xf32>
    %cst_259 = arith.constant dense<0.000000e+00> : vector<2x32xf32>
    %341 = tpu.matmul %339, %340, %cst_259 {dimension_numbers = #tpu.dot_dimension_numbers<[1], [0], [0], [1], [0, 0, 1, 1], [], []>} : vector<2x112xf32>, vector<112x32xf32>, vector<2x32xf32> -> vector<2x32xf32>
    %342 = arith.addf %338, %341 : vector<2x32xf32>
    %c2_260 = arith.constant 2 : index
    %c0_261 = arith.constant 0 : index
    %343 = tpu.strided_load %arg29[%c2_260, %c0_261] {strides = array<i32: 8, 1>} : memref<16x112xf32, #tpu.memory_space<vmem>>, vector<2x112xf32>
    %c224 = arith.constant 224 : index
    %c0_262 = arith.constant 0 : index
    %344 = vector.load %arg19[%c224, %c0_262] : memref<784x32xf32, #tpu.memory_space<vmem>>, vector<112x32xf32>
    %cst_263 = arith.constant dense<0.000000e+00> : vector<2x32xf32>
    %345 = tpu.matmul %343, %344, %cst_263 {dimension_numbers = #tpu.dot_dimension_numbers<[1], [0], [0], [1], [0, 0, 1, 1], [], []>} : vector<2x112xf32>, vector<112x32xf32>, vector<2x32xf32> -> vector<2x32xf32>
    %346 = arith.addf %342, %345 : vector<2x32xf32>
    %c3 = arith.constant 3 : index
    %c0_264 = arith.constant 0 : index
    %347 = tpu.strided_load %arg29[%c3, %c0_264] {strides = array<i32: 8, 1>} : memref<16x112xf32, #tpu.memory_space<vmem>>, vector<2x112xf32>
    %c336 = arith.constant 336 : index
    %c0_265 = arith.constant 0 : index
    %348 = vector.load %arg19[%c336, %c0_265] : memref<784x32xf32, #tpu.memory_space<vmem>>, vector<112x32xf32>
    %cst_266 = arith.constant dense<0.000000e+00> : vector<2x32xf32>
    %349 = tpu.matmul %347, %348, %cst_266 {dimension_numbers = #tpu.dot_dimension_numbers<[1], [0], [0], [1], [0, 0, 1, 1], [], []>} : vector<2x112xf32>, vector<112x32xf32>, vector<2x32xf32> -> vector<2x32xf32>
    %350 = arith.addf %346, %349 : vector<2x32xf32>
    %c4 = arith.constant 4 : index
    %c0_267 = arith.constant 0 : index
    %351 = tpu.strided_load %arg29[%c4, %c0_267] {strides = array<i32: 8, 1>} : memref<16x112xf32, #tpu.memory_space<vmem>>, vector<2x112xf32>
    %c448 = arith.constant 448 : index
    %c0_268 = arith.constant 0 : index
    %352 = vector.load %arg19[%c448, %c0_268] : memref<784x32xf32, #tpu.memory_space<vmem>>, vector<112x32xf32>
    %cst_269 = arith.constant dense<0.000000e+00> : vector<2x32xf32>
    %353 = tpu.matmul %351, %352, %cst_269 {dimension_numbers = #tpu.dot_dimension_numbers<[1], [0], [0], [1], [0, 0, 1, 1], [], []>} : vector<2x112xf32>, vector<112x32xf32>, vector<2x32xf32> -> vector<2x32xf32>
    %354 = arith.addf %350, %353 : vector<2x32xf32>
    %c5 = arith.constant 5 : index
    %c0_270 = arith.constant 0 : index
    %355 = tpu.strided_load %arg29[%c5, %c0_270] {strides = array<i32: 8, 1>} : memref<16x112xf32, #tpu.memory_space<vmem>>, vector<2x112xf32>
    %c560 = arith.constant 560 : index
    %c0_271 = arith.constant 0 : index
    %356 = vector.load %arg19[%c560, %c0_271] : memref<784x32xf32, #tpu.memory_space<vmem>>, vector<112x32xf32>
    %cst_272 = arith.constant dense<0.000000e+00> : vector<2x32xf32>
    %357 = tpu.matmul %355, %356, %cst_272 {dimension_numbers = #tpu.dot_dimension_numbers<[1], [0], [0], [1], [0, 0, 1, 1], [], []>} : vector<2x112xf32>, vector<112x32xf32>, vector<2x32xf32> -> vector<2x32xf32>
    %358 = arith.addf %354, %357 : vector<2x32xf32>
    %c6 = arith.constant 6 : index
    %c0_273 = arith.constant 0 : index
    %359 = tpu.strided_load %arg29[%c6, %c0_273] {strides = array<i32: 8, 1>} : memref<16x112xf32, #tpu.memory_space<vmem>>, vector<2x112xf32>
    %c672 = arith.constant 672 : index
    %c0_274 = arith.constant 0 : index
    %360 = vector.load %arg19[%c672, %c0_274] : memref<784x32xf32, #tpu.memory_space<vmem>>, vector<112x32xf32>
    %cst_275 = arith.constant dense<0.000000e+00> : vector<2x32xf32>
    %361 = tpu.matmul %359, %360, %cst_275 {dimension_numbers = #tpu.dot_dimension_numbers<[1], [0], [0], [1], [0, 0, 1, 1], [], []>} : vector<2x112xf32>, vector<112x32xf32>, vector<2x32xf32> -> vector<2x32xf32>
    %362 = arith.addf %358, %361 : vector<2x32xf32>
    %c0_276 = arith.constant 0 : index
    %c0_277 = arith.constant 0 : index
    %363 = vector.load %arg20[%c0_276, %c0_277] : memref<1x32xf32, #tpu.memory_space<vmem>>, vector<1x32xf32>
    %364 = vector.broadcast %363 : vector<1x32xf32> to vector<2x32xf32>
    %365 = arith.addf %362, %364 : vector<2x32xf32>
    %cst_278 = arith.constant 0.000000e+00 : f32
    %366 = vector.broadcast %cst_278 : f32 to vector<2x32xf32>
    %367 = arith.maximumf %365, %366 : vector<2x32xf32>
    %c0_279 = arith.constant 0 : index
    %c0_280 = arith.constant 0 : index
    %368 = vector.load %arg21[%c0_279, %c0_280] : memref<32x16xf32, #tpu.memory_space<vmem>>, vector<32x16xf32>
    %cst_281 = arith.constant dense<0.000000e+00> : vector<2x16xf32>
    %369 = tpu.matmul %367, %368, %cst_281 {dimension_numbers = #tpu.dot_dimension_numbers<[1], [0], [0], [1], [0, 0, 1, 1], [], []>} : vector<2x32xf32>, vector<32x16xf32>, vector<2x16xf32> -> vector<2x16xf32>
    %c0_282 = arith.constant 0 : index
    %c0_283 = arith.constant 0 : index
    %370 = vector.load %arg22[%c0_282, %c0_283] : memref<1x16xf32, #tpu.memory_space<vmem>>, vector<1x16xf32>
    %371 = vector.broadcast %370 : vector<1x16xf32> to vector<2x16xf32>
    %372 = arith.addf %369, %371 : vector<2x16xf32>
    %c0_284 = arith.constant 0 : index
    %c0_285 = arith.constant 0 : index
    %373 = vector.load %arg23[%c0_284, %c0_285] : memref<2x16xf32, #tpu.memory_space<vmem>>, vector<2x16xf32>
    tpu.vector_store %arg23[%c0_284, %c0_285], %372 {strides = array<i32>} : memref<2x16xf32, #tpu.memory_space<vmem>>, vector<2x16xf32>,
    return
  }
  func.func @transform_0(%arg0: i32) -> (i32, i32, i32, i32) {
    %c0_i32 = arith.constant 0 : i32
    %c0_i32_0 = arith.constant 0 : i32
    %c0_i32_1 = arith.constant 0 : i32
    %c0_i32_2 = arith.constant 0 : i32
    %c0_i32_3 = arith.constant 0 : i32
    return %c0_i32, %c0_i32_0, %c0_i32_1, %c0_i32_2 : i32, i32, i32, i32
  }
  func.func @transform_1(%arg0: i32) -> (i32, i32, i32) {
    %c0_i32 = arith.constant 0 : i32
    %c0_i32_0 = arith.constant 0 : i32
    %c0_i32_1 = arith.constant 0 : i32
    %c0_i32_2 = arith.constant 0 : i32
    return %c0_i32, %c0_i32_0, %c0_i32_1 : i32, i32, i32
  }
  func.func @transform_2(%arg0: i32) -> (i32, i32, i32) {
    %c0_i32 = arith.constant 0 : i32
    %c0_i32_0 = arith.constant 0 : i32
    %c0_i32_1 = arith.constant 0 : i32
    %c0_i32_2 = arith.constant 0 : i32
    return %c0_i32, %c0_i32_0, %c0_i32_1 : i32, i32, i32
  }
  func.func @transform_3(%arg0: i32) -> (i32, i32) {
    %c0_i32 = arith.constant 0 : i32
    %c0_i32_0 = arith.constant 0 : i32
    %c0_i32_1 = arith.constant 0 : i32
    return %c0_i32, %c0_i32_0 : i32, i32
  }
  func.func @transform_4(%arg0: i32) -> (i32, i32) {
    %c0_i32 = arith.constant 0 : i32
    %c0_i32_0 = arith.constant 0 : i32
    %c0_i32_1 = arith.constant 0 : i32
    return %c0_i32, %c0_i32_0 : i32, i32
  }
  func.func @transform_5(%arg0: i32) -> (i32, i32, i32) {
    %c0_i32 = arith.constant 0 : i32
    %c0_i32_0 = arith.constant 0 : i32
    %c0_i32_1 = arith.constant 0 : i32
    %c0_i32_2 = arith.constant 0 : i32
    return %c0_i32, %c0_i32_0, %c0_i32_1 : i32, i32, i32
  }
  func.func @transform_6(%arg0: i32) -> (i32, i32) {
    %c0_i32 = arith.constant 0 : i32
    %c0_i32_0 = arith.constant 0 : i32
    %c0_i32_1 = arith.constant 0 : i32
    return %c0_i32, %c0_i32_0 : i32, i32
  }
  func.func @transform_7(%arg0: i32) -> (i32, i32) {
    %c0_i32 = arith.constant 0 : i32
    %c0_i32_0 = arith.constant 0 : i32
    %c0_i32_1 = arith.constant 0 : i32
    return %c0_i32, %c0_i32_0 : i32, i32
  }
  func.func @transform_8(%arg0: i32) -> (i32, i32, i32) {
    %c0_i32 = arith.constant 0 : i32
    %c0_i32_0 = arith.constant 0 : i32
    %c0_i32_1 = arith.constant 0 : i32
    %c0_i32_2 = arith.constant 0 : i32
    return %c0_i32, %c0_i32_0, %c0_i32_1 : i32, i32, i32
  }
  func.func @transform_9(%arg0: i32) -> (i32, i32) {
    %c0_i32 = arith.constant 0 : i32
    %c0_i32_0 = arith.constant 0 : i32
    %c0_i32_1 = arith.constant 0 : i32
    return %c0_i32, %c0_i32_0 : i32, i32
  }
  func.func @transform_10(%arg0: i32) -> (i32, i32) {
    %c0_i32 = arith.constant 0 : i32
    %c0_i32_0 = arith.constant 0 : i32
    %c0_i32_1 = arith.constant 0 : i32
    return %c0_i32, %c0_i32_0 : i32, i32
  }
  func.func @transform_11(%arg0: i32) -> (i32, i32, i32) {
    %c0_i32 = arith.constant 0 : i32
    %c0_i32_0 = arith.constant 0 : i32
    %c0_i32_1 = arith.constant 0 : i32
    %c0_i32_2 = arith.constant 0 : i32
    return %c0_i32, %c0_i32_0, %c0_i32_1 : i32, i32, i32
  }
  func.func @transform_12(%arg0: i32) -> (i32, i32) {
    %c0_i32 = arith.constant 0 : i32
    %c0_i32_0 = arith.constant 0 : i32
    %c0_i32_1 = arith.constant 0 : i32
    return %c0_i32, %c0_i32_0 : i32, i32
  }
  func.func @transform_13(%arg0: i32) -> (i32, i32) {
    %c0_i32 = arith.constant 0 : i32
    %c0_i32_0 = arith.constant 0 : i32
    %c0_i32_1 = arith.constant 0 : i32
    return %c0_i32, %c0_i32_0 : i32, i32
  }
  func.func @transform_14(%arg0: i32) -> (i32, i32) {
    %c0_i32 = arith.constant 0 : i32
    %c0_i32_0 = arith.constant 0 : i32
    %c0_i32_1 = arith.constant 0 : i32
    return %c0_i32, %c0_i32_0 : i32, i32
  }
  func.func @transform_15(%arg0: i32) -> (i32, i32) {
    %c0_i32 = arith.constant 0 : i32
    %c0_i32_0 = arith.constant 0 : i32
    %c0_i32_1 = arith.constant 0 : i32
    return %c0_i32, %c0_i32_0 : i32, i32
  }
  func.func @transform_16(%arg0: i32) -> (i32, i32) {
    %c0_i32 = arith.constant 0 : i32
    %c0_i32_0 = arith.constant 0 : i32
    %c0_i32_1 = arith.constant 0 : i32
    return %c0_i32, %c0_i32_0 : i32, i32
  }
  func.func @transform_17(%arg0: i32) -> (i32, i32) {
    %c0_i32 = arith.constant 0 : i32
    %c0_i32_0 = arith.constant 0 : i32
    %c0_i32_1 = arith.constant 0 : i32
    return %c0_i32, %c0_i32_0 : i32, i32
  }
  func.func @transform_18(%arg0: i32) -> (i32, i32) {
    %c0_i32 = arith.constant 0 : i32
    %c0_i32_0 = arith.constant 0 : i32
    %c0_i32_1 = arith.constant 0 : i32
    return %c0_i32, %c0_i32_0 : i32, i32
  }
  func.func @transform_19(%arg0: i32) -> (i32, i32) {
    %c0_i32 = arith.constant 0 : i32
    %c0_i32_0 = arith.constant 0 : i32
    %c0_i32_1 = arith.constant 0 : i32
    return %c0_i32, %c0_i32_0 : i32, i32
  }
  func.func @transform_20(%arg0: i32) -> (i32, i32) {
    %c0_i32 = arith.constant 0 : i32
    %c0_i32_0 = arith.constant 0 : i32
    %c0_i32_1 = arith.constant 0 : i32
    return %c0_i32, %c0_i32_0 : i32, i32
  }
  func.func @transform_21(%arg0: i32) -> (i32, i32) {
    %c0_i32 = arith.constant 0 : i32
    %c0_i32_0 = arith.constant 0 : i32
    %c0_i32_1 = arith.constant 0 : i32
    return %c0_i32, %c0_i32_0 : i32, i32
  }
  func.func @transform_22(%arg0: i32) -> (i32, i32) {
    %c0_i32 = arith.constant 0 : i32
    %c0_i32_0 = arith.constant 0 : i32
    %c0_i32_1 = arith.constant 0 : i32
    return %c0_i32, %c0_i32_0 : i32, i32
  }
}

</mosaic_0001>

<bundles_post_ra>
// kernel: encoder_forward.1
= control target key start
LH: loop header
LB: loop body
LE: loop exit
PB: predicated region body
PF: predicated region fallthrough
CT: control target
= control target key end

     0   :  { %s8652_s0 = inlined_call_operand.vmem [shape: f32[2,3,28,28], index: 0, kind: input, shape index: {}]   ;;  %s8653_s1 = inlined_call_operand.vmem [shape: f32[3,84,112], index: 1, kind: input, shape index: {}]   ;;  %s8654_s2 = inlined_call_operand.vmem [shape: f32[3,84,112], index: 2, kind: input, shape index: {}]   ;;  %s8655_s3 = inlined_call_operand.hbm [shape: f32[1,8], index: 3, kind: input, shape index: {}]   ;;  %s8656_s4 = inlined_call_operand.hbm [shape: f32[1,8], index: 4, kind: input, shape index: {}]   ;;  %s8657_s5 = inlined_call_operand.vmem [shape: f32[3,112,112], index: 5, kind: input, shape index: {}]   ;;  %s8658_s6 = inlined_call_operand.hbm [shape: f32[1,8], index: 6, kind: input, shape index: {}]   ;;  %s8659_s7 = inlined_call_operand.hbm [shape: f32[1,8], index: 7, kind: input, shape index: {}]   ;;  %s8660_s8 = inlined_call_operand.vmem [shape: f32[3,112,112], index: 8, kind: input, shape index: {}]   ;;  %s8661_s9 = inlined_call_operand.hbm [shape: f32[1,16], index: 9, kind: input, shape index: {}]   ;;  %s8662_s10 = inlined_call_operand.hbm [shape: f32[1,16], index: 10, kind: input, shape index: {}]   ;;  %s8663_s11 = inlined_call_operand.vmem [shape: f32[3,112,112], index: 11, kind: input, shape index: {}]   ;;  %s8664_s12 = inlined_call_operand.hbm [shape: f32[1,16], index: 12, kind: input, shape index: {}]   ;;  %s8665_s13 = inlined_call_operand.hbm [shape: f32[1,16], index: 13, kind: input, shape index: {}]   ;;  %s8666_s14 = inlined_call_operand.vmem [shape: f32[112,8], index: 14, kind: input, shape index: {}]   ;;  %s8667_s15 = inlined_call_operand.hbm [shape: f32[8,112], index: 15, kind: input, shape index: {}]   ;;  %s8668_s16 = inlined_call_operand.vmem [shape: f32[112,16], index: 16, kind: input, shape index: {}]   ;;  %s8669_s17 = inlined_call_operand.hbm [shape: f32[16,112], index: 17, kind: input, shape index: {}]   ;;  %s8670_s18 = inlined_call_operand.vmem [shape: f32[784,32], index: 18, kind: input, shape index: {}]   ;;  %s8671_s19 = inlined_call_operand.hbm [shape: f32[1,32], index: 19, kind: input, shape index: {}]   ;;  %s8672_s20 = inlined_call_operand.vmem [shape: f32[32,16], index: 20, kind: input, shape index: {}]   ;;  %s8673_s21 = inlined_call_operand.hbm [shape: f32[1,16], index: 21, kind: input, shape index: {}]   ;;  %s8674_s22 = inlined_call_operand.hbm [shape: f32[2,16], index: 22, kind: output, shape index: {}]  }
   0x1   :  { %8682 = sst [smem:[#allocation37_spill]] %s8652_s0 }
   0x2   :  { %8683 = sst [smem:[#allocation38_spill]] %s8653_s1 }
   0x3   :  { %8684 = sst [smem:[#allocation39_spill]] %s8654_s2 }
   0x4   :  { %8685 = sst [smem:[#allocation40_spill]] %s8655_s3 }
   0x5   :  { %8686 = sst [smem:[#allocation41_spill]] %s8656_s4 }
   0x6   :  { %8687 = sst [smem:[#allocation42_spill]] %s8657_s5 }
   0x7   :  { %8688 = sst [smem:[#allocation43_spill]] %s8658_s6 }
   0x8   :  { %27 = vsyncpa [#allocation9], 0 }
   0x9   :  { %28 = vsyncpa [#allocation12], 0 }
   0xa   :  { %29 = vsyncpa [#allocation15], 0 }
   0xb   :  { %30 = vsyncpa [#allocation18], 0 }
   0xc   :  { %31 = vsyncpa [#allocation21], 0 }
   0xd   :  { %32 = vsyncpa [#allocation24], 0 }
   0xe   :  { %33 = vsyncpa [#allocation27], 0 }
   0xf   :  { %34 = vsyncpa [#allocation10], 0  ;;  %s6711_s3 = smov [#allocation11]   ;;  %s6712_s29 = smov [#allocation14]  }
  0x10   :  { %s57_s28 = sshll.u32 %s6711_s3, 4  ;;  %s79_s30 = sshll.u32 %s6712_s29, 4  ;;  %s58_s28 = int_to_ptr.vmem [resolvable:$true] %s57_s28  ;;  %s80_s30 = int_to_ptr.vmem [resolvable:$true] %s79_s30 }
  0x11   :  { %s8689_s23 = sld [smem:[#allocation41_spill]] }
  0x17   :  { %s6409_s1 = scalar_lea.hbm %s8689_s23, 16 }
  0x18   :  { %p6410_p0 = scmp.ne.s32.totalorder %s8689_s23, %s6409_s1  ;;  %p6413_p1 = scmp.lt.u32.totalorder %s6409_s1, %s8689_s23 }
  0x1a   :  { %p6415_p2 = pnand %p6413_p1, %p6410_p0 }
  0x1c   :  { %6418 = shalt.err (!%p6415_p2)
}
  0x1d   :  { %s6419_s26 = scalar_lea.vmem %s58_s28, 16  ;;  %s6423_s2 = scalar_lea.vmem %s58_s28, 32 }
  0x1e   :  { %p6420_p3 = scmp.ne.s32.totalorder %s58_s28, %s6419_s26  ;;  %p6424_p4 = scmp.lt.s32.totalorder %s58_s28, %s58_s28 }
  0x1f   :  { %p6425_p5 = scmp.lt.s32.totalorder %s6423_s2, %s6419_s26 }
  0x21   :  { %p6426_p6 = por %p6425_p5, %p6424_p4 }
  0x23   :  { %p6427_p7 = pnand %p6426_p6, %p6420_p3 }
  0x25   :  { %6430 = shalt.err (!%p6427_p7)
}
  0x26   :  { %60 = dma.hbm_to_vmem [thread:$0]  %s8689_s23, 16, %s58_s28, [#allocation12]  }
  0x27   :  { %s6431_s0 = scalar_lea.hbm %s8659_s7, 16 }
  0x28   :  { %p6432_p8 = scmp.ne.s32.totalorder %s8659_s7, %s6431_s0  ;;  %p6435_p9 = scmp.lt.u32.totalorder %s6431_s0, %s8659_s7 }
  0x2a   :  { %p6437_p10 = pnand %p6435_p9, %p6432_p8 }
  0x2c   :  { %6440 = shalt.err (!%p6437_p10)
}
  0x2d   :  { %s6441_s25 = scalar_lea.vmem %s80_s30, 16  ;;  %s6445_s26 = scalar_lea.vmem %s80_s30, 32 }
  0x2e   :  { %p6442_p11 = scmp.ne.s32.totalorder %s80_s30, %s6441_s25  ;;  %p6446_p12 = scmp.lt.s32.totalorder %s80_s30, %s80_s30 }
  0x2f   :  { %p6447_p13 = scmp.lt.s32.totalorder %s6445_s26, %s6441_s25 }
  0x31   :  { %p6448_p0 = por %p6447_p13, %p6446_p12 }
  0x33   :  { %p6449_p1 = pnand %p6448_p0, %p6442_p11 }
  0x35   :  { %6452 = shalt.err (!%p6449_p1)
}
  0x36   :  { %82 = dma.hbm_to_vmem [thread:$0]  %s8659_s7, 16, %s80_s30, [#allocation15]  }
  0x37   :  { %s6713_s2 = smov [#allocation17]   ;;  %s6714_s3 = smov [#allocation20]  }
  0x38   :  { %s101_s27 = sshll.u32 %s6713_s2, 4  ;;  %s123_s29 = sshll.u32 %s6714_s3, 4  ;;  %s102_s27 = int_to_ptr.vmem [resolvable:$true] %s101_s27  ;;  %s124_s29 = int_to_ptr.vmem [resolvable:$true] %s123_s29 }
  0x39   :  { %s6453_s5 = scalar_lea.hbm %s8662_s10, 16 }
  0x3a   :  { %p6454_p2 = scmp.ne.s32.totalorder %s8662_s10, %s6453_s5  ;;  %p6457_p3 = scmp.lt.u32.totalorder %s6453_s5, %s8662_s10 }
  0x3c   :  { %p6459_p4 = pnand %p6457_p3, %p6454_p2 }
  0x3e   :  { %6462 = shalt.err (!%p6459_p4)
}
  0x3f   :  { %s6463_s7 = scalar_lea.vmem %s102_s27, 16  ;;  %s6467_s30 = scalar_lea.vmem %s102_s27, 32 }
  0x40   :  { %p6464_p5 = scmp.ne.s32.totalorder %s102_s27, %s6463_s7  ;;  %p6468_p6 = scmp.lt.s32.totalorder %s102_s27, %s102_s27 }
  0x41   :  { %p6469_p7 = scmp.lt.s32.totalorder %s6467_s30, %s6463_s7 }
  0x43   :  { %p6470_p8 = por %p6469_p7, %p6468_p6 }
  0x45   :  { %p6471_p9 = pnand %p6470_p8, %p6464_p5 }
  0x47   :  { %6474 = shalt.err (!%p6471_p9)
}
  0x48   :  { %104 = dma.hbm_to_vmem [thread:$0]  %s8662_s10, 16, %s102_s27, [#allocation18]  }
  0x49   :  { %s6475_s3 = scalar_lea.hbm %s8665_s13, 16 }
  0x4a   :  { %p6476_p10 = scmp.ne.s32.totalorder %s8665_s13, %s6475_s3  ;;  %p6479_p11 = scmp.lt.u32.totalorder %s6475_s3, %s8665_s13 }
  0x4c   :  { %p6481_p12 = pnand %p6479_p11, %p6476_p10 }
  0x4e   :  { %6484 = shalt.err (!%p6481_p12)
}
  0x4f   :  { %s6485_s24 = scalar_lea.vmem %s124_s29, 16  ;;  %s6489_s6 = scalar_lea.vmem %s124_s29, 32 }
  0x50   :  { %p6486_p13 = scmp.ne.s32.totalorder %s124_s29, %s6485_s24  ;;  %p6490_p0 = scmp.lt.s32.totalorder %s124_s29, %s124_s29 }
  0x51   :  { %p6491_p1 = scmp.lt.s32.totalorder %s6489_s6, %s6485_s24 }
  0x53   :  { %p6492_p2 = por %p6491_p1, %p6490_p0 }
  0x55   :  { %p6493_p3 = pnand %p6492_p2, %p6486_p13 }
  0x57   :  { %6496 = shalt.err (!%p6493_p3)
}
  0x58   :  { %126 = dma.hbm_to_vmem [thread:$0]  %s8665_s13, 16, %s124_s29, [#allocation21]  }
  0x59   :  { %s6715_s25 = smov [#allocation23]   ;;  %s6497_s28 = scalar_lea.hbm %s8669_s17, 256 }
  0x5a   :  { %s146_s7 = sshll.u32 %s6715_s25, 4  ;;  %p6498_p4 = scmp.ne.s32.totalorder %s8669_s17, %s6497_s28  ;;  %s147_s7 = int_to_ptr.vmem [resolvable:$true] %s146_s7 }
  0x5b   :  { %p6501_p5 = scmp.lt.u32.totalorder %s6497_s28, %s8669_s17 }
  0x5d   :  { %p6503_p6 = pnand %p6501_p5, %p6498_p4 }
  0x5f   :  { %6506 = shalt.err (!%p6503_p6)
}
  0x60   :  { %s6507_s0 = scalar_lea.vmem %s147_s7, 256  ;;  %p6512_p8 = scmp.lt.s32.totalorder %s147_s7, %s147_s7 }
  0x61   :  { %p6508_p7 = scmp.ne.s32.totalorder %s147_s7, %s6507_s0  ;;  %p6513_p9 = scmp.lt.s32.totalorder %s6507_s0, %s6507_s0 }
  0x63   :  { %p6514_p10 = por %p6513_p9, %p6512_p8 }
  0x65   :  { %p6515_p11 = pnand %p6514_p10, %p6508_p7 }
  0x67   :  { %6518 = shalt.err (!%p6515_p11)
}
  0x68   :  { %s6716_s13 = smov 128   ;;  %s6717_s29 = smov 8  }
  0x69   :  { %152 = dma.hbm_to_vmem [thread:$0]  %s8669_s17, 256, %s147_s7, [#allocation24], %s6716_s13, %s6716_s13, %s6717_s29  }
  0x6a   :  { %s6718_s24 = smov [#allocation8]   ;;  %s6719_s10 = smov [#allocation13]  }
  0x6b   :  { %s47_s6 = sshll.u32 %s6718_s24, 4  ;;  %s69_s27 = sshll.u32 %s6719_s10, 4  ;;  %s48_s6 = int_to_ptr.vmem [resolvable:$true] %s47_s6  ;;  %s70_s27 = int_to_ptr.vmem [resolvable:$true] %s69_s27 }
  0x6c   :  { %s8690_s26 = sld [smem:[#allocation40_spill]] }
  0x72   :  { %s6519_s28 = scalar_lea.hbm %s8690_s26, 16 }
  0x73   :  { %p6520_p12 = scmp.ne.s32.totalorder %s8690_s26, %s6519_s28  ;;  %p6523_p13 = scmp.lt.u32.totalorder %s6519_s28, %s8690_s26 }
  0x75   :  { %p6525_p0 = pnand %p6523_p13, %p6520_p12 }
  0x77   :  { %6528 = shalt.err (!%p6525_p0)
}
  0x78   :  { %s6529_s17 = scalar_lea.vmem %s48_s6, 16  ;;  %s6533_s7 = scalar_lea.vmem %s48_s6, 32 }
  0x79   :  { %p6530_p1 = scmp.ne.s32.totalorder %s48_s6, %s6529_s17  ;;  %p6534_p2 = scmp.lt.s32.totalorder %s48_s6, %s48_s6 }
  0x7a   :  { %p6535_p3 = scmp.lt.s32.totalorder %s6533_s7, %s6529_s17 }
  0x7c   :  { %p6536_p4 = por %p6535_p3, %p6534_p2 }
  0x7e   :  { %p6537_p5 = pnand %p6536_p4, %p6530_p1 }
  0x80   :  { %6540 = shalt.err (!%p6537_p5)
}
  0x81   :  { %50 = dma.hbm_to_vmem [thread:$0]  %s8690_s26, 16, %s48_s6, [#allocation9]  }
  0x82   :  { %s8691_s1 = sld [smem:[#allocation43_spill]] }
  0x88   :  { %s6541_s24 = scalar_lea.hbm %s8691_s1, 16 }
  0x89   :  { %p6542_p6 = scmp.ne.s32.totalorder %s8691_s1, %s6541_s24  ;;  %p6545_p7 = scmp.lt.u32.totalorder %s6541_s24, %s8691_s1 }
  0x8b   :  { %p6547_p8 = pnand %p6545_p7, %p6542_p6 }
  0x8d   :  { %6550 = shalt.err (!%p6547_p8)
}
  0x8e   :  { %s6551_s23 = scalar_lea.vmem %s70_s27, 16  ;;  %s6555_s2 = scalar_lea.vmem %s70_s27, 32 }
  0x8f   :  { %p6552_p9 = scmp.ne.s32.totalorder %s70_s27, %s6551_s23  ;;  %p6556_p10 = scmp.lt.s32.totalorder %s70_s27, %s70_s27 }
  0x90   :  { %p6557_p11 = scmp.lt.s32.totalorder %s6555_s2, %s6551_s23 }
  0x92   :  { %p6558_p12 = por %p6557_p11, %p6556_p10 }
  0x94   :  { %p6559_p13 = pnand %p6558_p12, %p6552_p9 }
  0x96   :  { %6562 = shalt.err (!%p6559_p13)
}
  0x97   :  { %72 = dma.hbm_to_vmem [thread:$0]  %s8691_s1, 16, %s70_s27, [#allocation12]  }
  0x98   :  { %s6720_s3 = smov [#allocation16]   ;;  %s6721_s17 = smov [#allocation19]  }
  0x99   :  { %s91_s4 = sshll.u32 %s6720_s3, 4  ;;  %s113_s7 = sshll.u32 %s6721_s17, 4  ;;  %s92_s4 = int_to_ptr.vmem [resolvable:$true] %s91_s4  ;;  %s114_s7 = int_to_ptr.vmem [resolvable:$true] %s113_s7 }
  0x9a   :  { %s6563_s29 = scalar_lea.hbm %s8661_s9, 16 }
  0x9b   :  { %p6564_p0 = scmp.ne.s32.totalorder %s8661_s9, %s6563_s29  ;;  %p6567_p1 = scmp.lt.u32.totalorder %s6563_s29, %s8661_s9 }
  0x9d   :  { %p6569_p2 = pnand %p6567_p1, %p6564_p0 }
  0x9f   :  { %6572 = shalt.err (!%p6569_p2)
}
  0xa0   :  { %s6573_s27 = scalar_lea.vmem %s92_s4, 16  ;;  %s6577_s1 = scalar_lea.vmem %s92_s4, 32 }
  0xa1   :  { %p6574_p3 = scmp.ne.s32.totalorder %s92_s4, %s6573_s27  ;;  %p6578_p4 = scmp.lt.s32.totalorder %s92_s4, %s92_s4 }
  0xa2   :  { %p6579_p5 = scmp.lt.s32.totalorder %s6577_s1, %s6573_s27 }
  0xa4   :  { %p6580_p6 = por %p6579_p5, %p6578_p4 }
  0xa6   :  { %p6581_p7 = pnand %p6580_p6, %p6574_p3 }
  0xa8   :  { %6584 = shalt.err (!%p6581_p7)
}
  0xa9   :  { %94 = dma.hbm_to_vmem [thread:$0]  %s8661_s9, 16, %s92_s4, [#allocation15]  }
  0xaa   :  { %s6585_s6 = scalar_lea.hbm %s8664_s12, 16 }
  0xab   :  { %p6586_p8 = scmp.ne.s32.totalorder %s8664_s12, %s6585_s6  ;;  %p6589_p9 = scmp.lt.u32.totalorder %s6585_s6, %s8664_s12 }
  0xad   :  { %p6591_p10 = pnand %p6589_p9, %p6586_p8 }
  0xaf   :  { %6594 = shalt.err (!%p6591_p10)
}
  0xb0   :  { %s6595_s13 = scalar_lea.vmem %s114_s7, 16  ;;  %s6599_s29 = scalar_lea.vmem %s114_s7, 32 }
  0xb1   :  { %p6596_p11 = scmp.ne.s32.totalorder %s114_s7, %s6595_s13  ;;  %p6600_p12 = scmp.lt.s32.totalorder %s114_s7, %s114_s7 }
  0xb2   :  { %p6601_p13 = scmp.lt.s32.totalorder %s6599_s29, %s6595_s13 }
  0xb4   :  { %p6602_p0 = por %p6601_p13, %p6600_p12 }
  0xb6   :  { %p6603_p1 = pnand %p6602_p0, %p6596_p11 }
  0xb8   :  { %6606 = shalt.err (!%p6603_p1)
}
  0xb9   :  { %116 = dma.hbm_to_vmem [thread:$0]  %s8664_s12, 16, %s114_s7, [#allocation18]  }
  0xba   :  { %s6722_s5 = smov [#allocation22]   ;;  %s6723_s10 = smov [#allocation25]  }
  0xbb   :  { %s135_s24 = sshll.u32 %s6722_s5, 4  ;;  %s161_s25 = sshll.u32 %s6723_s10, 4  ;;  %s136_s24 = int_to_ptr.vmem [resolvable:$true] %s135_s24  ;;  %s162_s25 = int_to_ptr.vmem [resolvable:$true] %s161_s25 }
  0xbc   :  { %s6607_s30 = scalar_lea.hbm %s8667_s15, 128 }
  0xbd   :  { %p6608_p2 = scmp.ne.s32.totalorder %s8667_s15, %s6607_s30  ;;  %p6611_p3 = scmp.lt.u32.totalorder %s6607_s30, %s8667_s15 }
  0xbf   :  { %p6613_p4 = pnand %p6611_p3, %p6608_p2 }
  0xc1   :  { %6616 = shalt.err (!%p6613_p4)
}
  0xc2   :  { %s6617_s12 = scalar_lea.vmem %s136_s24, 128  ;;  %p6622_p6 = scmp.lt.s32.totalorder %s136_s24, %s136_s24 }
  0xc3   :  { %p6618_p5 = scmp.ne.s32.totalorder %s136_s24, %s6617_s12  ;;  %p6623_p7 = scmp.lt.s32.totalorder %s6617_s12, %s6617_s12 }
  0xc5   :  { %p6624_p8 = por %p6623_p7, %p6622_p6 }
  0xc7   :  { %p6625_p9 = pnand %p6624_p8, %p6618_p5 }
  0xc9   :  { %6628 = shalt.err (!%p6625_p9)
}
  0xca   :  { %138 = dma.hbm_to_vmem [thread:$0]  %s8667_s15, 128, %s136_s24, [#allocation21]  }
  0xcb   :  { %s6629_s0 = scalar_lea.hbm %s8671_s19, 16 }
  0xcc   :  { %p6630_p10 = scmp.ne.s32.totalorder %s8671_s19, %s6629_s0  ;;  %p6633_p11 = scmp.lt.u32.totalorder %s6629_s0, %s8671_s19 }
  0xce   :  { %p6635_p12 = pnand %p6633_p11, %p6630_p10 }
  0xd0   :  { %6638 = shalt.err (!%p6635_p12)
}
  0xd1   :  { %s6639_s5 = scalar_lea.vmem %s162_s25, 16  ;;  %s6643_s10 = scalar_lea.vmem %s162_s25, 32 }
  0xd2   :  { %p6640_p13 = scmp.ne.s32.totalorder %s162_s25, %s6639_s5  ;;  %p6644_p0 = scmp.lt.s32.totalorder %s162_s25, %s162_s25 }
  0xd3   :  { %p6645_p1 = scmp.lt.s32.totalorder %s6643_s10, %s6639_s5 }
  0xd5   :  { %p6646_p2 = por %p6645_p1, %p6644_p0 }
  0xd7   :  { %p6647_p3 = pnand %p6646_p2, %p6640_p13 }
  0xd9   :  { %6650 = shalt.err (!%p6647_p3)
}
  0xda   :  { %164 = dma.hbm_to_vmem [thread:$0]  %s8671_s19, 16, %s162_s25, [#allocation24]  }
  0xdb   :  { %s6724_s27 = smov [#allocation26]   ;;  %s6651_s23 = scalar_lea.hbm %s8673_s21, 16 }
  0xdc   :  { %s173_s1 = sshll.u32 %s6724_s27, 4  ;;  %p6652_p4 = scmp.ne.s32.totalorder %s8673_s21, %s6651_s23  ;;  %s174_s1 = int_to_ptr.vmem [resolvable:$true] %s173_s1 }
  0xdd   :  { %p6655_p5 = scmp.lt.u32.totalorder %s6651_s23, %s8673_s21 }
  0xdf   :  { %p6657_p6 = pnand %p6655_p5, %p6652_p4 }
  0xe1   :  { %6660 = shalt.err (!%p6657_p6)
}
  0xe2   :  { %s6661_s26 = scalar_lea.vmem %s174_s1, 16  ;;  %s6665_s19 = scalar_lea.vmem %s174_s1, 32 }
  0xe3   :  { %p6662_p7 = scmp.ne.s32.totalorder %s174_s1, %s6661_s26  ;;  %p6666_p8 = scmp.lt.s32.totalorder %s174_s1, %s174_s1 }
  0xe4   :  { %p6667_p9 = scmp.lt.s32.totalorder %s6665_s19, %s6661_s26 }
  0xe6   :  { %p6668_p10 = por %p6667_p9, %p6666_p8 }
  0xe8   :  { %p6669_p11 = pnand %p6668_p10, %p6662_p7 }
  0xea   :  { %6672 = shalt.err (!%p6669_p11)
}
  0xeb   :  { %176 = dma.hbm_to_vmem [thread:$0]  %s8673_s21, 16, %s174_s1, [#allocation27]  }
  0xec   :  { %6695 = dma.done.wait [#allocation9], 16  }
  0xed   :  { %6696 = vsyncadd [#allocation9], 4294967280 }
  0xee   :  { %6697 = dma.done.wait [#allocation12], 32  }
  0xef   :  { %6698 = vsyncadd [#allocation12], 4294967264 }
  0xf0   :  { %6699 = dma.done.wait [#allocation15], 32  }
  0xf1   :  { %6700 = vsyncadd [#allocation15], 4294967264 }
  0xf2   :  { %6701 = dma.done.wait [#allocation18], 32  }
  0xf3   :  { %6702 = vsyncadd [#allocation18], 4294967264 }
  0xf4   :  { %6703 = dma.done.wait [#allocation21], 144  }
  0xf5   :  { %6704 = vsyncadd [#allocation21], 4294967152 }
  0xf6   :  { %6705 = dma.done.wait [#allocation24], 272  }
  0xf7   :  { %6706 = vsyncadd [#allocation24], 4294967024 }
  0xf8   :  { %6707 = dma.done.wait [#allocation27], 16  }
  0xf9   :  { %6708 = vsyncadd [#allocation27], 4294967280  ;;  %vm213_vm0 = vcmask 679936   ;;  %v6725_v0 = vmov 0.0   ;;  %s8692_s0 = sld [smem:[#allocation37_spill]]  ;;  %s6726_s9 = smov 56  }
  0xfa   :  { %215 = vst.msk [vmem:[#allocation2 + $0x1d] sm:$0x1] %vm213_vm0, %v6725_v0  ;;  %214 = vst.msk [vmem:[#allocation2] sm:$0x1] %vm213_vm0, %v6725_v0  ;;  %s6727_s4 = smov 28   ;;  %s8693_s6 = sld [smem:[#allocation38_spill]] }
  0xfb   :  { %216 = vst.msk [vmem:[#allocation2 + $0x3a] sm:$0x1] %vm213_vm0, %v6725_v0  ;;  %s8694_s25 = sld [smem:[#allocation39_spill]]  ;;  %vm221_vm1 = vcmask 228352   ;;  %vm225_vm2 = vcmask 224256   ;;  %vm415_vm3 = vcmask 1043456  }
  0xfc   :  { %vm248_vm4 = vcmask 457952   ;;  %vm275_vm5 = vcmask 687552   ;;  %vm252_vm6 = vcmask 453856   ;;  %vm390_vm7 = vcmask 687104   ;;  %s8695_s21 = sld [smem:[#allocation42_spill]] }
  0xfd   :  { %vm279_vm8 = vcmask 683456   ;;  %vm6729_vm9 = vmmov 0   ;;  %vm1172_vm10 = vcmask 916480   ;;  %vm1178_vm11 = vcmask 912384  }
  0xfe   :  { %vm1209_vm12 = vcmask 1042432   ;;  %vm1373_vm13 = vcmask 1040384   ;;  %vm1501_vm14 = vcmask 64512   ;;  %vm1648_vm15 = vcmask 909312  }
  0xff   :  { %v4165_v1 = vld [vmem:[%s8692_s0 + $0x40] sm:$0xff]  ;;  %v4166_v3 = vld [vmem:[%s8692_s0 + $0x48] sm:$0xff]  ;;  %v4164_v5 = vld [vmem:[%s8692_s0 + $0x38] sm:$0xf]  ;;  %1651 = vst.msk [vmem:[#allocation4 + $0xf] sm:$0x1] %vm1648_vm15, %v6725_v0 }
 0x100   :  { %v4161_v2 = vld [vmem:[%s8692_s0 + $0x20] sm:$0xff]  ;;  %263 = vrot.lane.b32.xlu1 %v4165_v1, %s6726_s9  ;;  %v4162_v4 = vld [vmem:[%s8692_s0 + $0x28] sm:$0xff]  ;;  %v4163_v6 = vld [vmem:[%s8692_s0 + $0x30] sm:$0xff]  ;;  %1650 = vst.msk [vmem:[#allocation4] sm:$0x1] %vm1648_vm15, %v6725_v0  ;;  %vm1643_vm0 = vcmask 916485  }
 0x101   :  { %236 = vrot.lane.b32.xlu0 %v4161_v2, %s6727_s4  ;;  %v4181_v7 = vld [vmem:[%s8693_s6 + $0x58] sm:$0xff]  ;;  %v4182_v8 = vld [vmem:[%s8693_s6 + $0x60] sm:$0xff]  ;;  %v4183_v12 = vld [vmem:[%s8693_s6 + $0x68] sm:$0xff]  ;;  %1652 = vst.msk [vmem:[#allocation4 + $0x1e] sm:$0x1] %vm1648_vm15, %v6725_v0 }
 0x102   :  { %v4201_v9 = vld [vmem:[%s8694_s25 + $0x58] sm:$0xff]  ;;  %v5717_v10 = vpack.c.bf16 %v4182_v8, %v4181_v7  ;;  %v4202_v11 = vld [vmem:[%s8694_s25 + $0x60] sm:$0xff]  ;;  %v4184_v13 = vld [vmem:[%s8693_s6 + $0x70] sm:$0xff]  ;;  %2310 = vst.msk [vmem:[#allocation5] sm:$0x1] %vm1648_vm15, %v6725_v0 }
 0x103   :  { %v4173_v14 = vld [vmem:[%s8692_s0 + $0x80] sm:$0xff]  ;;  %v5737_v15 = vpack.c.bf16 %v4202_v11, %v4201_v9  ;;  %v5721_v16 = vpack.c.bf16 %v4184_v13, %v4183_v12  ;;  %v4203_v17 = vld [vmem:[%s8694_s25 + $0x68] sm:$0xff]  ;;  %v4204_v18 = vld [vmem:[%s8694_s25 + $0x70] sm:$0xff]  ;;  %2311 = vst.msk [vmem:[#allocation5 + $0xf] sm:$0x1] %vm1648_vm15, %v6725_v0 }
 0x104   :  { %265 = vrot.lane.b32.xlu1 %v4166_v3, %s6726_s9  ;;  %v4185_v19 = vld [vmem:[%s8693_s6 + $0x78] sm:$0xff]  ;;  %v5741_v20 = vpack.c.bf16 %v4204_v18, %v4203_v17  ;;  %v4186_v21 = vld [vmem:[%s8693_s6 + $0x80] sm:$0xff]  ;;  %v4167_v23 = vld [vmem:[%s8692_s0 + $0x50] sm:$0xff]  ;;  %5718 = vmatprep.subr.bf16.mxu0 %v5717_v10  ;;  %2866 = vst.msk [vmem:[#allocation6] sm:$0x1] %vm1648_vm15, %v6725_v0 }
 0x105   :  { %238 = vrot.lane.b32.xlu0 %v4162_v4, %s6727_s4  ;;  %v4205_v22 = vld [vmem:[%s8694_s25 + $0x78] sm:$0xff]  ;;  %5738 = vmatprep.subr.bf16.mxu1 %v5737_v15  ;;  %v4206_v24 = vld [vmem:[%s8694_s25 + $0x80] sm:$0xff]  ;;  %v5725_v27 = vpack.c.bf16 %v4186_v21, %v4185_v19  ;;  %v4187_v29 = vld [vmem:[%s8693_s6 + $0x88] sm:$0xff]  ;;  %2867 = vst.msk [vmem:[#allocation6 + $0x8] sm:$0x1] %vm1648_vm15, %v6725_v0 }
 0x106   :  { %v217_v25 = vld [vmem:[%s8692_s0] sm:$0xff]  ;;  %5720 = vmatpush3.bf16.msra.mxu0 %v5717_v10  ;;  %5740 = vmatpush3.bf16.msra.mxu1 %v5737_v15  ;;  %v5745_v28 = vpack.c.bf16 %v4206_v24, %v4205_v22  ;;  %v4188_v30 = vld [vmem:[%s8693_s6 + $0x90] sm:$0xff]  ;;  %v218_v31 = vld [vmem:[%s8692_s0 + $0x8] sm:$0xff]  ;;  %2868 = vst.msk [vmem:[#allocation6 + $0x10] sm:$0x1] %vm1648_vm15, %v6725_v0 }
 0x107   :  { %222 = vst.msk [vmem:[#allocation2 + $0x1] sm:$0xff] %vm221_vm1, %v217_v25  ;;  %v4177_v26 = vld [vmem:[%s8692_s0 + $0xa0] sm:$0xff]  ;;  %5722 = vmatprep.subr.bf16.mxu0 %v5721_v16  ;;  %5742 = vmatprep.subr.bf16.mxu1 %v5741_v20  ;;  %v4207_v32 = vld [vmem:[%s8694_s25 + $0x88] sm:$0xff]  ;;  %v4208_v33 = vld [vmem:[%s8694_s25 + $0x90] sm:$0xff]  ;;  %v5729_v39 = vpack.c.bf16 %v4188_v30, %v4187_v29 }
 0x108   :  { %242 = vrot.lane.b32.xlu1 %v4164_v5, %s6727_s4  ;;  %223 = vst.msk [vmem:[#allocation2 + $0x9] sm:$0xff] %vm221_vm1, %v218_v31  ;;  %v4168_v34 = vld [vmem:[%s8692_s0 + $0x58] sm:$0xf]  ;;  %v219_v36 = vld [vmem:[%s8692_s0 + $0x10] sm:$0xff]  ;;  %v4169_v38 = vld [vmem:[%s8692_s0 + $0x60] sm:$0xff]  ;;  %v5749_v40 = vpack.c.bf16 %v4208_v33, %v4207_v32 }
 0x109   :  { %240 = vrot.lane.b32.xlu0 %v4163_v6, %s6727_s4  ;;  %v220_v35 = vld [vmem:[%s8692_s0 + $0x18] sm:$0xf]  ;;  %224 = vst.msk [vmem:[#allocation2 + $0x11] sm:$0xff] %vm221_vm1, %v219_v36  ;;  %v4190_v41 = vld [vmem:[%s8693_s6 + $0xa0] sm:$0xff]  ;;  %286 = vst.msk [vmem:[#allocation2 + $0x1e] sm:$0xff] %vm221_vm1, %v4169_v38 }
 0x10a   :  { %5724 = vmatpush3.bf16.msra.mxu0 %v5721_v16  ;;  %5744 = vmatpush3.bf16.msra.mxu1 %v5741_v20  ;;  %v4189_v37 = vld [vmem:[%s8693_s6 + $0x98] sm:$0xff]  ;;  %226 = vst.msk [vmem:[#allocation2 + $0x19] sm:$0xf] %vm225_vm2, %v220_v35  ;;  %v4210_v43 = vld [vmem:[%s8694_s25 + $0xa0] sm:$0xff]  ;;  %v4171_v44 = vld [vmem:[%s8692_s0 + $0x70] sm:$0xff] }
 0x10b   :  { %5726 = vmatprep.subr.bf16.mxu0 %v5725_v27  ;;  %5746 = vmatprep.subr.bf16.mxu1 %v5745_v28  ;;  %v4209_v42 = vld [vmem:[%s8694_s25 + $0x98] sm:$0xff]  ;;  %v4170_v45 = vld [vmem:[%s8692_s0 + $0x68] sm:$0xff]  ;;  %v4175_v46 = vld [vmem:[%s8692_s0 + $0x90] sm:$0xff]  ;;  %288 = vst.msk [vmem:[#allocation2 + $0x2e] sm:$0xff] %vm221_vm1, %v4171_v44  ;;  %v5733_v49 = vpack.c.bf16 %v4190_v41, %v4189_v37 }
 0x10c   :  { %299 = vrot.lane.b32.xlu1 %v4173_v14, %s6727_s4  ;;  %v4174_v47 = vld [vmem:[%s8692_s0 + $0x88] sm:$0xff]  ;;  %287 = vst.msk [vmem:[#allocation2 + $0x26] sm:$0xff] %vm221_vm1, %v4170_v45  ;;  %v4172_v48 = vld [vmem:[%s8692_s0 + $0x78] sm:$0xf]  ;;  %v5753_v50 = vpack.c.bf16 %v4210_v43, %v4209_v42  ;;  %v4179_v51 = vld [vmem:[%s8692_s0 + $0xb0] sm:$0xff]  ;;  %vm1663_vm1 = vcmask 914432  }
 0x10d   :  { %267 = vrot.lane.b32.xlu0 %v4167_v23, %s6726_s9  ;;  %289 = vst.msk [vmem:[#allocation2 + $0x36] sm:$0xf] %vm225_vm2, %v4172_v48  ;;  %v4178_v52 = vld [vmem:[%s8692_s0 + $0xa8] sm:$0xff]  ;;  %v348_v55 = vld [vmem:[%s8693_s6] sm:$0xff]  ;;  %v4176_v59 = vld [vmem:[%s8692_s0 + $0x98] sm:$0xf] }
 0x10e   :  { %5728 = vmatpush3.bf16.msra.mxu0 %v5725_v27  ;;  %5748 = vmatpush3.bf16.msra.mxu1 %v5745_v28  ;;  %v4191_v53 = vld [vmem:[%s8693_s6 + $0xa8] sm:$0xf]  ;;  %v359_v57 = vld [vmem:[%s8694_s25] sm:$0xff]  ;;  %v4180_v60 = vld [vmem:[%s8692_s0 + $0xb8] sm:$0xf]  ;;  %vm2315_vm2 = vcmask 916487  }
 0x10f   :  { %5730 = vmatprep.subr.bf16.mxu0 %v5729_v39  ;;  %5750 = vmatprep.subr.bf16.mxu1 %v5749_v40  ;;  %v4211_v54 = vld [vmem:[%s8694_s25 + $0xa8] sm:$0xf]  ;;  %v350_v6 = vld [vmem:[%s8693_s6 + $0x10] sm:$0xff]  ;;  %v351_v7 = vld [vmem:[%s8693_s6 + $0x18] sm:$0xff] }
 0x110   :  { %324 = vrot.lane.b32.xlu1 %v4177_v26, %s6726_s9  ;;  %v349_v56 = vld [vmem:[%s8693_s6 + $0x8] sm:$0xff]  ;;  %v361_v9 = vld [vmem:[%s8694_s25 + $0x10] sm:$0xff]  ;;  %v362_v10 = vld [vmem:[%s8694_s25 + $0x18] sm:$0xff]  ;;  %v5761_v13 = vpack.c.bf16 %v351_v7, %v350_v6 }
 0x111   :  { %269 = vrot.lane.b32.xlu0 %v4168_v34, %s6726_s9  ;;  %v360_v58 = vld [vmem:[%s8694_s25 + $0x8] sm:$0xff]  ;;  %v5757_v61 = vpack.c.bf16 %v349_v56, %v348_v55  ;;  %v5781_v14 = vpack.c.bf16 %v362_v10, %v361_v9  ;;  %v352_v15 = vld [vmem:[%s8693_s6 + $0x20] sm:$0xff]  ;;  %v354_v24 = vld [vmem:[%s8693_s6 + $0x30] sm:$0xff] }
 0x112   :  { %5732 = vmatpush3.bf16.msra.mxu0 %v5729_v39  ;;  %5752 = vmatpush3.bf16.msra.mxu1 %v5749_v40  ;;  %v5777_v62 = vpack.c.bf16 %v360_v58, %v359_v57  ;;  %v353_v16 = vld [vmem:[%s8693_s6 + $0x28] sm:$0xff]  ;;  %v363_v18 = vld [vmem:[%s8694_s25 + $0x20] sm:$0xff]  ;;  %v355_v25 = vld [vmem:[%s8693_s6 + $0x38] sm:$0xff] }
 0x113   :  { %5734 = vmatprep.subr.bf16.mxu0 %v5733_v49  ;;  %5754 = vmatprep.subr.bf16.mxu1 %v5753_v50  ;;  %v364_v19 = vld [vmem:[%s8694_s25 + $0x28] sm:$0xff]  ;;  %v5765_v22 = vpack.c.bf16 %v353_v16, %v352_v15  ;;  %v365_v26 = vld [vmem:[%s8694_s25 + $0x30] sm:$0xff]  ;;  %v366_v27 = vld [vmem:[%s8694_s25 + $0x38] sm:$0xff]  ;;  %v5769_v31 = vpack.c.bf16 %v355_v25, %v354_v24 }
 0x114   :  { %303 = vrot.lane.b32.xlu1 %v4175_v46, %s6727_s4  ;;  %v5785_v23 = vpack.c.bf16 %v364_v19, %v363_v18  ;;  %v5789_v32 = vpack.c.bf16 %v366_v27, %v365_v26  ;;  %v356_v33 = vld [vmem:[%s8693_s6 + $0x40] sm:$0xff]  ;;  %v357_v34 = vld [vmem:[%s8693_s6 + $0x48] sm:$0xff]  ;;  %v358_v44 = vld [vmem:[%s8693_s6 + $0x50] sm:$0xf] }
 0x115   :  { %301 = vrot.lane.b32.xlu0 %v4174_v47, %s6727_s4  ;;  %v367_v35 = vld [vmem:[%s8694_s25 + $0x40] sm:$0xff]  ;;  %v368_v36 = vld [vmem:[%s8694_s25 + $0x48] sm:$0xff]  ;;  %v5773_v40 = vpack.c.bf16 %v357_v34, %v356_v33  ;;  %v369_v45 = vld [vmem:[%s8694_s25 + $0x50] sm:$0xf] }
 0x116   :  { %5736 = vmatpush3.bf16.msra.mxu0 %v5733_v49  ;;  %5756 = vmatpush3.bf16.msra.mxu1 %v5753_v50  ;;  %v5793_v41 = vpack.c.bf16 %v368_v36, %v367_v35  ;;  %v4239_v46 = vld [vmem:[%s8693_s6 + $0xb0] sm:$0xff]  ;;  %v4240_v47 = vld [vmem:[%s8693_s6 + $0xb8] sm:$0xff]  ;;  %v4241_v56 = vld [vmem:[%s8693_s6 + $0xc0] sm:$0xff] }
 0x117   :  { %4869 = vmatprep.subr.msk.mxu0 %vm415_vm3, %v4191_v53  ;;  %4903 = vmatprep.subr.msk.mxu1 %vm415_vm3, %v4211_v54  ;;  %v4259_v48 = vld [vmem:[%s8694_s25 + $0xb0] sm:$0xff]  ;;  %v4260_v49 = vld [vmem:[%s8694_s25 + $0xb8] sm:$0xff]  ;;  %v4242_v57 = vld [vmem:[%s8693_s6 + $0xc8] sm:$0xff] }
 0x118   :  { %328 = vrot.lane.b32.xlu1 %v4179_v51, %s6726_s9  ;;  %v4245_v9 = vld [vmem:[%s8693_s6 + $0xe0] sm:$0xff]  ;;  %v4246_v10 = vld [vmem:[%s8693_s6 + $0xe8] sm:$0xff]  ;;  %v4248_v18 = vld [vmem:[%s8693_s6 + $0xf8] sm:$0xff] }
 0x119   :  { %326 = vrot.lane.b32.xlu0 %v4178_v52, %s6726_s9  ;;  %v5797_v52 = vpack.c.bf16 %v4240_v47, %v4239_v46  ;;  %v5809_v15 = vpack.c.bf16 %v4246_v10, %v4245_v9  ;;  %v4267_v19 = vld [vmem:[%s8694_s25 + $0xf0] sm:$0xff]  ;;  %v4249_v26 = vld [vmem:[%s8693_s6 + $0x100] sm:$0xf]  ;;  %v891_v34 = vld [vmem:[#allocation2 + $0x3a] sm:$0x1] }
 0x11a   :  { %4870 = vmatpush3.msk.msra.mxu0 %vm415_vm3, %v4191_v53  ;;  %4904 = vmatpush3.msk.msra.mxu1 %vm415_vm3, %v4211_v54  ;;  %v5817_v53 = vpack.c.bf16 %v4260_v49, %v4259_v48  ;;  %v4269_v27 = vld [vmem:[%s8694_s25 + $0x100] sm:$0xf]  ;;  %v1376_v36 = vld [vmem:[%s8666_s14 + $0x8] sm:$0xff]  ;;  %v1382_v46 = vld [vmem:[%s8666_s14 + $0x38] sm:$0xff] }
 0x11b   :  { %5758 = vmatprep.subr.bf16.mxu0 %v5757_v61  ;;  %5778 = vmatprep.subr.bf16.mxu1 %v5777_v62  ;;  %v1375_v35 = vld [vmem:[%s8666_s14] sm:$0xff]  ;;  %v1384_v49 = vld [vmem:[%s8666_s14 + $0x48] sm:$0xff] }
 0x11c   :  { %330 = vrot.lane.b32.xlu1 %v4180_v60, %s6726_s9  ;;  %v4262_v60 = vld [vmem:[%s8694_s25 + $0xc8] sm:$0xff]  ;;  %v1383_v48 = vld [vmem:[%s8666_s14 + $0x40] sm:$0xff] }
 0x11d   :  { %305 = vrot.lane.b32.xlu0 %v4176_v59, %s6727_s4  ;;  %v4261_v59 = vld [vmem:[%s8694_s25 + $0xc0] sm:$0xff] }
 0x172   :  { %v264_v63 = vpop.permute.xlu1 %263 }
 0x173   :  { %v237_v1 = vpop.permute.xlu0 %236 }
 0x174   :  { %249 = vst.msk [vmem:[#allocation2 + $0x1] sm:$0xff] %vm248_vm4, %v237_v1  ;;  %v4243_v1 = vld [vmem:[%s8693_s6 + $0xd0] sm:$0xff] }
 0x175   :  { %276 = vst.msk [vmem:[#allocation2 + $0x1] sm:$0xff] %vm275_vm5, %v264_v63  ;;  %v5821_v63 = vpack.c.bf16 %v4262_v60, %v4261_v59 }
 0x176   :  { %v266_v2 = vpop.permute.xlu1 %265 }
 0x177   :  { %v239_v3 = vpop.permute.xlu0 %238 }
 0x178   :  { %250 = vst.msk [vmem:[#allocation2 + $0x9] sm:$0xff] %vm248_vm4, %v239_v3  ;;  %v4263_v3 = vld [vmem:[%s8694_s25 + $0xd0] sm:$0xff] }
 0x179   :  { %277 = vst.msk [vmem:[#allocation2 + $0x9] sm:$0xff] %vm275_vm5, %v266_v2  ;;  %v4244_v2 = vld [vmem:[%s8693_s6 + $0xd8] sm:$0xff] }
 0x17a   :  { %v243_v4 = vpop.permute.xlu1 %242  ;;  %v5805_v7 = vpack.c.bf16 %v4244_v2, %v4243_v1 }
 0x17b   :  { %v241_v5 = vpop.permute.xlu0 %240  ;;  %253 = vst.msk [vmem:[#allocation2 + $0x19] sm:$0xf] %vm252_vm6, %v243_v4  ;;  %v4264_v4 = vld [vmem:[%s8694_s25 + $0xd8] sm:$0xff] }
 0x17c   :  { %251 = vst.msk [vmem:[#allocation2 + $0x11] sm:$0xff] %vm248_vm4, %v241_v5  ;;  %v370_v8 = vld [vmem:[#allocation2 + $0x1] sm:$0xff] }
 0x17d   :  { %4871 = vmatprep.mubr.msk.f32.mxu0 %vm390_vm7, %v370_v8  ;;  %4905 = vmatprep.mubr.msk.f32.mxu1 %vm390_vm7, %v370_v8  ;;  %v340_v58 = vld [vmem:[#allocation2] sm:$0xff]  ;;  %v5825_v8 = vpack.c.bf16 %v4264_v4, %v4263_v3 }
 0x17e   :  { %v300_v11 = vpop.permute.xlu1 %299 }
 0x17f   :  { %v268_v12 = vpop.permute.xlu0 %267  ;;  %311 = vst.msk [vmem:[#allocation2 + $0x1e] sm:$0xff] %vm248_vm4, %v300_v11  ;;  %v4265_v11 = vld [vmem:[%s8694_s25 + $0xe0] sm:$0xff] }
 0x180   :  { %278 = vst.msk [vmem:[#allocation2 + $0x11] sm:$0xff] %vm275_vm5, %v268_v12  ;;  %v371_v17 = vld [vmem:[#allocation2 + $0x9] sm:$0xff] }
 0x181   :  { %4872 = vmatmul.mubr.msk.f32.vlgmr.msra.gmra.mrb[0].mxu0 %vm390_vm7, %v371_v17  ;;  %4906 = vmatmul.mubr.msk.f32.vlgmr.msra.gmra.mrb[0].mxu1 %vm390_vm7, %v371_v17  ;;  %v4266_v12 = vld [vmem:[%s8694_s25 + $0xe8] sm:$0xff]  ;;  %v4247_v17 = vld [vmem:[%s8693_s6 + $0xf0] sm:$0xff] }
 0x182   :  { %5760 = vmatpush3.bf16.msra.mxu0 %v5757_v61  ;;  %5780 = vmatpush3.bf16.msra.mxu1 %v5777_v62  ;;  %v325_v20 = vpop.permute.xlu1 %324  ;;  %v341_v61 = vld [vmem:[#allocation2 + $0x8] sm:$0xff]  ;;  %v5801_v62 = vpack.c.bf16 %v4242_v57, %v4241_v56  ;;  %v5829_v16 = vpack.c.bf16 %v4266_v12, %v4265_v11 }
 0x183   :  { %v270_v21 = vpop.permute.xlu0 %269  ;;  %5762 = vmatprep.subr.bf16.mxu0 %v5761_v13  ;;  %5782 = vmatprep.subr.bf16.mxu1 %v5781_v14  ;;  %336 = vst.msk [vmem:[#allocation2 + $0x1e] sm:$0xff] %vm275_vm5, %v325_v20  ;;  %v4268_v20 = vld [vmem:[%s8694_s25 + $0xf8] sm:$0xff]  ;;  %v884_v25 = vld [vmem:[#allocation2 + $0x2] sm:$0xff] }
 0x184   :  { %280 = vst.msk [vmem:[#allocation2 + $0x19] sm:$0xf] %vm279_vm8, %v270_v21  ;;  %v5833_v24 = vpack.c.bf16 %v4268_v20, %v4267_v19 }
 0x186   :  { %5764 = vmatpush3.bf16.msra.mxu0 %v5761_v13  ;;  %5784 = vmatpush3.bf16.msra.mxu1 %v5781_v14  ;;  %v304_v28 = vpop.permute.xlu1 %303 }
 0x187   :  { %v302_v29 = vpop.permute.xlu0 %301  ;;  %v372_v30 = vld [vmem:[#allocation2 + $0x11] sm:$0xff]  ;;  %5766 = vmatprep.subr.bf16.mxu0 %v5765_v22  ;;  %5786 = vmatprep.subr.bf16.mxu1 %v5785_v23  ;;  %313 = vst.msk [vmem:[#allocation2 + $0x2e] sm:$0xff] %vm248_vm4, %v304_v28 }
 0x188   :  { %312 = vst.msk [vmem:[#allocation2 + $0x26] sm:$0xff] %vm248_vm4, %v302_v29  ;;  %4874 = vmatprep.mubr.msk.f32.mxu0 %vm390_vm7, %v372_v30  ;;  %4908 = vmatprep.mubr.msk.f32.mxu1 %vm390_vm7, %v372_v30  ;;  %v342_v5 = vld [vmem:[#allocation2 + $0x10] sm:$0xff]  ;;  %vm2326_vm4 = vcmask 1046528  }
 0x189   :  { %v885_v28 = vld [vmem:[#allocation2 + $0xa] sm:$0xff] }
 0x18a   :  { %5768 = vmatpush3.bf16.msra.mxu0 %v5765_v22  ;;  %5788 = vmatpush3.bf16.msra.mxu1 %v5785_v23  ;;  %v329_v37 = vpop.permute.xlu1 %328  ;;  %v5813_v23 = vpack.c.bf16 %v4248_v18, %v4247_v17 }
 0x18b   :  { %v327_v38 = vpop.permute.xlu0 %326  ;;  %v373_v39 = vld [vmem:[#allocation2 + $0x19] sm:$0xff]  ;;  %5770 = vmatprep.subr.bf16.mxu0 %v5769_v31  ;;  %5790 = vmatprep.subr.bf16.mxu1 %v5789_v32  ;;  %338 = vst.msk [vmem:[#allocation2 + $0x2e] sm:$0xff] %vm275_vm5, %v329_v37  ;;  %v7371_v37 = vpack.c.bf16 %v1376_v36, %v1375_v35 }
 0x18c   :  { %337 = vst.msk [vmem:[#allocation2 + $0x26] sm:$0xff] %vm275_vm5, %v327_v38  ;;  %4875 = vmatmul.mubr.msk.f32.gmra.mrb[2].mxu0 %vm390_vm7, %v373_v39  ;;  %4909 = vmatmul.mubr.msk.f32.gmra.mrb[2].mxu1 %vm390_vm7, %v373_v39  ;;  %v343_v6 = vld [vmem:[#allocation2 + $0x18] sm:$0xff]  ;;  %v6728_v38 = vmov 0.0|0.0   ;;  %v1377_v39 = vld [vmem:[%s8666_s14 + $0x10] sm:$0xff]  ;;  %vm2778_vm5 = vcmask 130048  }
 0x18d   :  { %v886_v29 = vld [vmem:[#allocation2 + $0x12] sm:$0xff]  ;;  %v887_v30 = vld [vmem:[#allocation2 + $0x1a] sm:$0xff] }
 0x18e   :  { %5772 = vmatpush3.bf16.msra.mxu0 %v5769_v31  ;;  %5792 = vmatpush3.bf16.msra.mxu1 %v5789_v32  ;;  %v331_v43 = vpop.permute.xlu1 %330 }
 0x18f   :  { %v306_v42 = vpop.permute.xlu0 %305  ;;  %5774 = vmatprep.subr.bf16.mxu0 %v5773_v40  ;;  %5794 = vmatprep.subr.bf16.mxu1 %v5793_v41 }
 0x190   :  { %314 = vst.msk [vmem:[#allocation2 + $0x36] sm:$0xf] %vm252_vm6, %v306_v42  ;;  %v1379_v42 = vld [vmem:[%s8666_s14 + $0x20] sm:$0xff]  ;;  %vm2869_vm6 = vcmask 915456  }
 0x191   :  { %339 = vst.msk [vmem:[#allocation2 + $0x36] sm:$0xf] %vm279_vm8, %v331_v43  ;;  %v1380_v43 = vld [vmem:[%s8666_s14 + $0x28] sm:$0xff]  ;;  %vm4138_vm8 = vcmask 123904  }
 0x192   :  { %5776 = vmatpush3.bf16.msra.mxu0 %v5773_v40  ;;  %5796 = vmatpush3.bf16.msra.mxu1 %v5793_v41  ;;  %v1378_v40 = vld [vmem:[%s8666_s14 + $0x18] sm:$0xff] }
 0x193   :  { %v374_v50 = vld [vmem:[#allocation2 + $0x21] sm:$0xff]  ;;  %v375_v51 = vld [vmem:[#allocation2 + $0x29] sm:$0xff]  ;;  %4937 = vmatprep.subr.msk.mxu0 %vm415_vm3, %v358_v44  ;;  %4971 = vmatprep.subr.msk.mxu1 %vm415_vm3, %v369_v45  ;;  %v7382_v41 = vpack.c.bf16 %v1378_v40, %v1377_v39 }
 0x194   :  { %4877 = vmatprep.mubr.msk.f32.mxu0 %vm390_vm7, %v374_v50  ;;  %4911 = vmatprep.mubr.msk.f32.mxu1 %vm390_vm7, %v374_v50  ;;  %v344_v13 = vld [vmem:[#allocation2 + $0x20] sm:$0xff]  ;;  %v345_v14 = vld [vmem:[#allocation2 + $0x28] sm:$0xff]  ;;  %v7412_v50 = vpack.c.bf16 %v1384_v49, %v1383_v48 }
 0x195   :  { %4878 = vmatmul.mubr.msk.f32.gmra.mrb[4].mxu0 %vm390_vm7, %v375_v51  ;;  %4912 = vmatmul.mubr.msk.f32.gmra.mrb[4].mxu1 %vm390_vm7, %v375_v51  ;;  %v888_v31 = vld [vmem:[#allocation2 + $0x22] sm:$0xff]  ;;  %v889_v32 = vld [vmem:[#allocation2 + $0x2a] sm:$0xff] }
 0x196   :  { %4938 = vmatpush3.msk.msra.mxu0 %vm415_vm3, %v358_v44  ;;  %4972 = vmatpush3.msk.msra.mxu1 %vm415_vm3, %v369_v45  ;;  %v7392_v44 = vpack.c.bf16 %v1380_v43, %v1379_v42  ;;  %v1381_v45 = vld [vmem:[%s8666_s14 + $0x30] sm:$0xff] }
 0x197   :  { %5798 = vmatprep.subr.bf16.mxu0 %v5797_v52  ;;  %5818 = vmatprep.subr.bf16.mxu1 %v5817_v53  ;;  %v7402_v47 = vpack.c.bf16 %v1382_v46, %v1381_v45  ;;  %v1385_v51 = vld [vmem:[%s8666_s14 + $0x50] sm:$0xff] }
 0x198   :  { %v376_v54 = vld [vmem:[#allocation2 + $0x31] sm:$0xff]  ;;  %v377_v55 = vld [vmem:[#allocation2 + $0x39] sm:$0x1] }
 0x199   :  { %4880 = vmatprep.mubr.msk.f32.mxu0 %vm390_vm7, %v376_v54  ;;  %4914 = vmatprep.mubr.msk.f32.mxu1 %vm390_vm7, %v376_v54  ;;  %v346_v21 = vld [vmem:[#allocation2 + $0x30] sm:$0xff]  ;;  %v347_v22 = vld [vmem:[#allocation2 + $0x38] sm:$0x1]  ;;  %v1387_v54 = vld [vmem:[%s8666_s14 + $0x60] sm:$0xff] }
 0x19a   :  { %4881 = vmatmul.mubr.msk.f32.gmra.mrb[6].mxu0 %vm390_vm7, %v377_v55  ;;  %4915 = vmatmul.mubr.msk.f32.gmra.mrb[6].mxu1 %vm390_vm7, %v377_v55  ;;  %v890_v33 = vld [vmem:[#allocation2 + $0x32] sm:$0xff]  ;;  %v1388_v55 = vld [vmem:[%s8666_s14 + $0x68] sm:$0xff] }
 0x19b   :  { %4939 = vmatprep.mubr.msk.f32.mxu0 %vm390_vm7, %v340_v58  ;;  %4973 = vmatprep.mubr.msk.f32.mxu1 %vm390_vm7, %v340_v58  ;;  %v7435_v56 = vpack.c.bf16 %v1388_v55, %v1387_v54 }
 0x19e   :  { %4940 = vmatmul.mubr.msk.f32.vlgmr.msra.gmra.mrb[0].mxu0 %vm390_vm7, %v341_v61  ;;  %4974 = vmatmul.mubr.msk.f32.vlgmr.msra.gmra.mrb[0].mxu1 %vm390_vm7, %v341_v61 }
 0x19f   :  { %5800 = vmatpush3.bf16.msra.mxu0 %v5797_v52  ;;  %5820 = vmatpush3.bf16.msra.mxu1 %v5817_v53  ;;  %v1386_v52 = vld [vmem:[%s8666_s14 + $0x58] sm:$0xff] }
 0x1a0   :  { %4942 = vmatprep.mubr.msk.f32.mxu0 %vm390_vm7, %v342_v5  ;;  %4976 = vmatprep.mubr.msk.f32.mxu1 %vm390_vm7, %v342_v5  ;;  %v7422_v53 = vpack.c.bf16 %v1386_v52, %v1385_v51 }
 0x1a1   :  { %5802 = vmatprep.subr.bf16.mxu0 %v5801_v62  ;;  %5822 = vmatprep.subr.bf16.mxu1 %v5821_v63 }
 0x1a2   :  { %4943 = vmatmul.mubr.msk.f32.gmra.mrb[2].mxu0 %vm390_vm7, %v343_v6  ;;  %4977 = vmatmul.mubr.msk.f32.gmra.mrb[2].mxu1 %vm390_vm7, %v343_v6 }
 0x1a3   :  { %5804 = vmatpush3.bf16.msra.mxu0 %v5801_v62  ;;  %5824 = vmatpush3.bf16.msra.mxu1 %v5821_v63 }
 0x1a4   :  { %4945 = vmatprep.mubr.msk.f32.mxu0 %vm390_vm7, %v344_v13  ;;  %4979 = vmatprep.mubr.msk.f32.mxu1 %vm390_vm7, %v344_v13 }
 0x1a5   :  { %5806 = vmatprep.subr.bf16.mxu0 %v5805_v7  ;;  %5826 = vmatprep.subr.bf16.mxu1 %v5825_v8 }
 0x1a6   :  { %4946 = vmatmul.mubr.msk.f32.gmra.mrb[4].mxu0 %vm390_vm7, %v345_v14  ;;  %4980 = vmatmul.mubr.msk.f32.gmra.mrb[4].mxu1 %vm390_vm7, %v345_v14 }
 0x1a7   :  { %5808 = vmatpush3.bf16.msra.mxu0 %v5805_v7  ;;  %5828 = vmatpush3.bf16.msra.mxu1 %v5825_v8 }
 0x1a8   :  { %4948 = vmatprep.mubr.msk.f32.mxu0 %vm390_vm7, %v346_v21  ;;  %4982 = vmatprep.mubr.msk.f32.mxu1 %vm390_vm7, %v346_v21 }
 0x1a9   :  { %5810 = vmatprep.subr.bf16.mxu0 %v5809_v15  ;;  %5830 = vmatprep.subr.bf16.mxu1 %v5829_v16 }
 0x1aa   :  { %4949 = vmatmul.mubr.msk.f32.gmra.mrb[6].mxu0 %vm390_vm7, %v347_v22  ;;  %4983 = vmatmul.mubr.msk.f32.gmra.mrb[6].mxu1 %vm390_vm7, %v347_v22 }
 0x1ab   :  { %5812 = vmatpush3.bf16.msra.mxu0 %v5809_v15  ;;  %5832 = vmatpush3.bf16.msra.mxu1 %v5829_v16 }
 0x1ac   :  { %5007 = vmatprep.mubr.msk.f32.mxu0 %vm390_vm7, %v884_v25  ;;  %5041 = vmatprep.mubr.msk.f32.mxu1 %vm390_vm7, %v884_v25 }
 0x1ad   :  { %5814 = vmatprep.subr.bf16.mxu0 %v5813_v23  ;;  %5834 = vmatprep.subr.bf16.mxu1 %v5833_v24 }
 0x1af   :  { %5816 = vmatpush3.bf16.msra.mxu0 %v5813_v23  ;;  %5836 = vmatpush3.bf16.msra.mxu1 %v5833_v24 }
 0x1b0   :  { %5005 = vmatprep.subr.msk.mxu0 %vm415_vm3, %v4249_v26  ;;  %5039 = vmatprep.subr.msk.mxu1 %vm415_vm3, %v4269_v27 }
 0x1b3   :  { %5006 = vmatpush3.msk.msra.mxu0 %vm415_vm3, %v4249_v26  ;;  %5040 = vmatpush3.msk.msra.mxu1 %vm415_vm3, %v4269_v27  ;;  %vm2318_vm3 = vcmask 913408  }
 0x1b4   :  { %5008 = vmatmul.mubr.msk.f32.vlgmr.msra.gmra.mrb[0].mxu0 %vm390_vm7, %v885_v28  ;;  %5042 = vmatmul.mubr.msk.f32.vlgmr.msra.gmra.mrb[0].mxu1 %vm390_vm7, %v885_v28 }
 0x1b5   :  { %5010 = vmatprep.mubr.msk.f32.mxu0 %vm390_vm7, %v886_v29  ;;  %5044 = vmatprep.mubr.msk.f32.mxu1 %vm390_vm7, %v886_v29 }
 0x1b6   :  { %5084 = vmatprep.subr.mxu1 %v6725_v0  ;;  %5837 = vmatprep.subr.bf16.mxu0 %v6728_v38 }
 0x1b7   :  { %5839 = vmatpush3.bf16.msra.mxu0 %v7371_v37 }
 0x1b8   :  { %5011 = vmatmul.mubr.msk.f32.gmra.mrb[2].mxu0 %vm390_vm7, %v887_v30  ;;  %5045 = vmatmul.mubr.msk.f32.gmra.mrb[2].mxu1 %vm390_vm7, %v887_v30 }
 0x1b9   :  { %5013 = vmatprep.mubr.msk.f32.mxu0 %vm390_vm7, %v888_v31  ;;  %5047 = vmatprep.mubr.msk.f32.mxu1 %vm390_vm7, %v888_v31 }
 0x1ba   :  { %5840 = vmatprep.subr.bf16.mxu0 %v6728_v38 }
 0x1bb   :  { %5842 = vmatpush3.bf16.msra.mxu0 %v7382_v41 }
 0x1bc   :  { %5014 = vmatmul.mubr.msk.f32.gmra.mrb[4].mxu0 %vm390_vm7, %v889_v32  ;;  %5048 = vmatmul.mubr.msk.f32.gmra.mrb[4].mxu1 %vm390_vm7, %v889_v32 }
 0x1bd   :  { %5016 = vmatprep.mubr.msk.f32.mxu0 %vm390_vm7, %v890_v33  ;;  %5050 = vmatprep.mubr.msk.f32.mxu1 %vm390_vm7, %v890_v33 }
 0x1be   :  { %5843 = vmatprep.subr.bf16.mxu0 %v6728_v38 }
 0x1bf   :  { %5845 = vmatpush3.bf16.msra.mxu0 %v7392_v44 }
 0x1c0   :  { %5017 = vmatmul.mubr.msk.f32.gmra.mrb[6].mxu0 %vm390_vm7, %v891_v34  ;;  %5051 = vmatmul.mubr.msk.f32.gmra.mrb[6].mxu1 %vm390_vm7, %v891_v34  ;;  %vm4064_vm7 = vcmask 261120  }
 0x1c1   :  { %5846 = vmatprep.subr.bf16.mxu0 %v6728_v38  ;;  %5081 = vmatprep.mubr.msk.f32.mxu0 %vm6729_vm9, %v6725_v0 }
 0x1c2   :  { %5086 = vmatprep.mubr.msk.f32.mxu1 %vm6729_vm9, %v6725_v0 }
 0x1c3   :  { %5848 = vmatpush3.bf16.msra.mxu0 %v7402_v47 }
 0x1c4   :  { %5849 = vmatprep.subr.bf16.mxu0 %v6728_v38 }
 0x1c7   :  { %5851 = vmatpush3.bf16.msra.mxu0 %v7412_v50 }
 0x1c8   :  { %5852 = vmatprep.subr.bf16.mxu0 %v6728_v38 }
 0x1cb   :  { %5854 = vmatpush3.bf16.msra.mxu0 %v7422_v53 }
 0x1cc   :  { %5855 = vmatprep.subr.bf16.mxu0 %v6728_v38 }
 0x1cf   :  { %5857 = vmatpush3.bf16.msra.mxu0 %v7435_v56 }
 0x1d0   :  { %5942 = vmatprep.subr.bf16.mxu0 %v6728_v38 }
 0x287   :  { %v7440_v57 = vpop.f32.mrb[0].mxu0  ;;  %v7442_v58 = vpop.f32.mrb[0].mxu1 }
 0x288   :  { %v1174_v59 = vsel %vm1172_vm10, %v7440_v57, 0.0  ;;  %v1188_v60 = vmul.f32 %v7440_v57, %v7440_v57  ;;  %v1274_v61 = vsel %vm1172_vm10, %v7442_v58, 0.0  ;;  %v1287_v62 = vmul.f32 %v7442_v58, %v7442_v58  ;;  %v7452_v63 = vpop.f32.mrb[1].mxu0  ;;  %v7454_v1 = vpop.f32.mrb[1].mxu1 }
 0x289   :  { %v1173_v2 = vsel %vm1172_vm10, %v7452_v63, 0.0  ;;  %v1187_v3 = vmul.f32 %v7452_v63, %v7452_v63  ;;  %v1273_v4 = vsel %vm1172_vm10, %v7454_v1, 0.0  ;;  %v1286_v5 = vmul.f32 %v7454_v1, %v7454_v1 }
 0x28a   :  { %v1192_v6 = vsel %vm1172_vm10, %v1188_v60, 0.0  ;;  %v1291_v7 = vsel %vm1172_vm10, %v1287_v62, 0.0  ;;  %v1175_v8 = vadd.f32 %v1174_v59, %v1173_v2  ;;  %v1275_v9 = vadd.f32 %v1274_v61, %v1273_v4 }
 0x28b   :  { %v1191_v10 = vsel %vm1172_vm10, %v1187_v3, 0.0  ;;  %v1290_v11 = vsel %vm1172_vm10, %v1286_v5, 0.0  ;;  %v7468_v12 = vpop.f32.mrb[2].mxu0  ;;  %v7470_v13 = vpop.f32.mrb[2].mxu1 }
 0x28c   :  { %v1193_v14 = vadd.f32 %v1192_v6, %v1191_v10  ;;  %v1292_v15 = vadd.f32 %v1291_v7, %v1290_v11  ;;  %v7472_v16 = vpop.f32.mrb[3].mxu0  ;;  %v7474_v17 = vpop.f32.mrb[3].mxu1  ;;  %v1190_v18 = vmul.f32 %v7468_v12, %v7468_v12  ;;  %v1179_v19 = vsel %vm1178_vm11, %v7468_v12, 0.0 }
 0x28d   :  { %v1176_v20 = vsel %vm1172_vm10, %v7472_v16, 0.0  ;;  %v1189_v21 = vmul.f32 %v7472_v16, %v7472_v16  ;;  %v1210_v22 = vrot.slane %v7468_v12, 5  ;;  %v7487_v23 = vmul.f32 %v7470_v13, %v7470_v13 }
 0x28e   :  { %v1177_v24 = vadd.f32 %v1176_v20, %v1175_v8  ;;  %v1276_v25 = vsel %vm1172_vm10, %v7474_v17, 0.0  ;;  %v1288_v30 = vmul.f32 %v7474_v17, %v7474_v17  ;;  %v1196_v34 = vsel %vm1178_vm11, %v1190_v18, 0.0 }
 0x28f   :  { %v7491_v26 = vpop.f32.mrb[4].mxu0  ;;  %v7493_v27 = vpop.f32.mrb[4].mxu1  ;;  %v1194_v28 = vsel %vm1172_vm10, %v1189_v21, 0.0  ;;  %v1277_v29 = vadd.f32 %v1276_v25, %v1275_v9  ;;  %v1278_v35 = vsel %vm1178_vm11, %v7470_v13, 0.0  ;;  %v1295_v52 = vsel %vm1178_vm11, %v7487_v23, 0.0 }
 0x290   :  { %v1213_v31 = vrot.slane %v7491_v26, 5  ;;  %v7499_v32 = vpop.f32.mrb[5].mxu0  ;;  %v7501_v33 = vpop.f32.mrb[5].mxu1  ;;  %v1180_v36 = vadd.f32 %v1179_v19, %v1177_v24  ;;  %v1195_v39 = vadd.f32 %v1194_v28, %v1193_v14  ;;  %v1293_v42 = vsel %vm1172_vm10, %v1288_v30, 0.0 }
 0x291   :  { %v1279_v40 = vadd.f32 %v1278_v35, %v1277_v29  ;;  %v7509_v43 = vmul.f32 %v7491_v26, %v7491_v26  ;;  %v1211_v45 = vrot.slane %v7499_v32, 5  ;;  %v1294_v48 = vadd.f32 %v1293_v42, %v1292_v15 }
 0x292   :  { %v1197_v46 = vadd.f32 %v1196_v34, %v1195_v39  ;;  %v1313_v54 = vrot.slane %v7493_v27, 5  ;;  %v1310_v62 = vrot.slane %v7470_v13, 5  ;;  %v1236_v6 = vmul.f32 %v7499_v32, %v7499_v32 }
 0x293   :  { %v7512_v49 = vpop.f32.mrb[6].mxu0  ;;  %v7514_v51 = vpop.f32.mrb[6].mxu1  ;;  %v1212_v55 = vsel %vm1209_vm12, %v1210_v22, %v1211_v45  ;;  %v1214_v59 = vsel %vm1209_vm12, %v1211_v45, %v1213_v31  ;;  %v1296_v2 = vadd.f32 %v1295_v52, %v1294_v48  ;;  %v1248_v4 = vrot.slane %v7509_v43, 5 }
 0x294   :  { %v7523_v60 = vpop.f32.mrb[7].mxu0  ;;  %v7525_v61 = vpop.f32.mrb[7].mxu1  ;;  %v1223_v3 = vsel %vm1172_vm10, %v1212_v55, 0.0  ;;  %v1224_v5 = vsel %vm1172_vm10, %v1214_v59, 0.0  ;;  %v1311_v7 = vrot.slane %v7501_v33, 5  ;;  %v1245_v8 = vrot.slane %v1190_v18, 5 }
 0x295   :  { %v1181_v9 = vrot.slane %v1180_v36, 4  ;;  %v1225_v10 = vadd.f32 %v1224_v5, %v1223_v3  ;;  %v1337_v11 = vmul.f32 %v7493_v27, %v7493_v27  ;;  %v1246_v14 = vrot.slane %v1236_v6, 5 }
 0x296   :  { %v1312_v15 = vsel %vm1209_vm12, %v1310_v62, %v1311_v7  ;;  %v1314_v19 = vsel %vm1209_vm12, %v1311_v7, %v1313_v54  ;;  %v1198_v18 = vrot.slane %v1197_v46, 4  ;;  %v1280_v28 = vrot.slane %v1279_v40, 4 }
 0x297   :  { %v1323_v20 = vsel %vm1172_vm10, %v1312_v15, 0.0  ;;  %v1247_v21 = vsel %vm1209_vm12, %v1245_v8, %v1246_v14  ;;  %v1249_v22 = vsel %vm1209_vm12, %v1246_v14, %v1248_v4  ;;  %v1324_v24 = vsel %vm1172_vm10, %v1314_v19, 0.0 }
 0x298   :  { %v1182_v25 = vadd.f32 %v1181_v9, %v1180_v36  ;;  %v1258_v29 = vsel %vm1172_vm10, %v1247_v21, 0.0  ;;  %v1348_v30 = vrot.slane %v1337_v11, 5  ;;  %v1259_v34 = vsel %vm1172_vm10, %v1249_v22, 0.0 }
 0x299   :  { %v1325_v35 = vadd.f32 %v1324_v24, %v1323_v20  ;;  %v1336_v39 = vmul.f32 %v7501_v33, %v7501_v33  ;;  %v1260_v42 = vadd.f32 %v1259_v34, %v1258_v29  ;;  %v1345_v43 = vrot.slane %v7487_v23, 5 }
 0x29a   :  { %v1217_v48 = vrot.slane %v7512_v49, 5  ;;  %v1239_v36 = vmul.f32 %v7512_v49, %v7512_v49  ;;  %v1183_v52 = vrot.slane %v1182_v25, 2  ;;  %v1199_v55 = vadd.f32 %v1198_v18, %v1197_v46 }
 0x29b   :  { %v1346_v45 = vrot.slane %v1336_v39, 5  ;;  %v1281_v59 = vadd.f32 %v1280_v28, %v1279_v40  ;;  %v1339_v5 = vmul.f32 %v7514_v51, %v7514_v51  ;;  %v1215_v6 = vrot.slane %v7523_v60, 5 }
 0x29c   :  { %v1252_v8 = vrot.slane %v1239_v36, 5  ;;  %v1317_v9 = vrot.slane %v7514_v51, 5  ;;  %v1238_v14 = vmul.f32 %v7523_v60, %v7523_v60  ;;  %v1297_v15 = vrot.slane %v1296_v2, 4 }
 0x29d   :  { %v1347_v62 = vsel %vm1209_vm12, %v1345_v43, %v1346_v45  ;;  %v1349_v3 = vsel %vm1209_vm12, %v1346_v45, %v1348_v30  ;;  %v1216_v40 = vsel %vm1209_vm12, %v1213_v31, %v1215_v6  ;;  %v1218_v46 = vsel %vm1209_vm12, %v1215_v6, %v1217_v48 }
 0x29e   :  { %v1358_v23 = vsel %vm1172_vm10, %v1347_v62, 0.0  ;;  %v1359_v7 = vsel %vm1172_vm10, %v1349_v3, 0.0  ;;  %v1226_v19 = vsel %vm1172_vm10, %v1216_v40, 0.0  ;;  %v1315_v20 = vrot.slane %v7525_v61, 5 }
 0x29f   :  { %v1360_v11 = vadd.f32 %v1359_v7, %v1358_v23  ;;  %v1338_v21 = vmul.f32 %v7525_v61, %v7525_v61  ;;  %v1282_v22 = vrot.slane %v1281_v59, 2  ;;  %v1352_v24 = vrot.slane %v1339_v5, 5 }
 0x2a0   :  { %v1227_v18 = vadd.f32 %v1226_v19, %v1225_v10  ;;  %v1250_v28 = vrot.slane %v1238_v14, 5  ;;  %v1228_v29 = vsel %vm1178_vm11, %v1218_v46, 0.0  ;;  %v1316_v31 = vsel %vm1209_vm12, %v1313_v54, %v1315_v20 }
 0x2a1   :  { %v1318_v34 = vsel %vm1209_vm12, %v1315_v20, %v1317_v9  ;;  %v1350_v39 = vrot.slane %v1338_v21, 5  ;;  %v1326_v36 = vsel %vm1172_vm10, %v1316_v31, 0.0  ;;  %v1298_v62 = vadd.f32 %v1297_v15, %v1296_v2 }
 0x2a2   :  { %v1229_v43 = vadd.f32 %v1228_v29, %v1227_v18  ;;  %v1251_v45 = vsel %vm1209_vm12, %v1248_v4, %v1250_v28  ;;  %v1253_v48 = vsel %vm1209_vm12, %v1250_v28, %v1252_v8  ;;  %v1327_v5 = vadd.f32 %v1326_v36, %v1325_v35 }
 0x2a3   :  { %v1261_v3 = vsel %vm1172_vm10, %v1251_v45, 0.0  ;;  %v1328_v10 = vsel %vm1178_vm11, %v1318_v34, 0.0  ;;  %v1351_v54 = vsel %vm1209_vm12, %v1348_v30, %v1350_v39  ;;  %v1353_v7 = vsel %vm1209_vm12, %v1350_v39, %v1352_v24 }
 0x2a4   :  { %v1230_v6 = vrot.slane %v1229_v43, 4  ;;  %v1262_v23 = vadd.f32 %v1261_v3, %v1260_v42  ;;  %v1200_v9 = vrot.slane %v1199_v55, 2  ;;  %v1263_v40 = vsel %vm1178_vm11, %v1253_v48, 0.0 }
 0x2a5   :  { %v1329_v4 = vadd.f32 %v1328_v10, %v1327_v5  ;;  %v1361_v8 = vsel %vm1172_vm10, %v1351_v54, 0.0  ;;  %v1184_v46 = vadd.f32 %v1183_v52, %v1182_v25  ;;  %v1283_v19 = vadd.f32 %v1282_v22, %v1281_v59 }
 0x2a6   :  { %v1231_v14 = vadd.f32 %v1230_v6, %v1229_v43  ;;  %v1264_v2 = vadd.f32 %v1263_v40, %v1262_v23  ;;  %v1362_v15 = vadd.f32 %v1361_v8, %v1360_v11  ;;  %v1363_v20 = vsel %vm1178_vm11, %v1353_v7, 0.0 }
 0x2a7   :  { %v1330_v35 = vrot.slane %v1329_v4, 4  ;;  %v1299_v21 = vrot.slane %v1298_v62, 2  ;;  %v1201_v28 = vadd.f32 %v1200_v9, %v1199_v55  ;;  %v1185_v29 = vrot.slane %v1184_v46, 1 }
 0x2a8   :  { %v1232_v42 = vrot.slane %v1231_v14, 2  ;;  %v1265_v18 = vrot.slane %v1264_v2, 4  ;;  %v1364_v30 = vadd.f32 %v1363_v20, %v1362_v15  ;;  %v1284_v45 = vrot.slane %v1283_v19, 1 }
 0x2a9   :  { %v1331_v24 = vadd.f32 %v1330_v35, %v1329_v4  ;;  %v1300_v25 = vadd.f32 %v1299_v21, %v1298_v62  ;;  %v1202_v59 = vrot.slane %v1201_v28, 1  ;;  %v1186_v36 = vadd.f32 %v1185_v29, %v1184_v46 }
 0x2aa   :  { %v1233_v31 = vadd.f32 %v1232_v42, %v1231_v14  ;;  %v1266_v34 = vadd.f32 %v1265_v18, %v1264_v2  ;;  %v1365_v39 = vrot.slane %v1364_v30, 4  ;;  %v1285_v6 = vadd.f32 %v1284_v45, %v1283_v19 }
 0x2ab   :  { %v1332_v48 = vrot.slane %v1331_v24, 2  ;;  %v1301_v55 = vrot.slane %v1300_v25, 1  ;;  %v1203_v40 = vadd.f32 %v1202_v59, %v1201_v28  ;;  %v1476_v29 = vlaneseq }
 0x2ac   :  { %v1234_v52 = vrot.slane %v1233_v31, 1  ;;  %v1267_v43 = vrot.slane %v1266_v34, 2  ;;  %v1366_v11 = vadd.f32 %v1365_v39, %v1364_v30 }
 0x2ad   :  { %v1333_v22 = vadd.f32 %v1332_v48, %v1331_v24  ;;  %v1302_v2 = vadd.f32 %v1301_v55, %v1300_v25  ;;  %v6730_v24 = vmov 1966171168   ;;  %v1469_v25 = vld [vmem:[#allocation8] sm:$0x1]  ;;  %v4283_v55 = vld [vmem:[%s8695_s21 + $0x80] sm:$0xff] }
 0x2ae   :  { %v1235_v3 = vadd.f32 %v1234_v52, %v1233_v31  ;;  %v1268_v5 = vadd.f32 %v1267_v43, %v1266_v34  ;;  %v1367_v10 = vrot.slane %v1366_v11, 2 }
 0x2af   :  { %v1334_v23 = vrot.slane %v1333_v22, 1 }
 0x2b0   :  { %v1269_v54 = vrot.slane %v1268_v5, 1  ;;  %v1368_v7 = vadd.f32 %v1367_v10, %v1366_v11  ;;  %v1271_v9 = vadd.f32 %v1235_v3, %v1186_v36  ;;  %v1490_v11 = vld [vmem:[#allocation11] sm:$0x1]  ;;  %v4281_v10 = vld [vmem:[%s8695_s21 + $0x70] sm:$0xff] }
 0x2b1   :  { %v1335_v62 = vadd.f32 %v1334_v23, %v1333_v22 }
 0x2b2   :  { %v1270_v4 = vadd.f32 %v1269_v54, %v1268_v5  ;;  %v1369_v8 = vrot.slane %v1368_v7, 1  ;;  %v1303_v14 = vadd.f32 %v1285_v6, %v1271_v9  ;;  %v4282_v6 = vld [vmem:[%s8695_s21 + $0x78] sm:$0xff]  ;;  %v4284_v54 = vld [vmem:[%s8695_s21 + $0x88] sm:$0xff]  ;;  %v4285_v9 = vld [vmem:[%s8695_s21 + $0x90] sm:$0xff] }
 0x2b3   :  { %v5858_v23 = vpack.c.bf16 %v4282_v6, %v4281_v10 }
 0x2b4   :  { %v1272_v15 = vadd.f32 %v1270_v4, %v1203_v40  ;;  %v1371_v35 = vadd.f32 %v1335_v62, %v1303_v14  ;;  %v1370_v21 = vadd.f32 %v1369_v8, %v1368_v7  ;;  %v5862_v7 = vpack.c.bf16 %v4284_v54, %v4283_v55  ;;  %v4286_v40 = vld [vmem:[%s8695_s21 + $0x98] sm:$0xff]  ;;  %v4287_v8 = vld [vmem:[%s8695_s21 + $0xa0] sm:$0xff]  ;;  %v4288_v14 = vld [vmem:[%s8695_s21 + $0xa8] sm:$0xff] }
 0x2b5   :  { %v5866_v4 = vpack.c.bf16 %v4286_v40, %v4285_v9  ;;  %v5870_v62 = vpack.c.bf16 %v4288_v14, %v4287_v8 }
 0x2b6   :  { %v1304_v20 = vadd.f32 %v1302_v2, %v1272_v15  ;;  %v4289_v2 = vld [vmem:[%s8695_s21 + $0xb0] sm:$0xff]  ;;  %v4290_v15 = vld [vmem:[%s8695_s21 + $0xb8] sm:$0xff] }
 0x2b8   :  { %v1372_v46 = vadd.f32 %v1370_v21, %v1304_v20  ;;  %v4291_v20 = vld [vmem:[%s8695_s21 + $0xc0] sm:$0xff]  ;;  %v4292_v21 = vld [vmem:[%s8695_s21 + $0xc8] sm:$0xff] }
 0x2ba   :  { %v1374_v42 = vsel %vm1373_vm13, %v1371_v35, %v1372_v46  ;;  %v5874_v35 = vpack.c.bf16 %v4290_v15, %v4289_v2  ;;  %v5878_v46 = vpack.c.bf16 %v4292_v21, %v4291_v20 }
 0x2bb   :  { %5082 = vmatmul.mubr.msk.f32.vlgmr.msra.gmra.mrb[8].mxu0 %vm1172_vm10, %v1374_v42  ;;  %v4293_v42 = vld [vmem:[%s8695_s21 + $0xd0] sm:$0xff] }
 0x2bc   :  { %5944 = vmatpush3.bf16.msra.mxu0 %v7371_v37  ;;  %5219 = vmatprep.mubr.msk.f32.mxu0 %vm6729_vm9, %v6725_v0  ;;  %v7599_v37 = vld [vmem:[#allocation22] sm:$0xff] }
 0x2bd   :  { %5945 = vmatprep.subr.bf16.mxu0 %v6728_v38  ;;  %5085 = vmatpush3.msra.mxu1 %v7599_v37 }
 0x2be   :  { %5859 = vmatprep.subr.bf16.mxu1 %v5858_v23 }
 0x2c0   :  { %5947 = vmatpush3.bf16.msra.mxu0 %v7382_v41 }
 0x2c1   :  { %5948 = vmatprep.subr.bf16.mxu0 %v6728_v38 }
 0x2c4   :  { %5950 = vmatpush3.bf16.msra.mxu0 %v7392_v44 }
 0x2c5   :  { %5951 = vmatprep.subr.bf16.mxu0 %v6728_v38 }
 0x2c8   :  { %5953 = vmatpush3.bf16.msra.mxu0 %v7402_v47 }
 0x2c9   :  { %5954 = vmatprep.subr.bf16.mxu0 %v6728_v38 }
 0x2cc   :  { %5956 = vmatpush3.bf16.msra.mxu0 %v7412_v50 }
 0x2cd   :  { %5957 = vmatprep.subr.bf16.mxu0 %v6728_v38 }
 0x2d0   :  { %5959 = vmatpush3.bf16.msra.mxu0 %v7422_v53  ;;  %v1474_v53 = vunpack.c.l.s4 %v6730_v24 }
 0x2d1   :  { %5960 = vmatprep.subr.bf16.mxu0 %v6728_v38 }
 0x2d2   :  { %v1475_v31 = vunpack.c.0.s8 %v1474_v53 }
 0x2d4   :  { %5962 = vmatpush3.bf16.msra.mxu0 %v7435_v56  ;;  %v7602_v56 = vshrl.u32 %v1476_v29, 7 }
 0x2d5   :  { %5222 = vmatprep.subr.mxu0 %v6725_v0 }
 0x2d6   :  { %v7605_v34 = vsub.s32 %v1475_v31, %v7602_v56  ;;  %v7610_v22 = vsub.s32 0, %v7602_v56 }
 0x38e   :  { %v1458_v41 = vpop.f32.mrb[8].mxu0 }
 0x38f   :  { %v1462_v44 = vmul.f32 0.0006377551, %v1458_v41  ;;  %v5083_v47 = vpop.f32.mrb[9].mxu0  ;;  %v4294_v41 = vld [vmem:[%s8695_s21 + $0xd8] sm:$0xff] }
 0x390   :  { %v1681_v47 = vld [vmem:[%s8695_s21] sm:$0xff] }
 0x391   :  { %v1463_v19 = vmul.f32 %v1462_v44, %v1462_v44 }
 0x393   :  { %v1465_v18 = vrot.slane %v1463_v19, 7  ;;  %v1682_v19 = vld [vmem:[%s8695_s21 + $0x8] sm:$0xff] }
 0x395   :  { %v1467_v50 = vsub.f32 %v1462_v44, %v1465_v18  ;;  %v7679_v18 = vpack.c.bf16 %v1682_v19, %v1681_v47 }
 0x397   :  { %v1468_v30 = vmax.f32 %v1467_v50, 0.0  ;;  %v7683_v50 = vsub.s32 1, %v7602_v56 }
 0x399   :  { %v1470_v28 = vadd.f32 1e-05, %v1468_v30 }
 0x39b   :  { %6401 = vrsqrt.f32 %v1470_v28 }
 0x3a5   :  { %v6402_v39 = vpop.eup %6401 }
 0x3a6   :  { %v1479_v45 = vrot.slane %v6402_v39, %v7605_v34 }
 0x3a8   :  { %v1480_v48 = vcombine.high %v1479_v45, %v1479_v45 }
 0x3aa   :  { %v1487_v52 = vrot.slane %v1480_v48, %v7605_v34 }
 0x3ac   :  { %v1489_v43 = vmul.f32 %v1487_v52, %v1469_v25 }
 0x3ae   :  { %v1491_v59 = vmul.f32 %v1489_v43, %v1462_v44  ;;  %v5882_v44 = vpack.c.bf16 %v4294_v41, %v4293_v42 }
 0x3b0   :  { %v1492_v36 = vsub.f32 %v1490_v11, %v1491_v59 }
 0x3b2   :  { %v1497_v3 = vrot.slane %v1492_v36, %v7610_v22 }
 0x3b4   :  { %v1499_v5 = vsel %vm1373_vm13, %v1489_v43, %v1497_v3 }
 0x3b5   :  { %5087 = vmatmul.mubr.msk.f32.vlgmr.msra.gmra.mrb[8].mxu1 %vm1501_vm14, %v1499_v5 }
 0x3b6   :  { %5861 = vmatpush3.bf16.msra.mxu1 %v5858_v23 }
 0x3b7   :  { %5863 = vmatprep.subr.bf16.mxu1 %v5862_v7 }
 0x3ba   :  { %5865 = vmatpush3.bf16.msra.mxu1 %v5862_v7 }
 0x3bb   :  { %5867 = vmatprep.subr.bf16.mxu1 %v5866_v4 }
 0x3be   :  { %5869 = vmatpush3.bf16.msra.mxu1 %v5866_v4 }
 0x3bf   :  { %5871 = vmatprep.subr.bf16.mxu1 %v5870_v62 }
 0x3c2   :  { %5873 = vmatpush3.bf16.msra.mxu1 %v5870_v62 }
 0x3c3   :  { %5875 = vmatprep.subr.bf16.mxu1 %v5874_v35 }
 0x3c6   :  { %5877 = vmatpush3.bf16.msra.mxu1 %v5874_v35 }
 0x3c7   :  { %5879 = vmatprep.subr.bf16.mxu1 %v5878_v46 }
 0x3ca   :  { %5881 = vmatpush3.bf16.msra.mxu1 %v5878_v46 }
 0x3cb   :  { %5883 = vmatprep.subr.bf16.mxu1 %v5882_v44 }
 0x3ce   :  { %5885 = vmatpush3.bf16.msra.mxu1 %v5882_v44 }
 0x3cf   :  { %5887 = vmatprep.subr.bf16.mxu1 %v7679_v18 }
 0x488   :  { %v1571_v30 = vpop.f32.mrb[8].mxu1 }
 0x489   :  { %v1578_v28 = vrot.slane %v1571_v30, %v7610_v22  ;;  %v5088_v24 = vpop.f32.mrb[9].mxu1  ;;  %v1590_v53 = vrot.slane %v1571_v30, %v7683_v50 }
 0x48b   :  { %v1579_v29 = vmul.f32 %v1578_v28, %v7452_v63  ;;  %v1580_v31 = vmul.f32 %v7440_v57, %v1578_v28  ;;  %v1607_v39 = vmul.f32 %v1578_v28, %v7454_v1  ;;  %v1608_v45 = vmul.f32 %v7442_v58, %v1578_v28 }
 0x48c   :  { %v1581_v48 = vmul.f32 %v1578_v28, %v7472_v16  ;;  %v1582_v25 = vmul.f32 %v7468_v12, %v1578_v28  ;;  %v1583_v56 = vmul.f32 %v1578_v28, %v7499_v32  ;;  %v1584_v52 = vmul.f32 %v7491_v26, %v1578_v28 }
 0x48d   :  { %v1591_v43 = vadd.f32 %v1590_v53, %v1579_v29  ;;  %v1592_v11 = vadd.f32 %v1590_v53, %v1580_v31  ;;  %v1615_v59 = vadd.f32 %v1607_v39, %v1590_v53  ;;  %v1616_v36 = vadd.f32 %v1608_v45, %v1590_v53 }
 0x48e   :  { %v1593_v3 = vadd.f32 %v1590_v53, %v1581_v48  ;;  %v1594_v63 = vadd.f32 %v1590_v53, %v1582_v25  ;;  %v1595_v5 = vadd.f32 %v1590_v53, %v1583_v56  ;;  %v1596_v57 = vadd.f32 %v1590_v53, %v1584_v52 }
 0x48f   :  { %v1599_v1 = vmax.f32 %v1591_v43, 0.0  ;;  %v1600_v10 = vmax.f32 %v1592_v11, 0.0  ;;  %v1623_v58 = vmax.f32 %v1615_v59, 0.0  ;;  %v1624_v6 = vmax.f32 %v1616_v36, 0.0 }
 0x490   :  { %v1601_v16 = vmax.f32 %v1593_v3, 0.0  ;;  %v1602_v23 = vmax.f32 %v1594_v63, 0.0  ;;  %v1603_v12 = vmax.f32 %v1595_v5, 0.0  ;;  %v1604_v55 = vmax.f32 %v1596_v57, 0.0  ;;  %v1683_v3 = vld [vmem:[%s8695_s21 + $0x10] sm:$0xff]  ;;  %v1684_v63 = vld [vmem:[%s8695_s21 + $0x18] sm:$0xff] }
 0x491   :  { %v1631_v32 = vmax.f32 %v1599_v1, %v1623_v58  ;;  %v1632_v54 = vmax.f32 %v1600_v10, %v1624_v6  ;;  %v1609_v26 = vmul.f32 %v1578_v28, %v7474_v17  ;;  %v1610_v7 = vmul.f32 %v7470_v13, %v1578_v28  ;;  %v1685_v1 = vld [vmem:[%s8695_s21 + $0x20] sm:$0xff]  ;;  %v1686_v10 = vld [vmem:[%s8695_s21 + $0x28] sm:$0xff] }
 0x492   :  { %v1611_v9 = vmul.f32 %v1578_v28, %v7501_v33  ;;  %v1612_v40 = vmul.f32 %v7493_v27, %v1578_v28  ;;  %v1585_v4 = vmul.f32 %v1578_v28, %v7523_v60  ;;  %v1586_v8 = vmul.f32 %v7512_v49, %v1578_v28 }
 0x493   :  { %1639 = vst.msk [vmem:[#allocation3] sm:$0xff] %vm1172_vm10, %v1631_v32  ;;  %1640 = vst.msk [vmem:[#allocation3 + $0x8] sm:$0xff] %vm1172_vm10, %v1632_v54  ;;  %v1617_v14 = vadd.f32 %v1609_v26, %v1590_v53  ;;  %v1618_v62 = vadd.f32 %v1610_v7, %v1590_v53  ;;  %v1613_v2 = vmul.f32 %v1578_v28, %v7525_v61  ;;  %v1689_v32 = vld [vmem:[%s8695_s21 + $0x40] sm:$0xff]  ;;  %v1690_v54 = vld [vmem:[%s8695_s21 + $0x48] sm:$0xff] }
 0x494   :  { %v1614_v17 = vmul.f32 %v7514_v51, %v1578_v28  ;;  %v1619_v15 = vadd.f32 %v1611_v9, %v1590_v53  ;;  %v1620_v13 = vadd.f32 %v1612_v40, %v1590_v53  ;;  %v1597_v35 = vadd.f32 %v1590_v53, %v1585_v4  ;;  %v1691_v7 = vld [vmem:[%s8695_s21 + $0x50] sm:$0xff]  ;;  %v1692_v9 = vld [vmem:[%s8695_s21 + $0x58] sm:$0xff]  ;;  %v1693_v4 = vld [vmem:[%s8695_s21 + $0x60] sm:$0xff] }
 0x495   :  { %v1598_v33 = vadd.f32 %v1590_v53, %v1586_v8  ;;  %v1625_v20 = vmax.f32 %v1617_v14, 0.0  ;;  %v1626_v27 = vmax.f32 %v1618_v62, 0.0  ;;  %v1621_v21 = vadd.f32 %v1613_v2, %v1590_v53  ;;  %v1694_v8 = vld [vmem:[%s8695_s21 + $0x68] sm:$0xff]  ;;  %v4303_v62 = vld [vmem:[%s8695_s21 + $0xe0] sm:$0xff] }
 0x496   :  { %v1622_v60 = vadd.f32 %v1614_v17, %v1590_v53  ;;  %v1627_v46 = vmax.f32 %v1619_v15, 0.0  ;;  %v1628_v49 = vmax.f32 %v1620_v13, 0.0  ;;  %v1605_v42 = vmax.f32 %v1597_v35, 0.0  ;;  %v4304_v2 = vld [vmem:[%s8695_s21 + $0xe8] sm:$0xff]  ;;  %v4305_v15 = vld [vmem:[%s8695_s21 + $0xf0] sm:$0xff]  ;;  %v4306_v13 = vld [vmem:[%s8695_s21 + $0xf8] sm:$0xff] }
 0x497   :  { %v1606_v41 = vmax.f32 %v1598_v33, 0.0  ;;  %v1633_v44 = vmax.f32 %v1601_v16, %v1625_v20  ;;  %v1634_v47 = vmax.f32 %v1602_v23, %v1626_v27  ;;  %v1629_v19 = vmax.f32 %v1621_v21, 0.0  ;;  %v1687_v23 = vld [vmem:[%s8695_s21 + $0x30] sm:$0xff]  ;;  %v4307_v20 = vld [vmem:[%s8695_s21 + $0x100] sm:$0xff]  ;;  %v4308_v27 = vld [vmem:[%s8695_s21 + $0x108] sm:$0xff] }
 0x498   :  { %v1630_v30 = vmax.f32 %v1622_v60, 0.0  ;;  %v1635_v24 = vmax.f32 %v1603_v12, %v1627_v46  ;;  %v1636_v61 = vmax.f32 %v1604_v55, %v1628_v49  ;;  %v5890_v5 = vpack.c.bf16 %v1684_v63, %v1683_v3  ;;  %v1688_v12 = vld [vmem:[%s8695_s21 + $0x38] sm:$0xff]  ;;  %v4309_v49 = vld [vmem:[%s8695_s21 + $0x110] sm:$0xff] }
 0x499   :  { %1641 = vst.msk [vmem:[#allocation3 + $0x10] sm:$0xff] %vm1172_vm10, %v1633_v44  ;;  %v1637_v51 = vmax.f32 %v1605_v42, %v1629_v19  ;;  %v5894_v6 = vpack.c.bf16 %v1686_v10, %v1685_v1  ;;  %v5902_v26 = vpack.c.bf16 %v1690_v54, %v1689_v32  ;;  %v5906_v40 = vpack.c.bf16 %v1692_v9, %v1691_v7  ;;  %v4310_v42 = vld [vmem:[%s8695_s21 + $0x118] sm:$0xff]  ;;  %v4312_v19 = vld [vmem:[%s8695_s21 + $0x128] sm:$0xff] }
 0x49a   :  { %1642 = vst.msk [vmem:[#allocation3 + $0x18] sm:$0xf] %vm1178_vm11, %v1634_v47  ;;  %v1638_v28 = vmax.f32 %v1606_v41, %v1630_v30  ;;  %v1653_v29 = vld [vmem:[#allocation3] ss:$2 sm:$0xff]  ;;  %v1657_v53 = vld [vmem:[#allocation3 + $0x1] ss:$2 sm:$0xff]  ;;  %v5910_v14 = vpack.c.bf16 %v1694_v8, %v1693_v4  ;;  %v5914_v17 = vpack.c.bf16 %v4304_v2, %v4303_v62  ;;  %v5918_v35 = vpack.c.bf16 %v4306_v13, %v4305_v15 }
 0x49b   :  { %1644 = vst.msk [vmem:[#allocation3 + $0x1b] sm:$0xe0] %vm1643_vm0, %v1634_v47  ;;  %v1660_v31 = vmax.f32 %v1653_v29, %v1657_v53  ;;  %v5922_v60 = vpack.c.bf16 %v4308_v27, %v4307_v20  ;;  %v5926_v44 = vpack.c.bf16 %v4310_v42, %v4309_v49  ;;  %v4311_v47 = vld [vmem:[%s8695_s21 + $0x120] sm:$0xff]  ;;  %v4316_v29 = vld [vmem:[%s8695_s21 + $0x148] sm:$0xff] }
 0x49c   :  { %1645 = vst.msk [vmem:[#allocation3 + $0x23] sm:$0xff] %vm1172_vm10, %v1635_v24  ;;  %1646 = vst.msk [vmem:[#allocation3 + $0x2b] sm:$0xff] %vm1172_vm10, %v1636_v61  ;;  %v5930_v30 = vpack.c.bf16 %v4312_v19, %v4311_v47  ;;  %v4313_v24 = vld [vmem:[%s8695_s21 + $0x130] sm:$0xff]  ;;  %v4314_v61 = vld [vmem:[%s8695_s21 + $0x138] sm:$0xff] }
 0x49d   :  { %1647 = vst.msk [vmem:[#allocation3 + $0x33] sm:$0xff] %vm1172_vm10, %v1637_v51  ;;  %1662 = vst.msk [vmem:[#allocation4 + $0x1] sm:$0xff] %vm1172_vm10, %v1660_v31  ;;  %v5934_v51 = vpack.c.bf16 %v4314_v61, %v4313_v24 }
 0x49e   :  { %1649 = vst.msk [vmem:[#allocation3 + $0x3b] sm:$0x1] %vm1648_vm15, %v1638_v28  ;;  %v4315_v28 = vld [vmem:[%s8695_s21 + $0x140] sm:$0xff] }
 0x49f   :  { %v5938_v53 = vpack.c.bf16 %v4316_v29, %v4315_v28 }
 0x4a1   :  { %v1655_v39 = vld [vmem:[#allocation3 + $0x10] ss:$2 sm:$0x3f]  ;;  %v1659_v45 = vld [vmem:[#allocation3 + $0x11] ss:$2 sm:$0x3f] }
 0x4a2   :  { %v1661_v48 = vmax.f32 %v1655_v39, %v1659_v45 }
 0x4a3   :  { %v1666_v25 = vld [vmem:[#allocation3 + $0x20] ss:$2 sm:$0xff]  ;;  %v1670_v56 = vld [vmem:[#allocation3 + $0x21] ss:$2 sm:$0xff] }
 0x4a4   :  { %v1673_v52 = vmax.f32 %v1666_v25, %v1670_v56  ;;  %v1668_v43 = vld [vmem:[#allocation3 + $0x30] ss:$2 sm:$0x3f]  ;;  %1664 = vst.msk [vmem:[#allocation4 + $0x9] sm:$0x3f] %vm1663_vm1, %v1661_v48  ;;  %v1695_v36 = vld [vmem:[#allocation4 + $0x1] sm:$0xff] }
 0x4a5   :  { %v1672_v11 = vld [vmem:[#allocation3 + $0x31] ss:$2 sm:$0x3f]  ;;  %5117 = vmatprep.mubr.msk.f32.mxu1 %vm1172_vm10, %v1695_v36  ;;  %v1677_v55 = vld [vmem:[#allocation4] sm:$0xff] }
 0x4a6   :  { %v1674_v59 = vmax.f32 %v1668_v43, %v1672_v11  ;;  %1675 = vst.msk [vmem:[#allocation4 + $0x10] sm:$0xff] %vm1172_vm10, %v1673_v52 }
 0x4a8   :  { %1676 = vst.msk [vmem:[#allocation4 + $0x18] sm:$0x3f] %vm1663_vm1, %v1674_v59 }
 0x4ab   :  { %v1678_v33 = vld [vmem:[#allocation4 + $0x8] sm:$0xff] }
 0x4ac   :  { %v1908_v41 = vld [vmem:[#allocation4 + $0x2] sm:$0xff] }
 0x4ad   :  { %v1696_v57 = vld [vmem:[#allocation4 + $0x9] sm:$0xff] }
 0x4ae   :  { %5118 = vmatmul.mubr.msk.f32.vlgmr.msra.gmra.mrb[10].mxu1 %vm1172_vm10, %v1696_v57  ;;  %v1679_v21 = vld [vmem:[#allocation4 + $0x10] sm:$0xff] }
 0x4af   :  { %v1697_v58 = vld [vmem:[#allocation4 + $0x11] sm:$0xff]  ;;  %5889 = vmatpush3.bf16.msra.mxu1 %v7679_v18  ;;  %v1698_v16 = vld [vmem:[#allocation4 + $0x19] sm:$0x1f]  ;;  %v5898_v18 = vpack.c.bf16 %v1688_v12, %v1687_v23 }
 0x4b0   :  { %5120 = vmatprep.mubr.msk.f32.mxu1 %vm1172_vm10, %v1697_v58  ;;  %5891 = vmatprep.subr.bf16.mxu1 %v5890_v5  ;;  %v1680_v46 = vld [vmem:[#allocation4 + $0x18] sm:$0x1f]  ;;  %v1909_v31 = vld [vmem:[#allocation4 + $0xa] sm:$0xff] }
 0x4b1   :  { %v1910_v39 = vld [vmem:[#allocation4 + $0x12] sm:$0xff]  ;;  %v1911_v45 = vld [vmem:[#allocation4 + $0x1a] sm:$0x1f] }
 0x4b2   :  { %5121 = vmatmul.mubr.msk.f32.gmra.mrb[12].mxu1 %vm1172_vm10, %v1698_v16 }
 0x4b3   :  { %5893 = vmatpush3.bf16.msra.mxu1 %v5890_v5  ;;  %5151 = vmatprep.mubr.msk.f32.mxu1 %vm1172_vm10, %v1677_v55 }
 0x4b4   :  { %5895 = vmatprep.subr.bf16.mxu1 %v5894_v6 }
 0x4b7   :  { %5897 = vmatpush3.bf16.msra.mxu1 %v5894_v6 }
 0x4b8   :  { %5899 = vmatprep.subr.bf16.mxu1 %v5898_v18 }
 0x4bb   :  { %5901 = vmatpush3.bf16.msra.mxu1 %v5898_v18 }
 0x4bc   :  { %5903 = vmatprep.subr.bf16.mxu1 %v5902_v26 }
 0x4bf   :  { %5905 = vmatpush3.bf16.msra.mxu1 %v5902_v26 }
 0x4c0   :  { %5907 = vmatprep.subr.bf16.mxu1 %v5906_v40 }
 0x4c3   :  { %5909 = vmatpush3.bf16.msra.mxu1 %v5906_v40 }
 0x4c4   :  { %5911 = vmatprep.subr.bf16.mxu1 %v5910_v14 }
 0x4c7   :  { %5913 = vmatpush3.bf16.msra.mxu1 %v5910_v14 }
 0x4c8   :  { %5915 = vmatprep.subr.bf16.mxu1 %v5914_v17 }
 0x4ca   :  { %5152 = vmatmul.mubr.msk.f32.vlgmr.msra.gmra.mrb[10].mxu1 %vm1172_vm10, %v1678_v33 }
 0x4cb   :  { %5154 = vmatprep.mubr.msk.f32.mxu1 %vm1172_vm10, %v1679_v21  ;;  %5917 = vmatpush3.bf16.msra.mxu1 %v5914_v17 }
 0x4cc   :  { %5919 = vmatprep.subr.bf16.mxu1 %v5918_v35 }
 0x4ce   :  { %5155 = vmatmul.mubr.msk.f32.gmra.mrb[12].mxu1 %vm1172_vm10, %v1680_v46 }
 0x4cf   :  { %5921 = vmatpush3.bf16.msra.mxu1 %v5918_v35  ;;  %5185 = vmatprep.mubr.msk.f32.mxu1 %vm1172_vm10, %v1908_v41 }
 0x4d0   :  { %5923 = vmatprep.subr.bf16.mxu1 %v5922_v60 }
 0x4d3   :  { %5925 = vmatpush3.bf16.msra.mxu1 %v5922_v60 }
 0x4d4   :  { %5927 = vmatprep.subr.bf16.mxu1 %v5926_v44 }
 0x4d7   :  { %5929 = vmatpush3.bf16.msra.mxu1 %v5926_v44 }
 0x4d8   :  { %5931 = vmatprep.subr.bf16.mxu1 %v5930_v30 }
 0x4db   :  { %5933 = vmatpush3.bf16.msra.mxu1 %v5930_v30 }
 0x4dc   :  { %5935 = vmatprep.subr.bf16.mxu1 %v5934_v51 }
 0x4df   :  { %5937 = vmatpush3.bf16.msra.mxu1 %v5934_v51 }
 0x4e0   :  { %5939 = vmatprep.subr.bf16.mxu1 %v5938_v53 }
 0x4e3   :  { %5941 = vmatpush3.bf16.msra.mxu1 %v5938_v53 }
 0x4e4   :  { %6047 = vmatprep.subr.bf16.mxu1 %v6728_v38 }
 0x4e6   :  { %5186 = vmatmul.mubr.msk.f32.vlgmr.msra.gmra.mrb[10].mxu1 %vm1172_vm10, %v1909_v31 }
 0x4e7   :  { %5188 = vmatprep.mubr.msk.f32.mxu1 %vm1172_vm10, %v1910_v39 }
 0x4ea   :  { %5189 = vmatmul.mubr.msk.f32.gmra.mrb[12].mxu1 %vm1172_vm10, %v1911_v45  ;;  %v4323_v45 = vld [vmem:[%s8660_s8 + $0x70] sm:$0xff] }
 0x4eb   :  { %5348 = vmatprep.mubr.msk.f32.mxu1 %vm6729_vm9, %v6725_v0 }
 0x5b9   :  { %v7810_v48 = vpop.f32.mrb[10].mxu1 }
 0x5ba   :  { %v2038_v25 = vmul.f32 %v7810_v48, %v7810_v48  ;;  %v7814_v56 = vpop.f32.mrb[11].mxu1  ;;  %v2029_v52 = vsel %vm1663_vm1, %v7810_v48, 0.0  ;;  %v2051_v6 = vrot.slane %v7810_v48, 7 }
 0x5bb   :  { %v2028_v43 = vsel %vm1172_vm10, %v7814_v56, 0.0  ;;  %v2037_v11 = vmul.f32 %v7814_v56, %v7814_v56 }
 0x5bc   :  { %v2030_v59 = vadd.f32 %v2029_v52, %v2028_v43  ;;  %v2040_v36 = vsel %vm1663_vm1, %v2038_v25, 0.0  ;;  %v2072_v32 = vrot.slane %v2038_v25, 7  ;;  %v4324_v25 = vld [vmem:[%s8660_s8 + $0x78] sm:$0xff] }
 0x5bd   :  { %v2039_v3 = vsel %vm1172_vm10, %v2037_v11, 0.0  ;;  %v7824_v63 = vpop.f32.mrb[12].mxu1  ;;  %v5963_v52 = vpack.c.bf16 %v4324_v25, %v4323_v45 }
 0x5be   :  { %v2031_v5 = vrot.slane %v2030_v59, 4  ;;  %v2041_v57 = vadd.f32 %v2040_v36, %v2039_v3  ;;  %v2054_v1 = vrot.slane %v7824_v63, 7  ;;  %v2068_v10 = vmul.f32 %v7824_v63, %v7824_v63  ;;  %v7829_v58 = vpop.f32.mrb[13].mxu1 }
 0x5bf   :  { %v2052_v16 = vrot.slane %v7829_v58, 7  ;;  %v2067_v23 = vmul.f32 %v7829_v58, %v7829_v58 }
 0x5c0   :  { %v2032_v12 = vadd.f32 %v2031_v5, %v2030_v59  ;;  %v2042_v55 = vrot.slane %v2041_v57, 4  ;;  %v2075_v18 = vrot.slane %v2068_v10, 7 }
 0x5c1   :  { %v2053_v54 = vsel %vm1373_vm13, %v2051_v6, %v2052_v16  ;;  %v2055_v26 = vsel %vm1373_vm13, %v2052_v16, %v2054_v1  ;;  %v2073_v7 = vrot.slane %v2067_v23, 7  ;;  %v2185_v16 = vld [vmem:[#allocation13] sm:$0x1] }
 0x5c2   :  { %v2043_v9 = vadd.f32 %v2042_v55, %v2041_v57  ;;  %v2058_v40 = vsel %vm1172_vm10, %v2053_v54, 0.0  ;;  %v2059_v4 = vsel %vm1663_vm1, %v2055_v26, 0.0  ;;  %v2033_v8 = vrot.slane %v2032_v12, 2  ;;  %v2206_v55 = vld [vmem:[#allocation14] sm:$0x1]  ;;  %v4325_v54 = vld [vmem:[%s8660_s8 + $0x80] sm:$0xff] }
 0x5c3   :  { %v2060_v14 = vadd.f32 %v2059_v4, %v2058_v40  ;;  %v2074_v62 = vsel %vm1373_vm13, %v2072_v32, %v2073_v7  ;;  %v2076_v2 = vsel %vm1373_vm13, %v2073_v7, %v2075_v18  ;;  %v4326_v26 = vld [vmem:[%s8660_s8 + $0x88] sm:$0xff]  ;;  %v4327_v4 = vld [vmem:[%s8660_s8 + $0x90] sm:$0xff] }
 0x5c4   :  { %v2079_v17 = vsel %vm1172_vm10, %v2074_v62, 0.0  ;;  %v2080_v15 = vsel %vm1663_vm1, %v2076_v2, 0.0  ;;  %v2044_v13 = vrot.slane %v2043_v9, 2  ;;  %v2034_v20 = vadd.f32 %v2033_v8, %v2032_v12  ;;  %v4328_v8 = vld [vmem:[%s8660_s8 + $0x98] sm:$0xff]  ;;  %v4329_v62 = vld [vmem:[%s8660_s8 + $0xa0] sm:$0xff]  ;;  %v4330_v2 = vld [vmem:[%s8660_s8 + $0xa8] sm:$0xff] }
 0x5c5   :  { %v2061_v35 = vrot.slane %v2060_v14, 4  ;;  %v2081_v33 = vadd.f32 %v2080_v15, %v2079_v17  ;;  %v5975_v17 = vpack.c.bf16 %v4330_v2, %v4329_v62  ;;  %v4331_v15 = vld [vmem:[%s8660_s8 + $0xb0] sm:$0xff]  ;;  %v2340_v2 = vld [vmem:[%s8660_s8 + $0x60] sm:$0xff] }
 0x5c6   :  { %v2045_v60 = vadd.f32 %v2044_v13, %v2043_v9  ;;  %v2035_v42 = vrot.slane %v2034_v20, 1  ;;  %v5967_v9 = vpack.c.bf16 %v4326_v26, %v4325_v54  ;;  %v4332_v13 = vld [vmem:[%s8660_s8 + $0xb8] sm:$0xff]  ;;  %v2334_v54 = vld [vmem:[%s8660_s8 + $0x30] sm:$0xff] }
 0x5c7   :  { %v2062_v27 = vadd.f32 %v2061_v35, %v2060_v14  ;;  %v2082_v21 = vrot.slane %v2081_v33, 4  ;;  %v5971_v14 = vpack.c.bf16 %v4328_v8, %v4327_v4  ;;  %v5979_v35 = vpack.c.bf16 %v4332_v13, %v4331_v15  ;;  %v2335_v26 = vld [vmem:[%s8660_s8 + $0x38] sm:$0xff]  ;;  %v2338_v8 = vld [vmem:[%s8660_s8 + $0x50] sm:$0xff]  ;;  %v4341_v13 = vld [vmem:[%s8660_s8 + $0xe0] sm:$0xff] }
 0x5c8   :  { %v2046_v47 = vrot.slane %v2045_v60, 1  ;;  %v2036_v24 = vadd.f32 %v2035_v42, %v2034_v20  ;;  %v4334_v20 = vld [vmem:[%s8660_s8 + $0xc8] sm:$0xff] }
 0x5c9   :  { %v2063_v46 = vrot.slane %v2062_v27, 2  ;;  %v2083_v49 = vadd.f32 %v2082_v21, %v2081_v33  ;;  %v4333_v33 = vld [vmem:[%s8660_s8 + $0xc0] sm:$0xff]  ;;  %v2329_v42 = vld [vmem:[%s8660_s8 + $0x8] sm:$0xff] }
 0x5ca   :  { %v2047_v28 = vadd.f32 %v2046_v47, %v2045_v60  ;;  %v5983_v21 = vpack.c.bf16 %v4334_v20, %v4333_v33  ;;  %v4336_v60 = vld [vmem:[%s8660_s8 + $0xd8] sm:$0xff]  ;;  %v2652_v47 = vld [vmem:[%s8668_s16 + $0x8] sm:$0xff] }
 0x5cb   :  { %v2064_v41 = vadd.f32 %v2063_v46, %v2062_v27  ;;  %v2084_v44 = vrot.slane %v2083_v49, 2  ;;  %v4335_v27 = vld [vmem:[%s8660_s8 + $0xd0] sm:$0xff] }
 0x5cc   :  { %v5987_v46 = vpack.c.bf16 %v4336_v60, %v4335_v27  ;;  %v4343_v27 = vld [vmem:[%s8660_s8 + $0xf0] sm:$0xff] }
 0x5cd   :  { %v2065_v19 = vrot.slane %v2064_v41, 1  ;;  %v2085_v30 = vadd.f32 %v2084_v44, %v2083_v49  ;;  %v2328_v49 = vld [vmem:[%s8660_s8] sm:$0xff] }
 0x5ce   :  { %v2651_v44 = vld [vmem:[%s8668_s16] sm:$0xff] }
 0x5cf   :  { %v2066_v61 = vadd.f32 %v2065_v19, %v2064_v41  ;;  %v2086_v51 = vrot.slane %v2085_v30, 1  ;;  %v5991_v41 = vpack.c.bf16 %v2329_v42, %v2328_v49  ;;  %v2653_v19 = vld [vmem:[%s8668_s16 + $0x10] sm:$0xff]  ;;  %v4345_v42 = vld [vmem:[%s8660_s8 + $0x100] sm:$0xff] }
 0x5d1   :  { %v2087_v29 = vadd.f32 %v2086_v51, %v2085_v30  ;;  %v2088_v53 = vadd.f32 %v2066_v61, %v2036_v24  ;;  %v7910_v30 = vpack.c.bf16 %v2652_v47, %v2651_v44  ;;  %v2654_v24 = vld [vmem:[%s8668_s16 + $0x18] sm:$0xff] }
 0x5d2   :  { %v7916_v61 = vpack.c.bf16 %v2654_v24, %v2653_v19  ;;  %v4347_v19 = vld [vmem:[%s8660_s8 + $0x110] sm:$0xff]  ;;  %v4348_v24 = vld [vmem:[%s8660_s8 + $0x118] sm:$0xff] }
 0x5d3   :  { %v2089_v31 = vadd.f32 %v2087_v29, %v2047_v28  ;;  %6049 = vmatpush3.bf16.msra.mxu1 %v7910_v30 }
 0x5d4   :  { %6050 = vmatprep.subr.bf16.mxu1 %v6728_v38 }
 0x5d5   :  { %v2090_v39 = vsel %vm1373_vm13, %v2088_v53, %v2089_v31 }
 0x5d6   :  { %5220 = vmatmul.mubr.msk.f32.vlgmr.msra.gmra.mrb[10].mxu0 %vm1172_vm10, %v2090_v39 }
 0x5d7   :  { %5223 = vmatpush3.msra.mxu0 %v7599_v37  ;;  %5224 = vmatprep.mubr.msk.f32.mxu0 %vm6729_vm9, %v6725_v0 }
 0x5d8   :  { %5964 = vmatprep.subr.bf16.mxu0 %v5963_v52  ;;  %6052 = vmatpush3.bf16.msra.mxu1 %v7916_v61 }
 0x5d9   :  { %6053 = vmatprep.subr.bf16.mxu1 %v6728_v38 }
 0x6a9   :  { %v2174_v43 = vpop.f32.mrb[10].mxu0 }
 0x6aa   :  { %v2178_v11 = vmul.f32 0.0025510204, %v2174_v43  ;;  %v5221_v59 = vpop.f32.mrb[11].mxu0 }
 0x6ac   :  { %v2179_v36 = vmul.f32 %v2178_v11, %v2178_v11 }
 0x6ae   :  { %v2181_v3 = vrot.slane %v2179_v36, 7 }
 0x6b0   :  { %v2183_v5 = vsub.f32 %v2178_v11, %v2181_v3 }
 0x6b2   :  { %v2184_v37 = vmax.f32 %v2183_v5, 0.0 }
 0x6b4   :  { %v2186_v57 = vadd.f32 1e-05, %v2184_v37 }
 0x6b6   :  { %6403 = vrsqrt.f32 %v2186_v57 }
 0x6c0   :  { %v6404_v1 = vpop.eup %6403 }
 0x6c1   :  { %v2195_v10 = vrot.slane %v6404_v1, %v7605_v34 }
 0x6c3   :  { %v2196_v6 = vcombine.high %v2195_v10, %v2195_v10 }
 0x6c5   :  { %v2203_v23 = vrot.slane %v2196_v6, %v7605_v34 }
 0x6c7   :  { %v2205_v12 = vmul.f32 %v2203_v23, %v2185_v16 }
 0x6c9   :  { %v2207_v18 = vmul.f32 %v2205_v12, %v2178_v11 }
 0x6cb   :  { %v2208_v32 = vsub.f32 %v2206_v55, %v2207_v18  ;;  %v2333_v55 = vld [vmem:[%s8660_s8 + $0x28] sm:$0xff] }
 0x6cd   :  { %v2213_v7 = vrot.slane %v2208_v32, %v7610_v22 }
 0x6cf   :  { %v2215_v40 = vsel %vm1373_vm13, %v2205_v12, %v2213_v7  ;;  %v2332_v12 = vld [vmem:[%s8660_s8 + $0x20] sm:$0xff]  ;;  %v6003_v7 = vpack.c.bf16 %v2335_v26, %v2334_v54 }
 0x6d0   :  { %5225 = vmatmul.mubr.msk.f32.vlgmr.msra.gmra.mrb[12].mxu0 %vm1501_vm14, %v2215_v40  ;;  %v5999_v32 = vpack.c.bf16 %v2333_v55, %v2332_v12  ;;  %v2337_v40 = vld [vmem:[%s8660_s8 + $0x48] sm:$0xff] }
 0x6d1   :  { %5966 = vmatpush3.bf16.msra.mxu0 %v5963_v52 }
 0x6d2   :  { %5968 = vmatprep.subr.bf16.mxu0 %v5967_v9 }
 0x6d5   :  { %5970 = vmatpush3.bf16.msra.mxu0 %v5967_v9  ;;  %v2336_v9 = vld [vmem:[%s8660_s8 + $0x40] sm:$0xff] }
 0x6d6   :  { %5972 = vmatprep.subr.bf16.mxu0 %v5971_v14  ;;  %v6007_v4 = vpack.c.bf16 %v2337_v40, %v2336_v9 }
 0x6d9   :  { %5974 = vmatpush3.bf16.msra.mxu0 %v5971_v14  ;;  %v2339_v14 = vld [vmem:[%s8660_s8 + $0x58] sm:$0xff] }
 0x6da   :  { %5976 = vmatprep.subr.bf16.mxu0 %v5975_v17  ;;  %v6011_v62 = vpack.c.bf16 %v2339_v14, %v2338_v8 }
 0x6dd   :  { %5978 = vmatpush3.bf16.msra.mxu0 %v5975_v17  ;;  %v2341_v17 = vld [vmem:[%s8660_s8 + $0x68] sm:$0xff] }
 0x6de   :  { %5980 = vmatprep.subr.bf16.mxu0 %v5979_v35  ;;  %v6015_v15 = vpack.c.bf16 %v2341_v17, %v2340_v2 }
 0x6e1   :  { %5982 = vmatpush3.bf16.msra.mxu0 %v5979_v35  ;;  %v4342_v35 = vld [vmem:[%s8660_s8 + $0xe8] sm:$0xff] }
 0x6e2   :  { %5984 = vmatprep.subr.bf16.mxu0 %v5983_v21  ;;  %v6019_v20 = vpack.c.bf16 %v4342_v35, %v4341_v13 }
 0x6e5   :  { %5986 = vmatpush3.bf16.msra.mxu0 %v5983_v21  ;;  %v4344_v21 = vld [vmem:[%s8660_s8 + $0xf8] sm:$0xff] }
 0x6e6   :  { %5988 = vmatprep.subr.bf16.mxu0 %v5987_v46 }
 0x6e9   :  { %5990 = vmatpush3.bf16.msra.mxu0 %v5987_v46  ;;  %v6023_v46 = vpack.c.bf16 %v4344_v21, %v4343_v27  ;;  %v2776_v27 = vld [vmem:[#allocation23] sm:$0xff]  ;;  %v2777_v21 = vld [vmem:[#allocation23 + $0x8] sm:$0xff] }
 0x6ea   :  { %5992 = vmatprep.subr.bf16.mxu0 %v5991_v41 }
 0x7a3   :  { %v2286_v51 = vpop.f32.mrb[12].mxu0 }
 0x7a4   :  { %v2293_v28 = vrot.slane %v2286_v51, %v7610_v22  ;;  %v5226_v29 = vpop.f32.mrb[13].mxu0  ;;  %v2301_v53 = vrot.slane %v2286_v51, %v7683_v50  ;;  %v6031_v51 = vpack.c.bf16 %v4348_v24, %v4347_v19 }
 0x7a5   :  { %v4350_v29 = vld [vmem:[%s8660_s8 + $0x128] sm:$0xff] }
 0x7a6   :  { %v2294_v31 = vmul.f32 %v2293_v28, %v7814_v56  ;;  %v2295_v39 = vmul.f32 %v7810_v48, %v2293_v28  ;;  %v2296_v45 = vmul.f32 %v2293_v28, %v7829_v58  ;;  %v2297_v25 = vmul.f32 %v7824_v63, %v2293_v28  ;;  %v2330_v56 = vld [vmem:[%s8660_s8 + $0x10] sm:$0xff]  ;;  %v2331_v63 = vld [vmem:[%s8660_s8 + $0x18] sm:$0xff]  ;;  %v4349_v28 = vld [vmem:[%s8660_s8 + $0x120] sm:$0xff] }
 0x7a7   :  { %v5995_v16 = vpack.c.bf16 %v2331_v63, %v2330_v56  ;;  %v2661_v56 = vld [vmem:[%s8668_s16 + $0x50] sm:$0xff]  ;;  %v2662_v63 = vld [vmem:[%s8668_s16 + $0x58] sm:$0xff] }
 0x7a8   :  { %v2302_v52 = vadd.f32 %v2301_v53, %v2294_v31  ;;  %v2303_v43 = vadd.f32 %v2301_v53, %v2295_v39  ;;  %v2304_v11 = vadd.f32 %v2301_v53, %v2296_v45  ;;  %v2305_v59 = vadd.f32 %v2301_v53, %v2297_v25  ;;  %v4351_v31 = vld [vmem:[%s8660_s8 + $0x130] sm:$0xff]  ;;  %v4352_v39 = vld [vmem:[%s8660_s8 + $0x138] sm:$0xff]  ;;  %v4353_v25 = vld [vmem:[%s8660_s8 + $0x140] sm:$0xff] }
 0x7a9   :  { %v6035_v53 = vpack.c.bf16 %v4350_v29, %v4349_v28  ;;  %v6039_v45 = vpack.c.bf16 %v4352_v39, %v4351_v31 }
 0x7aa   :  { %v2306_v36 = vmax.f32 %v2302_v52, 0.0  ;;  %v2307_v3 = vmax.f32 %v2303_v43, 0.0  ;;  %v2308_v5 = vmax.f32 %v2304_v11, 0.0  ;;  %v2309_v37 = vmax.f32 %v2305_v59, 0.0  ;;  %v4354_v52 = vld [vmem:[%s8660_s8 + $0x148] sm:$0xff]  ;;  %v2655_v11 = vld [vmem:[%s8668_s16 + $0x20] sm:$0xff] }
 0x7ab   :  { %v6043_v43 = vpack.c.bf16 %v4354_v52, %v4353_v25  ;;  %v2656_v59 = vld [vmem:[%s8668_s16 + $0x28] sm:$0xff] }
 0x7ac   :  { %2313 = vst.msk [vmem:[#allocation5 + $0x1] sm:$0xff] %vm1172_vm10, %v2306_v36  ;;  %2317 = vst.msk [vmem:[#allocation5 + $0x11] sm:$0xff] %vm1172_vm10, %v2308_v5  ;;  %v6054_v36 = vpack.c.bf16 %v2656_v59, %v2655_v11  ;;  %v2659_v5 = vld [vmem:[%s8668_s16 + $0x40] sm:$0xff] }
 0x7ad   :  { %2314 = vst.msk [vmem:[#allocation5 + $0x9] sm:$0x3f] %vm1663_vm1, %v2307_v3 }
 0x7ae   :  { %2316 = vst.msk [vmem:[#allocation5 + $0x9] sm:$0x80] %vm2315_vm2, %v2307_v3  ;;  %6055 = vmatpush3.bf16.msra.mxu1 %v6054_v36 }
 0x7af   :  { %2319 = vst.msk [vmem:[#allocation5 + $0x19] sm:$0x1f] %vm2318_vm3, %v2309_v37  ;;  %6056 = vmatprep.subr.bf16.mxu1 %v6728_v38  ;;  %v2660_v37 = vld [vmem:[%s8668_s16 + $0x48] sm:$0xff] }
 0x7b4   :  { %v2343_v57 = vld [vmem:[#allocation5 + $0x1] ss:$2 sm:$0x7f]  ;;  %v2320_v23 = vld [vmem:[#allocation5] ss:$2 sm:$0x7f] }
 0x7b5   :  { %v2526_v49 = vld [vmem:[#allocation5 + $0x2] ss:$2 sm:$0x7f] }
 0x7b6   :  { %v2345_v48 = vld [vmem:[#allocation5 + $0x10] ss:$2 sm:$0x7f]  ;;  %v2322_v1 = vld [vmem:[#allocation5 + $0xf] ss:$2 sm:$0x7f] }
 0x7b7   :  { %v2347_v58 = vrot.slane %v2345_v48, 1  ;;  %v2324_v6 = vrot.slane %v2322_v1, 1  ;;  %v2528_v33 = vld [vmem:[#allocation5 + $0x11] ss:$2 sm:$0x7f]  ;;  %v6060_v48 = vpack.c.bf16 %v2660_v37, %v2659_v5  ;;  %v2664_v1 = vld [vmem:[%s8668_s16 + $0x68] sm:$0xff] }
 0x7b8   :  { %v2530_v60 = vrot.slane %v2528_v33, 1  ;;  %v4363_v37 = vld [vmem:[%s8663_s11 + $0x90] sm:$0xff] }
 0x7b9   :  { %v2349_v10 = vsel %vm2326_vm4, %v2343_v57, %v2347_v58  ;;  %v2327_v18 = vsel %vm2326_vm4, %v2320_v23, %v2324_v6  ;;  %v2663_v57 = vld [vmem:[%s8668_s16 + $0x60] sm:$0xff] }
 0x7ba   :  { %5255 = vmatprep.mubr.msk.f32.mxu0 %vm1172_vm10, %v2349_v10  ;;  %v2532_v44 = vsel %vm2326_vm4, %v2526_v49, %v2530_v60  ;;  %v6066_v10 = vpack.c.bf16 %v2664_v1, %v2663_v57  ;;  %v4360_v49 = vld [vmem:[%s8663_s11 + $0x78] sm:$0xff]  ;;  %v4367_v1 = vld [vmem:[%s8663_s11 + $0xb0] sm:$0xff] }
 0x7bb   :  { %5256 = vmatmul.mubr.msk.f32.vlgmr.msra.gmra.mrb[14].mxu0 %vm1172_vm10, %v2347_v58  ;;  %v6063_v58 = vpack.c.bf16 %v2662_v63, %v2661_v56  ;;  %v4365_v63 = vld [vmem:[%s8663_s11 + $0xa0] sm:$0xff] }
 0x7bc   :  { %5994 = vmatpush3.bf16.msra.mxu0 %v5991_v41  ;;  %5286 = vmatprep.mubr.msk.f32.mxu0 %vm1172_vm10, %v2327_v18  ;;  %v4346_v41 = vld [vmem:[%s8660_s8 + $0x108] sm:$0xff] }
 0x7bd   :  { %5996 = vmatprep.subr.bf16.mxu0 %v5995_v16  ;;  %v6027_v47 = vpack.c.bf16 %v4346_v41, %v4345_v42 }
 0x7c0   :  { %5998 = vmatpush3.bf16.msra.mxu0 %v5995_v16 }
 0x7c1   :  { %6000 = vmatprep.subr.bf16.mxu0 %v5999_v32 }
 0x7c4   :  { %6002 = vmatpush3.bf16.msra.mxu0 %v5999_v32 }
 0x7c5   :  { %6004 = vmatprep.subr.bf16.mxu0 %v6003_v7 }
 0x7c8   :  { %6006 = vmatpush3.bf16.msra.mxu0 %v6003_v7 }
 0x7c9   :  { %6008 = vmatprep.subr.bf16.mxu0 %v6007_v4 }
 0x7cc   :  { %6010 = vmatpush3.bf16.msra.mxu0 %v6007_v4 }
 0x7cd   :  { %6012 = vmatprep.subr.bf16.mxu0 %v6011_v62 }
 0x7d0   :  { %6014 = vmatpush3.bf16.msra.mxu0 %v6011_v62 }
 0x7d1   :  { %6016 = vmatprep.subr.bf16.mxu0 %v6015_v15 }
 0x7d4   :  { %6018 = vmatpush3.bf16.msra.mxu0 %v6015_v15 }
 0x7d5   :  { %6020 = vmatprep.subr.bf16.mxu0 %v6019_v20 }
 0x7d7   :  { %5287 = vmatmul.mubr.msk.f32.vlgmr.msra.gmra.mrb[14].mxu0 %vm1172_vm10, %v2324_v6 }
 0x7d8   :  { %6022 = vmatpush3.bf16.msra.mxu0 %v6019_v20  ;;  %5317 = vmatprep.mubr.msk.f32.mxu0 %vm1172_vm10, %v2532_v44 }
 0x7d9   :  { %6024 = vmatprep.subr.bf16.mxu0 %v6023_v46 }
 0x7dc   :  { %6026 = vmatpush3.bf16.msra.mxu0 %v6023_v46  ;;  %v4359_v46 = vld [vmem:[%s8663_s11 + $0x70] sm:$0xff] }
 0x7dd   :  { %6028 = vmatprep.subr.bf16.mxu0 %v6027_v47  ;;  %v6071_v42 = vpack.c.bf16 %v4360_v49, %v4359_v46  ;;  %v2879_v46 = vld [vmem:[%s8663_s11 + $0x20] sm:$0xff]  ;;  %v2880_v49 = vld [vmem:[%s8663_s11 + $0x28] sm:$0xff] }
 0x7e0   :  { %6030 = vmatpush3.bf16.msra.mxu0 %v6027_v47 }
 0x7e1   :  { %6032 = vmatprep.subr.bf16.mxu0 %v6031_v51 }
 0x7e4   :  { %6034 = vmatpush3.bf16.msra.mxu0 %v6031_v51 }
 0x7e5   :  { %6036 = vmatprep.subr.bf16.mxu0 %v6035_v53 }
 0x7e8   :  { %6038 = vmatpush3.bf16.msra.mxu0 %v6035_v53 }
 0x7e9   :  { %6040 = vmatprep.subr.bf16.mxu0 %v6039_v45 }
 0x7ec   :  { %6042 = vmatpush3.bf16.msra.mxu0 %v6039_v45  ;;  %v2745_v45 = vld [vmem:[#allocation16] sm:$0x1] }
 0x7ed   :  { %6044 = vmatprep.subr.bf16.mxu0 %v6043_v43 }
 0x7f0   :  { %6046 = vmatpush3.bf16.msra.mxu0 %v6043_v43  ;;  %v2766_v43 = vld [vmem:[#allocation17] sm:$0x1] }
 0x7f1   :  { %6155 = vmatprep.subr.bf16.mxu0 %v6728_v38 }
 0x7f3   :  { %5318 = vmatmul.mubr.msk.f32.vlgmr.msra.gmra.mrb[14].mxu0 %vm1172_vm10, %v2530_v60  ;;  %v8083_v60 = vpack.c.bf16 %v2777_v21, %v2776_v27 }
 0x7f4   :  { %6157 = vmatpush3.bf16.msra.mxu0 %v7910_v30  ;;  %5479 = vmatprep.mubr.msk.f32.mxu0 %vm6729_vm9, %v6725_v0  ;;  %v2657_v30 = vld [vmem:[%s8668_s16 + $0x30] sm:$0xff] }
 0x7f5   :  { %6158 = vmatprep.subr.bf16.mxu0 %v6728_v38 }
 0x7f8   :  { %6160 = vmatpush3.bf16.msra.mxu0 %v7916_v61  ;;  %v2658_v61 = vld [vmem:[%s8668_s16 + $0x38] sm:$0xff] }
 0x7f9   :  { %6161 = vmatprep.subr.bf16.mxu0 %v6728_v38  ;;  %v6057_v3 = vpack.c.bf16 %v2658_v61, %v2657_v30  ;;  %v4362_v30 = vld [vmem:[%s8663_s11 + $0x88] sm:$0xff] }
 0x7fb   :  { %6058 = vmatpush3.bf16.msra.mxu1 %v6057_v3 }
 0x7fc   :  { %6163 = vmatpush3.bf16.msra.mxu0 %v6054_v36  ;;  %6059 = vmatprep.subr.bf16.mxu1 %v6728_v38  ;;  %v4361_v36 = vld [vmem:[%s8663_s11 + $0x80] sm:$0xff] }
 0x7fd   :  { %6164 = vmatprep.subr.bf16.mxu0 %v6728_v38 }
 0x7ff   :  { %6061 = vmatpush3.bf16.msra.mxu1 %v6060_v48 }
 0x800   :  { %6166 = vmatpush3.bf16.msra.mxu0 %v6057_v3  ;;  %6062 = vmatprep.subr.bf16.mxu1 %v6728_v38  ;;  %v6075_v3 = vpack.c.bf16 %v4362_v30, %v4361_v36  ;;  %v4380_v36 = vld [vmem:[%s8663_s11 + $0xf8] sm:$0xff] }
 0x801   :  { %6167 = vmatprep.subr.bf16.mxu0 %v6728_v38 }
 0x803   :  { %6064 = vmatpush3.bf16.msra.mxu1 %v6063_v58 }
 0x804   :  { %6169 = vmatpush3.bf16.msra.mxu0 %v6060_v48  ;;  %6065 = vmatprep.subr.bf16.mxu1 %v6728_v38  ;;  %v4364_v48 = vld [vmem:[%s8663_s11 + $0x98] sm:$0xff] }
 0x805   :  { %6170 = vmatprep.subr.bf16.mxu0 %v6728_v38  ;;  %v6079_v56 = vpack.c.bf16 %v4364_v48, %v4363_v37 }
 0x807   :  { %6067 = vmatpush3.bf16.msra.mxu1 %v6066_v10 }
 0x808   :  { %6172 = vmatpush3.bf16.msra.mxu0 %v6063_v58  ;;  %6068 = vmatprep.subr.bf16.mxu1 %v6728_v38  ;;  %v4366_v58 = vld [vmem:[%s8663_s11 + $0xa8] sm:$0xff] }
 0x809   :  { %6173 = vmatprep.subr.bf16.mxu0 %v6728_v38  ;;  %v6083_v57 = vpack.c.bf16 %v4366_v58, %v4365_v63  ;;  %v4384_v63 = vld [vmem:[%s8663_s11 + $0x118] sm:$0xff] }
 0x80c   :  { %6175 = vmatpush3.bf16.msra.mxu0 %v6066_v10  ;;  %v4368_v10 = vld [vmem:[%s8663_s11 + $0xb8] sm:$0xff] }
 0x80d   :  { %6176 = vmatprep.subr.bf16.mxu0 %v6728_v38 }
 0x8c6   :  { %v8065_v6 = vpop.f32.mrb[14].mxu0 }
 0x8c7   :  { %v2631_v16 = vsel %vm1663_vm1, %v8065_v6, 0.0  ;;  %v2640_v23 = vmul.f32 %v8065_v6, %v8065_v6  ;;  %v8071_v12 = vpop.f32.mrb[15].mxu0 }
 0x8c8   :  { %v2630_v55 = vsel %vm1172_vm10, %v8071_v12, 0.0  ;;  %v2639_v18 = vmul.f32 %v8071_v12, %v8071_v12 }
 0x8c9   :  { %v2642_v32 = vsel %vm1663_vm1, %v2640_v23, 0.0  ;;  %v2632_v54 = vadd.f32 %v2631_v16, %v2630_v55  ;;  %v6087_v16 = vpack.c.bf16 %v4368_v10, %v4367_v1  ;;  %v4369_v23 = vld [vmem:[%s8663_s11 + $0xc0] sm:$0xff]  ;;  %v4370_v55 = vld [vmem:[%s8663_s11 + $0xc8] sm:$0xff] }
 0x8ca   :  { %v2641_v26 = vsel %vm1172_vm10, %v2639_v18, 0.0  ;;  %v6091_v18 = vpack.c.bf16 %v4370_v55, %v4369_v23  ;;  %v4386_v1 = vld [vmem:[%s8663_s11 + $0x128] sm:$0xff]  ;;  %v4388_v23 = vld [vmem:[%s8663_s11 + $0x138] sm:$0xff] }
 0x8cb   :  { %v2633_v7 = vrot.slane %v2632_v54, 4  ;;  %v2643_v9 = vadd.f32 %v2642_v32, %v2641_v26  ;;  %v4371_v32 = vld [vmem:[%s8663_s11 + $0xd0] sm:$0xff] }
 0x8cd   :  { %v2634_v40 = vadd.f32 %v2633_v7, %v2632_v54  ;;  %v2644_v4 = vrot.slane %v2643_v9, 4  ;;  %v4372_v54 = vld [vmem:[%s8663_s11 + $0xd8] sm:$0xff]  ;;  %v2875_v7 = vld [vmem:[%s8663_s11] sm:$0xff] }
 0x8ce   :  { %v6095_v26 = vpack.c.bf16 %v4372_v54, %v4371_v32  ;;  %v4390_v32 = vld [vmem:[%s8663_s11 + $0x148] sm:$0xff] }
 0x8cf   :  { %v2635_v8 = vrot.slane %v2634_v40, 2  ;;  %v2645_v14 = vadd.f32 %v2644_v4, %v2643_v9  ;;  %v2876_v9 = vld [vmem:[%s8663_s11 + $0x8] sm:$0xff] }
 0x8d1   :  { %v2636_v62 = vadd.f32 %v2635_v8, %v2634_v40  ;;  %v2646_v2 = vrot.slane %v2645_v14, 2  ;;  %v6099_v40 = vpack.c.bf16 %v2876_v9, %v2875_v7 }
 0x8d3   :  { %v2637_v17 = vrot.slane %v2636_v62, 1  ;;  %v2647_v15 = vadd.f32 %v2646_v2, %v2645_v14 }
 0x8d5   :  { %v2648_v13 = vrot.slane %v2647_v15, 1  ;;  %v2638_v35 = vadd.f32 %v2637_v17, %v2636_v62 }
 0x8d7   :  { %v2649_v33 = vadd.f32 %v2648_v13, %v2647_v15 }
 0x8d9   :  { %v2650_v20 = vsel %vm1373_vm13, %v2638_v35, %v2649_v33 }
 0x8da   :  { %5349 = vmatmul.mubr.msk.f32.vlgmr.msra.gmra.mrb[14].mxu1 %vm1172_vm10, %v2650_v20  ;;  %v2877_v20 = vld [vmem:[%s8663_s11 + $0x10] sm:$0xff] }
 0x8db   :  { %5355 = vmatprep.mubr.msk.f32.mxu1 %vm6729_vm9, %v6725_v0  ;;  %6070 = vmatpush3.bf16.msra.mxu1 %v8083_v60 }
 0x8dc   :  { %6072 = vmatprep.subr.bf16.mxu1 %v6071_v42 }
 0x9ad   :  { %v2734_v41 = vpop.f32.mrb[14].mxu1 }
 0x9ae   :  { %v2738_v44 = vmul.f32 0.010204081, %v2734_v41  ;;  %v5350_v47 = vpop.f32.mrb[15].mxu1  ;;  %v6107_v41 = vpack.c.bf16 %v2880_v49, %v2879_v46 }
 0x9af   :  { %v2882_v47 = vld [vmem:[%s8663_s11 + $0x38] sm:$0xff] }
 0x9b0   :  { %v2739_v19 = vmul.f32 %v2738_v44, %v2738_v44 }
 0x9b2   :  { %v2741_v24 = vrot.slane %v2739_v19, 7 }
 0x9b4   :  { %v2743_v51 = vsub.f32 %v2738_v44, %v2741_v24  ;;  %v2883_v24 = vld [vmem:[%s8663_s11 + $0x40] sm:$0xff] }
 0x9b6   :  { %v2744_v28 = vmax.f32 %v2743_v51, 0.0  ;;  %v2884_v51 = vld [vmem:[%s8663_s11 + $0x48] sm:$0xff] }
 0x9b8   :  { %v2746_v29 = vadd.f32 1e-05, %v2744_v28  ;;  %v6115_v28 = vpack.c.bf16 %v2884_v51, %v2883_v24 }
 0x9ba   :  { %6405 = vrsqrt.f32 %v2746_v29  ;;  %v2885_v29 = vld [vmem:[%s8663_s11 + $0x50] sm:$0xff] }
 0x9c4   :  { %v6406_v53 = vpop.eup %6405 }
 0x9c5   :  { %v2755_v31 = vrot.slane %v6406_v53, %v7605_v34  ;;  %v2886_v53 = vld [vmem:[%s8663_s11 + $0x58] sm:$0xff] }
 0x9c7   :  { %v2756_v39 = vcombine.high %v2755_v31, %v2755_v31  ;;  %v6119_v31 = vpack.c.bf16 %v2886_v53, %v2885_v29 }
 0x9c9   :  { %v2763_v25 = vrot.slane %v2756_v39, %v7605_v34  ;;  %v2887_v39 = vld [vmem:[%s8663_s11 + $0x60] sm:$0xff] }
 0x9cb   :  { %v2765_v52 = vmul.f32 %v2763_v25, %v2745_v45  ;;  %v2888_v45 = vld [vmem:[%s8663_s11 + $0x68] sm:$0xff] }
 0x9cc   :  { %v6123_v25 = vpack.c.bf16 %v2888_v45, %v2887_v39 }
 0x9cd   :  { %v2767_v11 = vmul.f32 %v2765_v52, %v2738_v44  ;;  %v2881_v44 = vld [vmem:[%s8663_s11 + $0x30] sm:$0xff] }
 0x9ce   :  { %v6111_v19 = vpack.c.bf16 %v2882_v47, %v2881_v44 }
 0x9cf   :  { %v2768_v59 = vsub.f32 %v2766_v43, %v2767_v11  ;;  %v4378_v43 = vld [vmem:[%s8663_s11 + $0xe8] sm:$0xff] }
 0x9d1   :  { %v2773_v61 = vrot.slane %v2768_v59, %v7610_v22  ;;  %v4379_v59 = vld [vmem:[%s8663_s11 + $0xf0] sm:$0xff] }
 0x9d2   :  { %v6131_v30 = vpack.c.bf16 %v4380_v36, %v4379_v59  ;;  %v3599_v36 = vld [vmem:[%s8670_s18 + $0xf8] sm:$0xff] }
 0x9d3   :  { %v2775_v5 = vsel %vm1373_vm13, %v2765_v52, %v2773_v61  ;;  %v4377_v52 = vld [vmem:[%s8663_s11 + $0xe0] sm:$0xff] }
 0x9d4   :  { %5356 = vmatmul.mubr.msk.f32.vlgmr.msra.gmra.mrb[16].mxu1 %vm2778_vm5, %v2775_v5  ;;  %v6127_v11 = vpack.c.bf16 %v4378_v43, %v4377_v52  ;;  %v4382_v5 = vld [vmem:[%s8663_s11 + $0x108] sm:$0xff]  ;;  %v3596_v43 = vld [vmem:[%s8670_s18 + $0xe0] sm:$0xff] }
 0x9d5   :  { %6074 = vmatpush3.bf16.msra.mxu1 %v6071_v42 }
 0x9d6   :  { %6076 = vmatprep.subr.bf16.mxu1 %v6075_v3 }
 0x9d9   :  { %6078 = vmatpush3.bf16.msra.mxu1 %v6075_v3  ;;  %v4381_v3 = vld [vmem:[%s8663_s11 + $0x100] sm:$0xff] }
 0x9da   :  { %6080 = vmatprep.subr.bf16.mxu1 %v6079_v56  ;;  %v6135_v48 = vpack.c.bf16 %v4382_v5, %v4381_v3  ;;  %v3601_v3 = vld [vmem:[%s8670_s18 + $0x108] sm:$0xff] }
 0x9dd   :  { %6082 = vmatpush3.bf16.msra.mxu1 %v6079_v56  ;;  %v4383_v56 = vld [vmem:[%s8663_s11 + $0x110] sm:$0xff] }
 0x9de   :  { %6084 = vmatprep.subr.bf16.mxu1 %v6083_v57  ;;  %v6139_v58 = vpack.c.bf16 %v4384_v63, %v4383_v56 }
 0x9e1   :  { %6086 = vmatpush3.bf16.msra.mxu1 %v6083_v57  ;;  %v4385_v57 = vld [vmem:[%s8663_s11 + $0x120] sm:$0xff] }
 0x9e2   :  { %6088 = vmatprep.subr.bf16.mxu1 %v6087_v16  ;;  %v6143_v10 = vpack.c.bf16 %v4386_v1, %v4385_v57 }
 0x9e5   :  { %6090 = vmatpush3.bf16.msra.mxu1 %v6087_v16  ;;  %v4387_v16 = vld [vmem:[%s8663_s11 + $0x130] sm:$0xff] }
 0x9e6   :  { %6092 = vmatprep.subr.bf16.mxu1 %v6091_v18  ;;  %v6147_v55 = vpack.c.bf16 %v4388_v23, %v4387_v16 }
 0x9e9   :  { %6094 = vmatpush3.bf16.msra.mxu1 %v6091_v18  ;;  %v4389_v18 = vld [vmem:[%s8663_s11 + $0x140] sm:$0xff] }
 0x9ea   :  { %6096 = vmatprep.subr.bf16.mxu1 %v6095_v26  ;;  %v6151_v54 = vpack.c.bf16 %v4390_v32, %v4389_v18  ;;  %v3295_v18 = vld [vmem:[#allocation19] sm:$0x1] }
 0x9ed   :  { %6098 = vmatpush3.bf16.msra.mxu1 %v6095_v26 }
 0x9ee   :  { %6100 = vmatprep.subr.bf16.mxu1 %v6099_v40 }
 0xaa7   :  { %v2848_v4 = vpop.f32.mrb[16].mxu1 }
 0xaa8   :  { %v2855_v8 = vrot.slane %v2848_v4, %v7610_v22  ;;  %v5357_v14 = vpop.f32.mrb[17].mxu1  ;;  %v2861_v17 = vrot.slane %v2848_v4, %v7683_v50 }
 0xaaa   :  { %v2856_v62 = vmul.f32 %v2855_v8, %v8071_v12  ;;  %v2857_v2 = vmul.f32 %v8065_v6, %v2855_v8  ;;  %v2878_v6 = vld [vmem:[%s8663_s11 + $0x18] sm:$0xff] }
 0xaab   :  { %v6103_v21 = vpack.c.bf16 %v2878_v6, %v2877_v20 }
 0xaac   :  { %v2862_v15 = vadd.f32 %v2861_v17, %v2856_v62  ;;  %v2863_v13 = vadd.f32 %v2861_v17, %v2857_v2 }
 0xaae   :  { %v2864_v35 = vmax.f32 %v2862_v15, 0.0  ;;  %v2865_v33 = vmax.f32 %v2863_v13, 0.0 }
 0xab0   :  { %2870 = vst.msk [vmem:[#allocation6 + $0x1] sm:$0x7f] %vm2869_vm6, %v2864_v35 }
 0xab1   :  { %2871 = vst.msk [vmem:[#allocation6 + $0x2] sm:$0x80] %vm2315_vm2, %v2864_v35 }
 0xab2   :  { %2872 = vst.msk [vmem:[#allocation6 + $0xa] sm:$0x3f] %vm1663_vm1, %v2865_v33 }
 0xab7   :  { %v2889_v12 = vld [vmem:[#allocation6 + $0x1] sm:$0xff] }
 0xab8   :  { %5386 = vmatprep.mubr.msk.f32.mxu1 %vm1172_vm10, %v2889_v12  ;;  %v2873_v42 = vld [vmem:[#allocation6] sm:$0xff] }
 0xab9   :  { %v2890_v27 = vld [vmem:[#allocation6 + $0x9] sm:$0x7f] }
 0xaba   :  { %5387 = vmatmul.mubr.msk.f32.vlgmr.msra.gmra.mrb[18].mxu1 %vm1172_vm10, %v2890_v27  ;;  %v2874_v61 = vld [vmem:[#allocation6 + $0x8] sm:$0x7f] }
 0xabb   :  { %6102 = vmatpush3.bf16.msra.mxu1 %v6099_v40  ;;  %5417 = vmatprep.mubr.msk.f32.mxu1 %vm1172_vm10, %v2873_v42  ;;  %v3068_v37 = vld [vmem:[#allocation6 + $0x2] sm:$0xff]  ;;  %v3069_v26 = vld [vmem:[#allocation6 + $0xa] sm:$0x7f] }
 0xabc   :  { %6104 = vmatprep.subr.bf16.mxu1 %v6103_v21 }
 0xabf   :  { %6106 = vmatpush3.bf16.msra.mxu1 %v6103_v21 }
 0xac0   :  { %6108 = vmatprep.subr.bf16.mxu1 %v6107_v41 }
 0xac3   :  { %6110 = vmatpush3.bf16.msra.mxu1 %v6107_v41 }
 0xac4   :  { %6112 = vmatprep.subr.bf16.mxu1 %v6111_v19 }
 0xac7   :  { %6114 = vmatpush3.bf16.msra.mxu1 %v6111_v19 }
 0xac8   :  { %6116 = vmatprep.subr.bf16.mxu1 %v6115_v28 }
 0xacb   :  { %6118 = vmatpush3.bf16.msra.mxu1 %v6115_v28 }
 0xacc   :  { %6120 = vmatprep.subr.bf16.mxu1 %v6119_v31 }
 0xacf   :  { %6122 = vmatpush3.bf16.msra.mxu1 %v6119_v31 }
 0xad0   :  { %6124 = vmatprep.subr.bf16.mxu1 %v6123_v25 }
 0xad3   :  { %6126 = vmatpush3.bf16.msra.mxu1 %v6123_v25 }
 0xad4   :  { %6128 = vmatprep.subr.bf16.mxu1 %v6127_v11 }
 0xad6   :  { %5418 = vmatmul.mubr.msk.f32.vlgmr.msra.gmra.mrb[18].mxu1 %vm1172_vm10, %v2874_v61  ;;  %v3600_v61 = vld [vmem:[%s8670_s18 + $0x100] sm:$0xff] }
 0xad7   :  { %6130 = vmatpush3.bf16.msra.mxu1 %v6127_v11  ;;  %5448 = vmatprep.mubr.msk.f32.mxu1 %vm1172_vm10, %v3068_v37  ;;  %v3597_v11 = vld [vmem:[%s8670_s18 + $0xe8] sm:$0xff]  ;;  %v6228_v5 = vpack.c.bf16 %v3601_v3, %v3600_v61 }
 0xad8   :  { %6132 = vmatprep.subr.bf16.mxu1 %v6131_v30  ;;  %v6222_v59 = vpack.c.bf16 %v3597_v11, %v3596_v43  ;;  %v3609_v11 = vld [vmem:[%s8670_s18 + $0x148] sm:$0xff] }
 0xadb   :  { %6134 = vmatpush3.bf16.msra.mxu1 %v6131_v30 }
 0xadc   :  { %6136 = vmatprep.subr.bf16.mxu1 %v6135_v48 }
 0xadf   :  { %6138 = vmatpush3.bf16.msra.mxu1 %v6135_v48 }
 0xae0   :  { %6140 = vmatprep.subr.bf16.mxu1 %v6139_v58 }
 0xae3   :  { %6142 = vmatpush3.bf16.msra.mxu1 %v6139_v58 }
 0xae4   :  { %6144 = vmatprep.subr.bf16.mxu1 %v6143_v10 }
 0xae7   :  { %6146 = vmatpush3.bf16.msra.mxu1 %v6143_v10 }
 0xae8   :  { %6148 = vmatprep.subr.bf16.mxu1 %v6147_v55 }
 0xaeb   :  { %6150 = vmatpush3.bf16.msra.mxu1 %v6147_v55 }
 0xaec   :  { %6152 = vmatprep.subr.bf16.mxu1 %v6151_v54 }
 0xaef   :  { %6154 = vmatpush3.bf16.msra.mxu1 %v6151_v54 }
 0xaf0   :  { %6221 = vmatprep.subr.bf16.mxu1 %v6728_v38 }
 0xaf2   :  { %5449 = vmatmul.mubr.msk.f32.vlgmr.msra.gmra.mrb[18].mxu1 %vm1172_vm10, %v3069_v26  ;;  %v3316_v26 = vld [vmem:[#allocation20] sm:$0x1] }
 0xaf3   :  { %5579 = vmatprep.mubr.msk.f32.mxu1 %vm6729_vm9, %v6725_v0  ;;  %6223 = vmatpush3.bf16.msra.mxu1 %v6222_v59 }
 0xaf4   :  { %6224 = vmatprep.subr.bf16.mxu1 %v6728_v38 }
 0xbc5   :  { %v8233_v7 = vpop.f32.mrb[18].mxu1 }
 0xbc6   :  { %v3183_v9 = vsel %vm2869_vm6, %v8233_v7, 0.0  ;;  %v3190_v40 = vmul.f32 %v8233_v7, %v8233_v7  ;;  %v8239_v4 = vpop.f32.mrb[19].mxu1 }
 0xbc7   :  { %v3184_v8 = vrot.slane %v3183_v9, 4  ;;  %v3168_v14 = vsel %vm2869_vm6, %v8239_v4, 0.0  ;;  %v3175_v62 = vmul.f32 %v8239_v4, %v8239_v4 }
 0xbc8   :  { %v3191_v2 = vsel %vm2869_vm6, %v3190_v40, 0.0  ;;  %v3169_v17 = vrot.slane %v3168_v14, 4  ;;  %v3434_v40 = vld [vmem:[%s8670_s18 + $0x70] sm:$0xff] }
 0xbc9   :  { %v3185_v15 = vadd.f32 %v3184_v8, %v3183_v9  ;;  %v3192_v13 = vrot.slane %v3191_v2, 4  ;;  %v3176_v35 = vsel %vm2869_vm6, %v3175_v62, 0.0  ;;  %v3435_v8 = vld [vmem:[%s8670_s18 + $0x78] sm:$0xff] }
 0xbca   :  { %v3170_v33 = vadd.f32 %v3169_v17, %v3168_v14  ;;  %v3177_v20 = vrot.slane %v3176_v35, 4  ;;  %v3436_v17 = vld [vmem:[%s8670_s18 + $0x80] sm:$0xff] }
 0xbcb   :  { %v3186_v6 = vrot.slane %v3185_v15, 2  ;;  %v3193_v12 = vadd.f32 %v3192_v13, %v3191_v2  ;;  %v6180_v2 = vpack.c.bf16 %v3435_v8, %v3434_v40  ;;  %v3780_v40 = vld [vmem:[%s8670_s18 + $0x1e0] sm:$0xff]  ;;  %v3781_v8 = vld [vmem:[%s8670_s18 + $0x1e8] sm:$0xff] }
 0xbcc   :  { %v3171_v27 = vrot.slane %v3170_v33, 2  ;;  %v3178_v21 = vadd.f32 %v3177_v20, %v3176_v35  ;;  %v3438_v35 = vld [vmem:[%s8670_s18 + $0x90] sm:$0xff] }
 0xbcd   :  { %v3187_v46 = vadd.f32 %v3186_v6, %v3185_v15  ;;  %v3194_v49 = vrot.slane %v3193_v12, 2  ;;  %v3440_v6 = vld [vmem:[%s8670_s18 + $0xa0] sm:$0xff] }
 0xbce   :  { %v3172_v42 = vadd.f32 %v3171_v27, %v3170_v33  ;;  %v3179_v41 = vrot.slane %v3178_v21, 2  ;;  %v3439_v33 = vld [vmem:[%s8670_s18 + $0x98] sm:$0xff]  ;;  %v3602_v27 = vld [vmem:[%s8670_s18 + $0x110] sm:$0xff] }
 0xbcf   :  { %v3188_v44 = vrot.slane %v3187_v46, 1  ;;  %v3195_v47 = vadd.f32 %v3194_v49, %v3193_v12  ;;  %v6186_v20 = vpack.c.bf16 %v3439_v33, %v3438_v35  ;;  %v3441_v12 = vld [vmem:[%s8670_s18 + $0xa8] sm:$0xff]  ;;  %v3426_v33 = vld [vmem:[%s8670_s18 + $0x40] sm:$0xff] }
 0xbd0   :  { %v3173_v19 = vrot.slane %v3172_v42, 1  ;;  %v3180_v24 = vadd.f32 %v3179_v41, %v3178_v21  ;;  %v6189_v21 = vpack.c.bf16 %v3441_v12, %v3440_v6  ;;  %v3443_v41 = vld [vmem:[%s8670_s18 + $0xb8] sm:$0xff]  ;;  %v3784_v6 = vld [vmem:[%s8670_s18 + $0x200] sm:$0xff]  ;;  %v3785_v12 = vld [vmem:[%s8670_s18 + $0x208] sm:$0xff] }
 0xbd1   :  { %v3189_v51 = vadd.f32 %v3188_v44, %v3187_v46  ;;  %v3196_v28 = vrot.slane %v3195_v47, 1  ;;  %v3603_v46 = vld [vmem:[%s8670_s18 + $0x118] sm:$0xff]  ;;  %v3604_v44 = vld [vmem:[%s8670_s18 + $0x120] sm:$0xff] }
 0xbd2   :  { %v3174_v29 = vadd.f32 %v3173_v19, %v3172_v42  ;;  %v3181_v53 = vrot.slane %v3180_v24, 1  ;;  %v6231_v49 = vpack.c.bf16 %v3603_v46, %v3602_v27  ;;  %v3442_v42 = vld [vmem:[%s8670_s18 + $0xb0] sm:$0xff]  ;;  %v3605_v19 = vld [vmem:[%s8670_s18 + $0x128] sm:$0xff] }
 0xbd3   :  { %v3197_v31 = vadd.f32 %v3196_v28, %v3195_v47  ;;  %v6192_v47 = vpack.c.bf16 %v3443_v41, %v3442_v42  ;;  %v3445_v28 = vld [vmem:[%s8670_s18 + $0xc8] sm:$0xff]  ;;  %v3428_v46 = vld [vmem:[%s8670_s18 + $0x50] sm:$0xff]  ;;  %v3787_v41 = vld [vmem:[%s8670_s18 + $0x218] sm:$0xff] }
 0xbd4   :  { %v3182_v39 = vadd.f32 %v3181_v53, %v3180_v24  ;;  %v3198_v45 = vadd.f32 %v3189_v51, %v3174_v29  ;;  %v6234_v24 = vpack.c.bf16 %v3605_v19, %v3604_v44  ;;  %v3444_v51 = vld [vmem:[%s8670_s18 + $0xc0] sm:$0xff]  ;;  %v3606_v29 = vld [vmem:[%s8670_s18 + $0x130] sm:$0xff] }
 0xbd5   :  { %v6195_v53 = vpack.c.bf16 %v3445_v28, %v3444_v51  ;;  %v3786_v42 = vld [vmem:[%s8670_s18 + $0x210] sm:$0xff]  ;;  %v3430_v19 = vld [vmem:[%s8670_s18 + $0x60] sm:$0xff]  ;;  %v3789_v28 = vld [vmem:[%s8670_s18 + $0x228] sm:$0xff] }
 0xbd6   :  { %v3199_v25 = vadd.f32 %v3197_v31, %v3182_v39  ;;  %v3607_v31 = vld [vmem:[%s8670_s18 + $0x138] sm:$0xff]  ;;  %v3788_v51 = vld [vmem:[%s8670_s18 + $0x220] sm:$0xff] }
 0xbd7   :  { %v6237_v39 = vpack.c.bf16 %v3607_v31, %v3606_v29  ;;  %v3686_v31 = vld [vmem:[%s8670_s18 + $0x150] sm:$0xff] }
 0xbd8   :  { %v3200_v52 = vsel %vm1373_vm13, %v3198_v45, %v3199_v25  ;;  %v3446_v45 = vld [vmem:[%s8670_s18 + $0xd0] sm:$0xff]  ;;  %v3447_v25 = vld [vmem:[%s8670_s18 + $0xd8] sm:$0xff] }
 0xbd9   :  { %5480 = vmatmul.mubr.msk.f32.vlgmr.msra.gmra.mrb[16].mxu0 %vm1172_vm10, %v3200_v52  ;;  %v3608_v52 = vld [vmem:[%s8670_s18 + $0x140] sm:$0xff]  ;;  %v6198_v43 = vpack.c.bf16 %v3447_v25, %v3446_v45  ;;  %v3957_v25 = vld [vmem:[%s8670_s18 + $0x2a8] sm:$0xff] }
 0xbda   :  { %6178 = vmatpush3.bf16.msra.mxu0 %v8083_v60  ;;  %5486 = vmatprep.mubr.msk.f32.mxu0 %vm6729_vm9, %v6725_v0  ;;  %v3598_v60 = vld [vmem:[%s8670_s18 + $0xf0] sm:$0xff]  ;;  %v6240_v59 = vpack.c.bf16 %v3609_v11, %v3608_v52  ;;  %v3956_v45 = vld [vmem:[%s8670_s18 + $0x2a0] sm:$0xff] }
 0xbdb   :  { %6179 = vmatprep.subr.bf16.mxu0 %v6728_v38  ;;  %v6225_v30 = vpack.c.bf16 %v3599_v36, %v3598_v60  ;;  %v3688_v11 = vld [vmem:[%s8670_s18 + $0x160] sm:$0xff] }
 0xbdd   :  { %6226 = vmatpush3.bf16.msra.mxu1 %v6225_v30 }
 0xbde   :  { %6227 = vmatprep.subr.bf16.mxu1 %v6728_v38 }
 0xbe1   :  { %6229 = vmatpush3.bf16.msra.mxu1 %v6228_v5 }
 0xbe2   :  { %6230 = vmatprep.subr.bf16.mxu1 %v6728_v38 }
 0xbe5   :  { %6232 = vmatpush3.bf16.msra.mxu1 %v6231_v49  ;;  %v3429_v49 = vld [vmem:[%s8670_s18 + $0x58] sm:$0xff] }
 0xbe6   :  { %6233 = vmatprep.subr.bf16.mxu1 %v6728_v38  ;;  %v6216_v44 = vpack.c.bf16 %v3429_v49, %v3428_v46 }
 0xbe9   :  { %6235 = vmatpush3.bf16.msra.mxu1 %v6234_v24  ;;  %v3431_v24 = vld [vmem:[%s8670_s18 + $0x68] sm:$0xff] }
 0xbea   :  { %6236 = vmatprep.subr.bf16.mxu1 %v6728_v38  ;;  %v6219_v29 = vpack.c.bf16 %v3431_v24, %v3430_v19  ;;  %v3873_v19 = vld [vmem:[%s8670_s18 + $0x268] sm:$0xff] }
 0xbed   :  { %6238 = vmatpush3.bf16.msra.mxu1 %v6237_v39  ;;  %v3687_v39 = vld [vmem:[%s8670_s18 + $0x158] sm:$0xff] }
 0xbee   :  { %6239 = vmatprep.subr.bf16.mxu1 %v6728_v38  ;;  %v6243_v52 = vpack.c.bf16 %v3687_v39, %v3686_v31  ;;  %v3877_v31 = vld [vmem:[%s8670_s18 + $0x288] sm:$0xff] }
 0xbf1   :  { %6241 = vmatpush3.bf16.msra.mxu1 %v6240_v59  ;;  %v3689_v59 = vld [vmem:[%s8670_s18 + $0x168] sm:$0xff] }
 0xbf2   :  { %6263 = vmatprep.subr.bf16.mxu1 %v6728_v38 }
 0xcac   :  { %v3284_v37 = vpop.f32.mrb[16].mxu0 }
 0xcad   :  { %v3288_v48 = vmul.f32 0.010204081, %v3284_v37  ;;  %v5481_v56 = vpop.f32.mrb[17].mxu0 }
 0xcaf   :  { %v3289_v63 = vmul.f32 %v3288_v48, %v3288_v48 }
 0xcb1   :  { %v3291_v58 = vrot.slane %v3289_v63, 7 }
 0xcb3   :  { %v3293_v57 = vsub.f32 %v3288_v48, %v3291_v58  ;;  %v3418_v58 = vld [vmem:[%s8670_s18] sm:$0xff] }
 0xcb5   :  { %v3294_v1 = vmax.f32 %v3293_v57, 0.0 }
 0xcb7   :  { %v3296_v10 = vadd.f32 1e-05, %v3294_v1  ;;  %v3420_v1 = vld [vmem:[%s8670_s18 + $0x10] sm:$0xff] }
 0xcb9   :  { %6407 = vrsqrt.f32 %v3296_v10  ;;  %v3421_v10 = vld [vmem:[%s8670_s18 + $0x18] sm:$0xff] }
 0xcc3   :  { %v6408_v16 = vpop.eup %6407 }
 0xcc4   :  { %v3305_v23 = vrot.slane %v6408_v16, %v7605_v34  ;;  %v3778_v16 = vld [vmem:[%s8670_s18 + $0x1d0] sm:$0xff] }
 0xcc6   :  { %v3306_v55 = vcombine.high %v3305_v23, %v3305_v23  ;;  %v3779_v23 = vld [vmem:[%s8670_s18 + $0x1d8] sm:$0xff] }
 0xcc8   :  { %v3313_v32 = vrot.slane %v3306_v55, %v7605_v34  ;;  %v3437_v34 = vld [vmem:[%s8670_s18 + $0x88] sm:$0xff] }
 0xcc9   :  { %v6183_v13 = vpack.c.bf16 %v3437_v34, %v3436_v17  ;;  %v3425_v17 = vld [vmem:[%s8670_s18 + $0x38] sm:$0xff]  ;;  %v3782_v34 = vld [vmem:[%s8670_s18 + $0x1f0] sm:$0xff] }
 0xcca   :  { %v3315_v54 = vmul.f32 %v3313_v32, %v3295_v18  ;;  %v6204_v32 = vpack.c.bf16 %v3421_v10, %v3420_v1 }
 0xccc   :  { %v3317_v9 = vmul.f32 %v3315_v54, %v3288_v48 }
 0xcce   :  { %v3318_v14 = vsub.f32 %v3316_v26, %v3317_v9  ;;  %v3422_v26 = vld [vmem:[%s8670_s18 + $0x20] sm:$0xff]  ;;  %v3423_v9 = vld [vmem:[%s8670_s18 + $0x28] sm:$0xff] }
 0xcd0   :  { %v3323_v62 = vrot.slane %v3318_v14, %v7610_v22  ;;  %v6207_v14 = vpack.c.bf16 %v3423_v9, %v3422_v26  ;;  %v3696_v26 = vld [vmem:[%s8670_s18 + $0x1a0] sm:$0xff]  ;;  %v3697_v9 = vld [vmem:[%s8670_s18 + $0x1a8] sm:$0xff] }
 0xcd2   :  { %v3325_v15 = vsel %vm1373_vm13, %v3315_v54, %v3323_v62  ;;  %v6267_v54 = vpack.c.bf16 %v3779_v23, %v3778_v16  ;;  %v6270_v62 = vpack.c.bf16 %v3781_v8, %v3780_v40  ;;  %v3694_v16 = vld [vmem:[%s8670_s18 + $0x190] sm:$0xff]  ;;  %v3695_v23 = vld [vmem:[%s8670_s18 + $0x198] sm:$0xff] }
 0xcd3   :  { %5487 = vmatmul.mubr.msk.f32.vlgmr.msra.gmra.mrb[18].mxu0 %vm2778_vm5, %v3325_v15  ;;  %v3783_v15 = vld [vmem:[%s8670_s18 + $0x1f8] sm:$0xff]  ;;  %v3966_v40 = vld [vmem:[%s8670_s18 + $0x2f0] sm:$0xff] }
 0xcd4   :  { %6181 = vmatpush3.bf16.msra.mxu0 %v6180_v2  ;;  %5517 = vmatprep.mubr.msk.f32.mxu0 %vm6729_vm9, %v6725_v0  ;;  %v3424_v2 = vld [vmem:[%s8670_s18 + $0x30] sm:$0xff]  ;;  %v6273_v35 = vpack.c.bf16 %v3783_v15, %v3782_v34  ;;  %v3967_v8 = vld [vmem:[%s8670_s18 + $0x2f8] sm:$0xff]  ;;  %v3968_v34 = vld [vmem:[%s8670_s18 + $0x300] sm:$0xff] }
 0xcd5   :  { %6182 = vmatprep.subr.bf16.mxu0 %v6728_v38  ;;  %v3969_v15 = vld [vmem:[%s8670_s18 + $0x308] sm:$0xff] }
 0xcd8   :  { %6184 = vmatpush3.bf16.msra.mxu0 %v6183_v13  ;;  %v6210_v13 = vpack.c.bf16 %v3425_v17, %v3424_v2  ;;  %v3698_v2 = vld [vmem:[%s8670_s18 + $0x1b0] sm:$0xff]  ;;  %v3699_v17 = vld [vmem:[%s8670_s18 + $0x1b8] sm:$0xff] }
 0xcd9   :  { %6185 = vmatprep.subr.bf16.mxu0 %v6728_v38 }
 0xcdc   :  { %6187 = vmatpush3.bf16.msra.mxu0 %v6186_v20  ;;  %v3427_v20 = vld [vmem:[%s8670_s18 + $0x48] sm:$0xff] }
 0xcdd   :  { %6188 = vmatprep.subr.bf16.mxu0 %v6728_v38  ;;  %v6213_v27 = vpack.c.bf16 %v3427_v20, %v3426_v33  ;;  %v3866_v33 = vld [vmem:[%s8670_s18 + $0x230] sm:$0xff]  ;;  %v3867_v20 = vld [vmem:[%s8670_s18 + $0x238] sm:$0xff] }
 0xce0   :  { %6190 = vmatpush3.bf16.msra.mxu0 %v6189_v21  ;;  %v6276_v21 = vpack.c.bf16 %v3785_v12, %v3784_v6  ;;  %v6285_v6 = vpack.c.bf16 %v3867_v20, %v3866_v33  ;;  %v3868_v12 = vld [vmem:[%s8670_s18 + $0x240] sm:$0xff] }
 0xce1   :  { %6191 = vmatprep.subr.bf16.mxu0 %v6728_v38 }
 0xce4   :  { %6193 = vmatpush3.bf16.msra.mxu0 %v6192_v47  ;;  %v6279_v47 = vpack.c.bf16 %v3787_v41, %v3786_v42  ;;  %v3870_v42 = vld [vmem:[%s8670_s18 + $0x250] sm:$0xff]  ;;  %v3871_v41 = vld [vmem:[%s8670_s18 + $0x258] sm:$0xff] }
 0xce5   :  { %6194 = vmatprep.subr.bf16.mxu0 %v6728_v38 }
 0xce8   :  { %6196 = vmatpush3.bf16.msra.mxu0 %v6195_v53  ;;  %v6282_v53 = vpack.c.bf16 %v3789_v28, %v3788_v51  ;;  %v3874_v51 = vld [vmem:[%s8670_s18 + $0x270] sm:$0xff]  ;;  %v3875_v28 = vld [vmem:[%s8670_s18 + $0x278] sm:$0xff] }
 0xce9   :  { %6197 = vmatprep.subr.bf16.mxu0 %v6728_v38 }
 0xcec   :  { %6199 = vmatpush3.bf16.msra.mxu0 %v6198_v43  ;;  %v6306_v43 = vpack.c.bf16 %v3957_v25, %v3956_v45  ;;  %v3878_v45 = vld [vmem:[%s8670_s18 + $0x290] sm:$0xff]  ;;  %v3879_v25 = vld [vmem:[%s8670_s18 + $0x298] sm:$0xff] }
 0xced   :  { %6200 = vmatprep.subr.bf16.mxu0 %v6728_v38 }
 0xda6   :  { %v3397_v60 = vpop.f32.mrb[18].mxu0 }
 0xda7   :  { %v3404_v36 = vrot.slane %v3397_v60, %v7610_v22  ;;  %v5488_v30 = vpop.f32.mrb[19].mxu0  ;;  %v3410_v5 = vrot.slane %v3397_v60, %v7683_v50  ;;  %v3419_v22 = vld [vmem:[%s8670_s18 + $0x8] sm:$0xff]  ;;  %v3776_v50 = vld [vmem:[%s8670_s18 + $0x1c0] sm:$0xff]  ;;  %v3958_v60 = vld [vmem:[%s8670_s18 + $0x2b0] sm:$0xff] }
 0xda9   :  { %v3405_v61 = vmul.f32 %v3404_v36, %v8239_v4  ;;  %v3406_v3 = vmul.f32 %v8233_v7, %v3404_v36  ;;  %v3777_v7 = vld [vmem:[%s8670_s18 + $0x1c8] sm:$0xff]  ;;  %v6201_v4 = vpack.c.bf16 %v3419_v22, %v3418_v58  ;;  %v3959_v36 = vld [vmem:[%s8670_s18 + $0x2b8] sm:$0xff] }
 0xdaa   :  { %v6264_v57 = vpack.c.bf16 %v3777_v7, %v3776_v50  ;;  %v3692_v50 = vld [vmem:[%s8670_s18 + $0x180] sm:$0xff]  ;;  %v3693_v7 = vld [vmem:[%s8670_s18 + $0x188] sm:$0xff] }
 0xdab   :  { %v3411_v37 = vadd.f32 %v3410_v5, %v3405_v61  ;;  %v3412_v48 = vadd.f32 %v3410_v5, %v3406_v3  ;;  %v6246_v3 = vpack.c.bf16 %v3689_v59, %v3688_v11  ;;  %v6309_v5 = vpack.c.bf16 %v3959_v36, %v3958_v60  ;;  %v4053_v11 = vld [vmem:[%s8672_s20] sm:$0xff]  ;;  %v4054_v59 = vld [vmem:[%s8672_s20 + $0x8] sm:$0xff]  ;;  %v4055_v36 = vld [vmem:[%s8672_s20 + $0x10] sm:$0xff] }
 0xdac   :  { %v6252_v1 = vpack.c.bf16 %v3693_v7, %v3692_v50  ;;  %v6327_v60 = vpack.c.bf16 %v4054_v59, %v4053_v11 }
 0xdad   :  { %v3413_v56 = vmax.f32 %v3411_v37, 0.0  ;;  %v3414_v63 = vmax.f32 %v3412_v48, 0.0  ;;  %v3690_v37 = vld [vmem:[%s8670_s18 + $0x170] sm:$0xff]  ;;  %v3691_v48 = vld [vmem:[%s8670_s18 + $0x178] sm:$0xff] }
 0xdae   :  { %v6249_v58 = vpack.c.bf16 %v3691_v48, %v3690_v37 }
 0xdaf   :  { %3415 = vst.msk [vmem:[#allocation7] sm:$0xff] %vm1172_vm10, %v3413_v56  ;;  %v3960_v56 = vld [vmem:[%s8670_s18 + $0x2c0] sm:$0xff] }
 0xdb0   :  { %3416 = vst.msk [vmem:[#allocation7 + $0x8] sm:$0x7f] %vm2869_vm6, %v3414_v63  ;;  %v3961_v63 = vld [vmem:[%s8670_s18 + $0x2c8] sm:$0xff] }
 0xdb1   :  { %v6312_v22 = vpack.c.bf16 %v3961_v63, %v3960_v56 }
 0xdb7   :  { %v3433_v55 = vld [vmem:[#allocation7 + $0x1] ss:$8 sm:$0x3]  ;;  %v3595_v18 = vld [vmem:[#allocation7 + $0x2] ss:$8 sm:$0x3] }
 0xdb8   :  { %5518 = vmatmul.mubr.msk.f32.vlgmr.msra.gmra.mrb[20].mxu0 %vm1172_vm10, %v3433_v55  ;;  %5580 = vmatmul.mubr.msk.f32.vlgmr.msra.gmra.mrb[20].mxu1 %vm1172_vm10, %v3595_v18  ;;  %v3417_v30 = vld [vmem:[#allocation7] ss:$8 sm:$0x3]  ;;  %v3775_v61 = vld [vmem:[#allocation7 + $0x4] ss:$8 sm:$0x3] }
 0xdb9   :  { %6202 = vmatpush3.bf16.msra.mxu0 %v6201_v4  ;;  %6265 = vmatpush3.bf16.msra.mxu1 %v6264_v57  ;;  %v3962_v4 = vld [vmem:[%s8670_s18 + $0x2d0] sm:$0xff]  ;;  %v3963_v57 = vld [vmem:[%s8670_s18 + $0x2d8] sm:$0xff]  ;;  %v3964_v55 = vld [vmem:[%s8670_s18 + $0x2e0] sm:$0xff] }
 0xdba   :  { %6203 = vmatprep.subr.bf16.mxu0 %v6728_v38  ;;  %6266 = vmatprep.subr.bf16.mxu1 %v6728_v38  ;;  %v6315_v10 = vpack.c.bf16 %v3963_v57, %v3962_v4  ;;  %v3965_v18 = vld [vmem:[%s8670_s18 + $0x2e8] sm:$0xff]  ;;  %v3955_v46 = vld [vmem:[#allocation7 + $0x6] ss:$8 sm:$0x3] }
 0xdbb   :  { %5548 = vmatprep.mubr.msk.f32.mxu0 %vm6729_vm9, %v6725_v0  ;;  %5641 = vmatprep.mubr.msk.f32.mxu1 %vm6729_vm9, %v6725_v0 }
 0xdbd   :  { %6205 = vmatpush3.bf16.msra.mxu0 %v6204_v32  ;;  %6268 = vmatpush3.bf16.msra.mxu1 %v6267_v54  ;;  %v6255_v32 = vpack.c.bf16 %v3695_v23, %v3694_v16  ;;  %v6318_v54 = vpack.c.bf16 %v3965_v18, %v3964_v55  ;;  %v4402_v18 = vld [vmem:[#allocation25] ss:$0 sm:$0xff] }
 0xdbe   :  { %6206 = vmatprep.subr.bf16.mxu0 %v6728_v38  ;;  %6269 = vmatprep.subr.bf16.mxu1 %v6728_v38 }
 0xdc1   :  { %6208 = vmatpush3.bf16.msra.mxu0 %v6207_v14  ;;  %6271 = vmatpush3.bf16.msra.mxu1 %v6270_v62  ;;  %v6258_v14 = vpack.c.bf16 %v3697_v9, %v3696_v26  ;;  %v6321_v62 = vpack.c.bf16 %v3967_v8, %v3966_v40  ;;  %v4403_v9 = vld [vmem:[#allocation26] ss:$0 sm:$0xff] }
 0xdc2   :  { %6209 = vmatprep.subr.bf16.mxu0 %v6728_v38  ;;  %6272 = vmatprep.subr.bf16.mxu1 %v6728_v38 }
 0xdc5   :  { %6211 = vmatpush3.bf16.msra.mxu0 %v6210_v13  ;;  %6274 = vmatpush3.bf16.msra.mxu1 %v6273_v35  ;;  %v6261_v13 = vpack.c.bf16 %v3699_v17, %v3698_v2  ;;  %v6324_v35 = vpack.c.bf16 %v3969_v15, %v3968_v34 }
 0xdc6   :  { %6212 = vmatprep.subr.bf16.mxu0 %v6728_v38  ;;  %6275 = vmatprep.subr.bf16.mxu1 %v6728_v38 }
 0xdc9   :  { %6214 = vmatpush3.bf16.msra.mxu0 %v6213_v27  ;;  %6277 = vmatpush3.bf16.msra.mxu1 %v6276_v21  ;;  %v3869_v27 = vld [vmem:[%s8670_s18 + $0x248] sm:$0xff]  ;;  %v3685_v21 = vld [vmem:[#allocation7 + $0x3] ss:$8 sm:$0x3] }
 0xdca   :  { %6215 = vmatprep.subr.bf16.mxu0 %v6728_v38  ;;  %6278 = vmatprep.subr.bf16.mxu1 %v6728_v38  ;;  %v6288_v49 = vpack.c.bf16 %v3869_v27, %v3868_v12 }
 0xdcd   :  { %6217 = vmatpush3.bf16.msra.mxu0 %v6216_v44  ;;  %6280 = vmatpush3.bf16.msra.mxu1 %v6279_v47  ;;  %v6291_v44 = vpack.c.bf16 %v3871_v41, %v3870_v42  ;;  %v3872_v47 = vld [vmem:[%s8670_s18 + $0x260] sm:$0xff] }
 0xdce   :  { %6218 = vmatprep.subr.bf16.mxu0 %v6728_v38  ;;  %6281 = vmatprep.subr.bf16.mxu1 %v6728_v38  ;;  %v6294_v24 = vpack.c.bf16 %v3873_v19, %v3872_v47 }
 0xdd1   :  { %6220 = vmatpush3.bf16.msra.mxu0 %v6219_v29  ;;  %6283 = vmatpush3.bf16.msra.mxu1 %v6282_v53  ;;  %v6297_v29 = vpack.c.bf16 %v3875_v28, %v3874_v51  ;;  %v3876_v53 = vld [vmem:[%s8670_s18 + $0x280] sm:$0xff] }
 0xdd2   :  { %6242 = vmatprep.subr.bf16.mxu0 %v6728_v38  ;;  %6305 = vmatprep.subr.bf16.mxu1 %v6728_v38  ;;  %v6300_v39 = vpack.c.bf16 %v3877_v31, %v3876_v53 }
 0xdd4   :  { %5549 = vmatmul.mubr.msk.f32.vlgmr.msra.gmra.mrb[22].mxu0 %vm1172_vm10, %v3417_v30  ;;  %5642 = vmatmul.mubr.msk.f32.vlgmr.msra.gmra.mrb[22].mxu1 %vm1172_vm10, %v3775_v61 }
 0xdd5   :  { %6244 = vmatpush3.bf16.msra.mxu0 %v6243_v52  ;;  %6307 = vmatpush3.bf16.msra.mxu1 %v6306_v43  ;;  %v6303_v52 = vpack.c.bf16 %v3879_v25, %v3878_v45  ;;  %v3865_v43 = vld [vmem:[#allocation7 + $0x5] ss:$8 sm:$0x3] }
 0xdd6   :  { %6245 = vmatprep.subr.bf16.mxu0 %v6728_v38  ;;  %6308 = vmatprep.subr.bf16.mxu1 %v6728_v38 }
 0xdd7   :  { %5610 = vmatprep.mubr.msk.f32.mxu0 %vm6729_vm9, %v6725_v0  ;;  %5703 = vmatprep.mubr.msk.f32.mxu1 %vm6729_vm9, %v6725_v0 }
 0xdd9   :  { %6247 = vmatpush3.bf16.msra.mxu0 %v6246_v3  ;;  %6310 = vmatpush3.bf16.msra.mxu1 %v6309_v5 }
 0xdda   :  { %6248 = vmatprep.subr.bf16.mxu0 %v6728_v38  ;;  %6311 = vmatprep.subr.bf16.mxu1 %v6728_v38 }
 0xddd   :  { %6250 = vmatpush3.bf16.msra.mxu0 %v6249_v58  ;;  %6313 = vmatpush3.bf16.msra.mxu1 %v6312_v22 }
 0xdde   :  { %6251 = vmatprep.subr.bf16.mxu0 %v6728_v38  ;;  %6314 = vmatprep.subr.bf16.mxu1 %v6728_v38 }
 0xde1   :  { %6253 = vmatpush3.bf16.msra.mxu0 %v6252_v1  ;;  %6316 = vmatpush3.bf16.msra.mxu1 %v6315_v10 }
 0xde2   :  { %6254 = vmatprep.subr.bf16.mxu0 %v6728_v38  ;;  %6317 = vmatprep.subr.bf16.mxu1 %v6728_v38 }
 0xde5   :  { %6256 = vmatpush3.bf16.msra.mxu0 %v6255_v32  ;;  %6319 = vmatpush3.bf16.msra.mxu1 %v6318_v54 }
 0xde6   :  { %6257 = vmatprep.subr.bf16.mxu0 %v6728_v38  ;;  %6320 = vmatprep.subr.bf16.mxu1 %v6728_v38 }
 0xde9   :  { %6259 = vmatpush3.bf16.msra.mxu0 %v6258_v14  ;;  %6322 = vmatpush3.bf16.msra.mxu1 %v6321_v62 }
 0xdea   :  { %6260 = vmatprep.subr.bf16.mxu0 %v6728_v38  ;;  %6323 = vmatprep.subr.bf16.mxu1 %v6728_v38 }
 0xded   :  { %6262 = vmatpush3.bf16.msra.mxu0 %v6261_v13  ;;  %6325 = vmatpush3.bf16.msra.mxu1 %v6324_v35 }
 0xdee   :  { %6284 = vmatprep.subr.bf16.mxu0 %v6728_v38 }
 0xdf0   :  { %5611 = vmatmul.mubr.msk.f32.vlgmr.msra.gmra.mrb[24].mxu0 %vm1172_vm10, %v3685_v21  ;;  %5704 = vmatmul.mubr.msk.f32.vlgmr.msra.gmra.mrb[24].mxu1 %vm1172_vm10, %v3955_v46 }
 0xdf1   :  { %6286 = vmatpush3.bf16.msra.mxu0 %v6285_v6  ;;  %5672 = vmatprep.mubr.msk.f32.mxu0 %vm6729_vm9, %v6725_v0 }
 0xdf2   :  { %6287 = vmatprep.subr.bf16.mxu0 %v6728_v38 }
 0xdf5   :  { %6289 = vmatpush3.bf16.msra.mxu0 %v6288_v49 }
 0xdf6   :  { %6290 = vmatprep.subr.bf16.mxu0 %v6728_v38 }
 0xdf9   :  { %6292 = vmatpush3.bf16.msra.mxu0 %v6291_v44 }
 0xdfa   :  { %6293 = vmatprep.subr.bf16.mxu0 %v6728_v38 }
 0xdfd   :  { %6295 = vmatpush3.bf16.msra.mxu0 %v6294_v24 }
 0xdfe   :  { %6296 = vmatprep.subr.bf16.mxu0 %v6728_v38 }
 0xe01   :  { %6298 = vmatpush3.bf16.msra.mxu0 %v6297_v29 }
 0xe02   :  { %6299 = vmatprep.subr.bf16.mxu0 %v6728_v38 }
 0xe05   :  { %6301 = vmatpush3.bf16.msra.mxu0 %v6300_v39 }
 0xe06   :  { %6302 = vmatprep.subr.bf16.mxu0 %v6728_v38 }
 0xe09   :  { %6304 = vmatpush3.bf16.msra.mxu0 %v6303_v52 }
 0xe0a   :  { %6326 = vmatprep.subr.bf16.mxu0 %v6728_v38 }
 0xe0c   :  { %5673 = vmatmul.mubr.msk.f32.vlgmr.msra.gmra.mrb[26].mxu0 %vm1172_vm10, %v3865_v43 }
 0xe0d   :  { %5714 = vmatprep.mubr.msk.f32.mxu0 %vm6729_vm9, %v6725_v0  ;;  %6328 = vmatpush3.bf16.msra.mxu0 %v6327_v60  ;;  %v4056_v0 = vld [vmem:[%s8672_s20 + $0x18] sm:$0xff]  ;;  %s6731_s20 = smov [#allocation28]  }
 0xe0e   :  { %6329 = vmatprep.subr.bf16.mxu0 %v6728_v38  ;;  %v6330_v30 = vpack.c.bf16 %v4056_v0, %v4055_v36  ;;  %s4146_s5 = sshll.u32 %s6731_s20, 4  ;;  %s4147_s5 = int_to_ptr.vmem [resolvable:$true] %s4146_s5 }
 0xe0f   :  { %s6673_s0 = scalar_lea.vmem %s4147_s5, 32  ;;  %p6678_p13 = scmp.lt.s32.totalorder %s4147_s5, %s4147_s5 }
 0xe10   :  { %p6674_p12 = scmp.ne.s32.totalorder %s4147_s5, %s6673_s0  ;;  %p6679_p0 = scmp.lt.s32.totalorder %s6673_s0, %s6673_s0 }
 0xe11   :  { %6331 = vmatpush3.bf16.msra.mxu0 %v6330_v30 }
 0xe12   :  { %p6680_p1 = por %p6679_p0, %p6678_p13 }
 0xe14   :  { %p6681_p2 = pnand %p6680_p1, %p6674_p12 }
 0xe8b   :  { %v3517_v61 = vpop.f32.mrb[20].mxu0  ;;  %v3679_v3 = vpop.f32.mrb[20].mxu1 }
 0xe8c   :  { %v5519_v5 = vpop.f32.mrb[21].mxu0  ;;  %v5581_v37 = vpop.f32.mrb[21].mxu1 }
 0xea7   :  { %v3590_v48 = vpop.f32.mrb[22].mxu0  ;;  %v3859_v56 = vpop.f32.mrb[22].mxu1 }
 0xea8   :  { %v3591_v63 = vadd.f32 %v3590_v48, %v3517_v61  ;;  %v5550_v58 = vpop.f32.mrb[23].mxu0  ;;  %v5643_v22 = vpop.f32.mrb[23].mxu1 }
 0xeaa   :  { %v3683_v38 = vadd.f32 %v3679_v3, %v3591_v63 }
 0xec3   :  { %v3769_v50 = vpop.f32.mrb[24].mxu0  ;;  %v4039_v7 = vpop.f32.mrb[24].mxu1 }
 0xec4   :  { %v3773_v4 = vadd.f32 %v3769_v50, %v3683_v38  ;;  %v5612_v57 = vpop.f32.mrb[25].mxu0  ;;  %v5705_v1 = vpop.f32.mrb[25].mxu1 }
 0xec6   :  { %v3863_v10 = vadd.f32 %v3859_v56, %v3773_v4 }
 0xedf   :  { %v3949_v16 = vpop.f32.mrb[26].mxu0 }
 0xee0   :  { %v3953_v23 = vadd.f32 %v3949_v16, %v3863_v10  ;;  %v5674_v55 = vpop.f32.mrb[27].mxu0 }
 0xee2   :  { %v4043_v32 = vadd.f32 %v4039_v7, %v3953_v23 }
 0xee4   :  { %v4051_v54 = vadd.f32 %v4402_v18, %v4043_v32 }
 0xee6   :  { %v4052_v26 = vmax.f32 %v4051_v54, 0.0 }
 0xee8   :  { %5715 = vmatmul.mubr.msk.f32.vlgmr.msra.gmra.mrb[28].mxu0 %vm4064_vm7, %v4052_v26 }
 0xfbb   :  { %v4134_v40 = vpop.f32.mrb[28].mxu0 }
 0xfbc   :  { %v4135_v8 = vadd.f32 %v4403_v9, %v4134_v40  ;;  %v5716_v14 = vpop.f32.mrb[29].mxu0 }
 0xfbe   :  { %4139 = vst.msk [vmem:[#allocation28] sm:$0x3] %vm4138_vm8, %v4135_v8 }
 0xfbf   :  { %6684 = shalt.err (!%p6681_p2)
}
 0xfc0   :  { %s6685_s10 = scalar_lea.hbm %s8674_s22, 32 }
 0xfc1   :  { %p6686_p3 = scmp.ne.s32.totalorder %s8674_s22, %s6685_s10  ;;  %p6689_p4 = scmp.lt.u32.totalorder %s6685_s10, %s8674_s22 }
 0xfc3   :  { %p6691_p5 = pnand %p6689_p4, %p6686_p3 }
 0xfc5   :  { %6694 = shalt.err (!%p6691_p5)
}
 0xfc6   :  { %4149 = dma.vmem_to_hbm [thread:$0]  %s4147_s5, 32, %s8674_s22, [#allocation10]  }
 0xfc7   :  { %6709 = dma.done.wait [#allocation10], 32  }
 0xfc8   :  { %6710 = vsyncadd [#allocation10], 4294967264 }
 0xfc9   :  { %4153 = vsyncpa [#allocation9], 1 }
 0xfca   :  { %4154 = vsyncpa [#allocation12], 1 }
 0xfcb   :  { %4155 = vsyncpa [#allocation15], 1 }
 0xfcc   :  { %4156 = vsyncpa [#allocation18], 1 }
 0xfcd   :  { %4157 = vsyncpa [#allocation21], 1 }
 0xfce   :  { %4158 = vsyncpa [#allocation24], 1 }
 0xfcf   :  { %4159 = vsyncpa [#allocation27], 1 }
 0xfd0   :  { %4160 = vsyncpa [#allocation10], 1 }

</bundles_post_ra>
